<compile_context>
chip_gen: v6e
topology: v6e:2x2x1
jax: 0.10.0
libtpu: 0.0.40
codegen_flags: <defaults>
</compile_context>

<pallas_src>
import functools

import jax
import jax.numpy as jnp
from jax.experimental import pallas as pl
from jax.experimental.pallas import tpu as pltpu


_BN_EPS = 1e-5
_KSIZE, _STRIDE, _PADDING = 4, 2, 1


# ---------------------------------------------------------------------------
# Fused matmul + per-channel affine (+ optional LeakyReLU) kernel
# ---------------------------------------------------------------------------
def _matmul_fused_kernel(x_ref, w_ref, scale_ref, shift_ref, o_ref, acc_ref,
                         *, apply_lrelu, negative_slope):
    k = pl.program_id(2)

    @pl.when(k == 0)
    def _init():
        acc_ref[...] = jnp.zeros_like(acc_ref)

    # bf16 x bf16 -> f32 accumulation on the MXU.
    acc_ref[...] += jnp.dot(x_ref[...], w_ref[...],
                            preferred_element_type=jnp.float32)

    @pl.when(k == pl.num_programs(2) - 1)
    def _finalize():
        # y = (X @ W) * scale + shift   (scale/shift fold conv bias + BN)
        y = acc_ref[...] * scale_ref[...] + shift_ref[...]
        if apply_lrelu:
            y = jnp.where(y > 0, y, negative_slope * y)
        o_ref[...] = y.astype(o_ref.dtype)


def _pick_tile(dim, max_tile, align):
    """Largest aligned divisor of `dim` that is <= max_tile, else full dim."""
    if dim <= max_tile:
        return dim
    t = max_tile - (max_tile % align)
    while t >= align:
        if dim % t == 0:
            return t
        t -= align
    return dim


def matmul_fused(x, w, scale, shift, *, apply_lrelu, negative_slope=0.2,
                 out_dtype=jnp.bfloat16):
    """y = leaky_relu?( (x @ w) * scale + shift ), scale/shift per out-column.

    x: (M, K) bf16 patches, w: (K, N) bf16 weights, scale/shift: (N,) f32.
    """
    M, K = x.shape
    K2, N = w.shape
    assert K == K2

    # Guard: pad M to a multiple of 16 (bf16 sublane packing) so tiles always
    # align; padded rows are sliced off after the call.
    m_pad = (-M) % 16
    if m_pad:
        x = jnp.pad(x, ((0, m_pad), (0, 0)))
    Mp = M + m_pad

    tm = _pick_tile(Mp, 256, 16)
    if Mp // tm == 1 and tm % 32 == 0:
        tm //= 2                      # expose >=2 parallel M tiles (v7x 2 TCs)
    tn = N if N <= 128 else N // 2    # split N for v7x; stays lane-dense (>=128)
    if tn != N and tn % 128 != 0:
        tn = N
    tk = _pick_tile(K, 512, 128)      # >=2 K steps on big layers -> pipelined DMA

    grid = (Mp // tm, N // tn, K // tk)

    kernel = functools.partial(_matmul_fused_kernel,
                               apply_lrelu=apply_lrelu,
                               negative_slope=negative_slope)

    out_itemsize = jnp.dtype(out_dtype).itemsize
    cost = pl.CostEstimate(
        flops=2 * Mp * N * K,
        transcendentals=0,
        bytes_accessed=Mp * K * 2 + K * N * 2 + Mp * N * out_itemsize + 8 * N,
    )

    out = pl.pallas_call(
        kernel,
        out_shape=jax.ShapeDtypeStruct((Mp, N), out_dtype),
        grid_spec=pltpu.PrefetchScalarGridSpec(
            num_scalar_prefetch=0,
            grid=grid,
            in_specs=[
                pl.BlockSpec((tm, tk), lambda i, j, k: (i, k)),
                pl.BlockSpec((tk, tn), lambda i, j, k: (k, j)),
                pl.BlockSpec((1, tn), lambda i, j, k: (0, j)),
                pl.BlockSpec((1, tn), lambda i, j, k: (0, j)),
            ],
            out_specs=pl.BlockSpec((tm, tn), lambda i, j, k: (i, j)),
            scratch_shapes=[pltpu.VMEM((tm, tn), jnp.float32)],
        ),
        compiler_params=pltpu.CompilerParams(
            dimension_semantics=("parallel", "parallel", "arbitrary"),
            vmem_limit_bytes=32 * 1024 * 1024,   # safe on v5e/v6e/v7x
        ),
        cost_estimate=cost,
    )(x, w, scale.reshape(1, N).astype(jnp.float32),
      shift.reshape(1, N).astype(jnp.float32))

    if m_pad:
        out = out[:M]
    return out


# ---------------------------------------------------------------------------
# im2col (layout plumbing only; all FLOPs happen in the Pallas kernel)
# ---------------------------------------------------------------------------
def _extract_patches(x_nhwc, ksize, stride, pad):
    # TODO(synk): the im2col patch matrix is still materialized wrapper-side in
    # HBM (4x read amplification for k=4/s=2); fusing patch formation into the
    # kernel via manual DMA is the remaining HBM-traffic optimization.
    n, h, w, c = x_nhwc.shape
    oh = (h + 2 * pad - ksize) // stride + 1
    ow = (w + 2 * pad - ksize) // stride + 1
    xp = jnp.pad(x_nhwc, ((0, 0), (pad, pad), (pad, pad), (0, 0)))
    cols = []
    for ky in range(ksize):
        for kx in range(ksize):
            cols.append(xp[:, ky:ky + stride * oh:stride,
                           kx:kx + stride * ow:stride, :])    # (n, oh, ow, c)
    patches = jnp.stack(cols, axis=3)                          # (n, oh, ow, k*k, c)
    patches = patches.reshape(n * oh * ow, ksize * ksize * c)
    return patches, (n, oh, ow)


# ---------------------------------------------------------------------------
# One-time parameter preprocessing (hoisted out of the forward)
# ---------------------------------------------------------------------------
def prepare_params(params, image_size):
    prepped = {"convs": []}
    for layer in params["convs"]:
        w = layer["w"]                       # (CO, CI, KH, KW)  PyTorch layout
        b = layer["b"].astype(jnp.float32)
        bn = layer["bn"]
        co, ci, kh, kw_ = w.shape
        ci_pad = 8 if ci < 8 else ci         # layer 1: pad 3 -> 8 so K = 128

        w_hwio = jnp.transpose(w, (2, 3, 1, 0))          # (KH, KW, CI, CO)
        if ci_pad != ci:
            w_hwio = jnp.pad(w_hwio, ((0, 0), (0, 0), (0, ci_pad - ci), (0, 0)))
        w_flat = w_hwio.reshape(kh * kw_ * ci_pad, co).astype(jnp.bfloat16)

        if bn is not None:
            # TODO(synk): BatchNorm2d is folded with running stats (inference
            # semantics); train-mode batch statistics are not computed in-kernel.
            gamma, beta, mean, var = bn
            s = gamma / jnp.sqrt(var + _BN_EPS)
            scale = s
            shift = (b - mean) * s + beta
        else:
            scale = jnp.ones((co,), jnp.float32)
            shift = b

        prepped["convs"].append({
            "w_flat": w_flat,
            "scale": scale.astype(jnp.float32),
            "shift": shift.astype(jnp.float32),
        })

    # fc_w columns permuted from NCHW-flatten to NHWC-flatten order so the
    # producer's layout is kept (no transpose between Pallas and the dot).
    s4 = image_size // 16
    fc_w = params["fc_w"].reshape(512, s4, s4)
    prepped["fc_w"] = jnp.transpose(fc_w, (1, 2, 0)).reshape(-1).astype(jnp.float32)
    prepped["fc_b"] = params["fc_b"].astype(jnp.float32)
    return prepped


# ---------------------------------------------------------------------------
# Discriminator forward (Pallas path)
# ---------------------------------------------------------------------------
def discriminator_forward(images_nchw, labels, prepped):
    # `labels` is accepted but unused, matching the PyTorch forward.
    del labels
    x = jnp.transpose(images_nchw, (0, 2, 3, 1)).astype(jnp.bfloat16)   # NHWC

    for layer in prepped["convs"]:
        w_flat = layer["w_flat"]
        co = w_flat.shape[1]
        ci_pad = w_flat.shape[0] // (_KSIZE * _KSIZE)
        ci = x.shape[-1]
        if ci_pad != ci:
            x = jnp.pad(x, ((0, 0), (0, 0), (0, 0), (0, ci_pad - ci)))

        patches, (n, oh, ow) = _extract_patches(x, _KSIZE, _STRIDE, _PADDING)
        y = matmul_fused(patches, w_flat, layer["scale"], layer["shift"],
                         apply_lrelu=True, out_dtype=jnp.bfloat16)
        x = y.reshape(n, oh, ow, co)

    # Final Linear (out_features=1): N=1 Pallas tile is pure overhead, so per
    # the perf review it is left to XLA; fc_w was pre-permuted to NHWC order.
    feats = x.reshape(x.shape[0], -1).astype(jnp.float32)
    out = feats @ prepped["fc_w"][:, None] + prepped["fc_b"]
    return out                               # (N, 1)


# ---------------------------------------------------------------------------
# Reference with matched numerics (bf16 inputs, f32 accumulation) for checking
# ---------------------------------------------------------------------------
def _reference_forward(images_nchw, params):
    x = jnp.transpose(images_nchw, (0, 2, 3, 1)).astype(jnp.bfloat16)
    for layer in params["convs"]:
        w_hwio = jnp.transpose(layer["w"], (2, 3, 1, 0)).astype(jnp.bfloat16)
        y = jax.lax.conv_general_dilated(
            x, w_hwio, window_strides=(2, 2), padding=((1, 1), (1, 1)),
            dimension_numbers=("NHWC", "HWIO", "NHWC"),
            preferred_element_type=jnp.float32)
        y = y + layer["b"]
        if layer["bn"] is not None:
            gamma, beta, mean, var = layer["bn"]
            y = (y - mean) / jnp.sqrt(var + _BN_EPS) * gamma + beta
        y = jnp.where(y > 0, y, 0.2 * y)
        x = y.astype(jnp.bfloat16)
    feats = jnp.transpose(x.astype(jnp.float32), (0, 3, 1, 2)).reshape(x.shape[0], -1)
    return jnp.dot(feats, params["fc_w"].T,
                   precision=jax.lax.Precision.HIGHEST) + params["fc_b"]


# ---------------------------------------------------------------------------
# Parameter init (deterministic, PyTorch layouts)
# ---------------------------------------------------------------------------
def init_params(key, image_size=32):
    convs_cfg = [(3, 64, False), (64, 128, True), (128, 256, True), (256, 512, True)]
    params = {"convs": []}
    for ci, co, has_bn in convs_cfg:
        key, kw, kb, kg, kbe, km, kv = jax.random.split(key, 7)
        fan_in = ci * 16
        w = jax.random.normal(kw, (co, ci, 4, 4), jnp.float32) / jnp.sqrt(fan_in)
        b = 0.01 * jax.random.normal(kb, (co,), jnp.float32)
        bn = None
        if has_bn:
            gamma = 1.0 + 0.1 * jax.random.normal(kg, (co,), jnp.float32)
            beta = 0.1 * jax.random.normal(kbe, (co,), jnp.float32)
            mean = 0.1 * jax.random.normal(km, (co,), jnp.float32)
            var = jax.random.uniform(kv, (co,), jnp.float32, minval=0.5, maxval=1.5)
            bn = (gamma, beta, mean, var)
        params["convs"].append({"w": w, "b": b, "bn": bn})

    fc_in = 512 * (image_size // 16) ** 2
    key, kw = jax.random.split(key)
    params["fc_w"] = jax.random.normal(kw, (1, fc_in), jnp.float32) / jnp.sqrt(fc_in)
    params["fc_b"] = jnp.zeros((1,), jnp.float32)
    # NOTE: class_embedding / fc_class_embed exist in the PyTorch module but are
    # never used by forward(), so they are intentionally not materialized here.
    return params


if __name__ == "__main__":
    key = jax.random.PRNGKey(0)
    k_img, k_lab, k_par = jax.random.split(key, 3)

    image_size = 32          # small but divisible by 16, consistent with the module
    batch = 2
    images = jax.random.normal(k_img, (batch, 3, image_size, image_size), jnp.float32)
    labels = jax.random.randint(k_lab, (batch,), 0, 14)   # unused by forward
    params = init_params(k_par, image_size=image_size)
    prepped = prepare_params(params, image_size)           # one-time preprocessing

    fwd = jax.jit(discriminator_forward)
    out = fwd(images, labels, prepped)
    jax.block_until_ready(out)

    ref = _reference_forward(images, params)
    jax.block_until_ready(ref)

    assert out.shape == (batch, 1), out.shape
    assert jnp.allclose(out, ref, rtol=2e-2, atol=2e-2), (out, ref)

    print("KERNEL_OK")
</pallas_src>

<mosaic_0001>
module attributes {stable_mosaic.version = 11 : i64} {
  func.func @_matmul_fused_kernel(%arg0: i32, %arg1: i32, %arg2: i32, %arg3: memref<256x128xbf16, #tpu.memory_space<vmem>>, %arg4: memref<128x64xbf16, #tpu.memory_space<vmem>>, %arg5: memref<1x64xf32, #tpu.memory_space<vmem>>, %arg6: memref<1x64xf32, #tpu.memory_space<vmem>>, %arg7: memref<256x64xbf16, #tpu.memory_space<vmem>>, %arg8: memref<256x64xf32, #tpu.memory_space<vmem>>) attributes {dimension_semantics = [#tpu.dimension_semantics<parallel>, #tpu.dimension_semantics<parallel>, #tpu.dimension_semantics<arbitrary>], iteration_bounds = array<i64: 2, 1, 1>, scalar_prefetch = 0 : i64, scratch_operands = 1 : i64, tpu.core_type = #tpu.core_type<tc>, window_params = [{transform_indices = @transform_0, window_bounds = array<i64: 256, 128>}, {transform_indices = @transform_1, window_bounds = array<i64: 128, 64>}, {transform_indices = @transform_2, window_bounds = array<i64: 1, 64>}, {transform_indices = @transform_3, window_bounds = array<i64: 1, 64>}, {transform_indices = @transform_4, window_bounds = array<i64: 256, 64>}]} {
    %c0_i32 = arith.constant 0 : i32
    %0 = arith.cmpi eq, %arg2, %c0_i32 : i32
    %1 = arith.extui %0 : i1 to i32
    %c0_i32_0 = arith.constant 0 : i32
    %2 = arith.cmpi ne, %1, %c0_i32_0 : i32
    scf.if %2 {
      %cst_10 = arith.constant 0.000000e+00 : f32
      %12 = vector.broadcast %cst_10 : f32 to vector<256x64xf32>
      %c0_11 = arith.constant 0 : index
      %c0_12 = arith.constant 0 : index
      %13 = vector.load %arg8[%c0_11, %c0_12] : memref<256x64xf32, #tpu.memory_space<vmem>>, vector<256x64xf32>
      tpu.vector_store %arg8[%c0_11, %c0_12], %12 {strides = array<i32>} : memref<256x64xf32, #tpu.memory_space<vmem>>, vector<256x64xf32>,
    } else {
    }
    %c0 = arith.constant 0 : index
    %c0_1 = arith.constant 0 : index
    %3 = vector.load %arg8[%c0, %c0_1] : memref<256x64xf32, #tpu.memory_space<vmem>>, vector<256x64xf32>
    %c0_2 = arith.constant 0 : index
    %c0_3 = arith.constant 0 : index
    %4 = vector.load %arg3[%c0_2, %c0_3] : memref<256x128xbf16, #tpu.memory_space<vmem>>, vector<256x128xbf16>
    %c0_4 = arith.constant 0 : index
    %c0_5 = arith.constant 0 : index
    %5 = vector.load %arg4[%c0_4, %c0_5] : memref<128x64xbf16, #tpu.memory_space<vmem>>, vector<128x64xbf16>
    %cst = arith.constant dense<0.000000e+00> : vector<256x64xf32>
    %6 = tpu.matmul %4, %5, %cst {dimension_numbers = #tpu.dot_dimension_numbers<[1], [0], [0], [1], [0, 0, 1, 1], [], []>} : vector<256x128xbf16>, vector<128x64xbf16>, vector<256x64xf32> -> vector<256x64xf32>
    %7 = arith.addf %3, %6 : vector<256x64xf32>
    %c0_6 = arith.constant 0 : index
    %c0_7 = arith.constant 0 : index
    %8 = vector.load %arg8[%c0_6, %c0_7] : memref<256x64xf32, #tpu.memory_space<vmem>>, vector<256x64xf32>
    tpu.vector_store %arg8[%c0_6, %c0_7], %7 {strides = array<i32>} : memref<256x64xf32, #tpu.memory_space<vmem>>, vector<256x64xf32>,
    %c0_i32_8 = arith.constant 0 : i32
    %9 = arith.cmpi eq, %arg2, %c0_i32_8 : i32
    %10 = arith.extui %9 : i1 to i32
    %c0_i32_9 = arith.constant 0 : i32
    %11 = arith.cmpi ne, %10, %c0_i32_9 : i32
    scf.if %11 {
      %c0_10 = arith.constant 0 : index
      %c0_11 = arith.constant 0 : index
      %12 = vector.load %arg8[%c0_10, %c0_11] : memref<256x64xf32, #tpu.memory_space<vmem>>, vector<256x64xf32>
      %c0_12 = arith.constant 0 : index
      %c0_13 = arith.constant 0 : index
      %13 = vector.load %arg5[%c0_12, %c0_13] : memref<1x64xf32, #tpu.memory_space<vmem>>, vector<1x64xf32>
      %14 = vector.broadcast %13 : vector<1x64xf32> to vector<256x64xf32>
      %15 = arith.mulf %12, %14 : vector<256x64xf32>
      %c0_14 = arith.constant 0 : index
      %c0_15 = arith.constant 0 : index
      %16 = vector.load %arg6[%c0_14, %c0_15] : memref<1x64xf32, #tpu.memory_space<vmem>>, vector<1x64xf32>
      %17 = vector.broadcast %16 : vector<1x64xf32> to vector<256x64xf32>
      %18 = arith.addf %15, %17 : vector<256x64xf32>
      %cst_16 = arith.constant 0.000000e+00 : f32
      %19 = vector.broadcast %cst_16 : f32 to vector<256x64xf32>
      %20 = arith.cmpf ogt, %18, %19 : vector<256x64xf32>
      %cst_17 = arith.constant 2.000000e-01 : f32
      %21 = vector.broadcast %cst_17 : f32 to vector<256x64xf32>
      %22 = arith.mulf %21, %18 : vector<256x64xf32>
      %23 = arith.select %20, %18, %22 : vector<256x64xi1>, vector<256x64xf32>
      %24 = arith.truncf %23 : vector<256x64xf32> to vector<256x64xbf16>
      %c0_18 = arith.constant 0 : index
      %c0_19 = arith.constant 0 : index
      %25 = vector.load %arg7[%c0_18, %c0_19] : memref<256x64xbf16, #tpu.memory_space<vmem>>, vector<256x64xbf16>
      tpu.vector_store %arg7[%c0_18, %c0_19], %24 {strides = array<i32>} : memref<256x64xbf16, #tpu.memory_space<vmem>>, vector<256x64xbf16>,
    } else {
    }
    return
  }
  func.func @transform_0(%arg0: i32, %arg1: i32, %arg2: i32) -> (i32, i32) {
    %c0_i32 = arith.constant 0 : i32
    return %arg0, %arg2 : i32, i32
  }
  func.func @transform_1(%arg0: i32, %arg1: i32, %arg2: i32) -> (i32, i32) {
    %c0_i32 = arith.constant 0 : i32
    return %arg2, %arg1 : i32, i32
  }
  func.func @transform_2(%arg0: i32, %arg1: i32, %arg2: i32) -> (i32, i32) {
    %c0_i32 = arith.constant 0 : i32
    %c0_i32_0 = arith.constant 0 : i32
    return %c0_i32, %arg1 : i32, i32
  }
  func.func @transform_3(%arg0: i32, %arg1: i32, %arg2: i32) -> (i32, i32) {
    %c0_i32 = arith.constant 0 : i32
    %c0_i32_0 = arith.constant 0 : i32
    return %c0_i32, %arg1 : i32, i32
  }
  func.func @transform_4(%arg0: i32, %arg1: i32, %arg2: i32) -> (i32, i32) {
    %c0_i32 = arith.constant 0 : i32
    return %arg0, %arg1 : i32, i32
  }
}

module attributes {stable_mosaic.version = 11 : i64} {
  func.func @_matmul_fused_kernel(%arg0: i32, %arg1: i32, %arg2: i32, %arg3: memref<64x512xbf16, #tpu.memory_space<vmem>>, %arg4: memref<512x128xbf16, #tpu.memory_space<vmem>>, %arg5: memref<1x128xf32, #tpu.memory_space<vmem>>, %arg6: memref<1x128xf32, #tpu.memory_space<vmem>>, %arg7: memref<64x128xbf16, #tpu.memory_space<vmem>>, %arg8: memref<64x128xf32, #tpu.memory_space<vmem>>) attributes {dimension_semantics = [#tpu.dimension_semantics<parallel>, #tpu.dimension_semantics<parallel>, #tpu.dimension_semantics<arbitrary>], iteration_bounds = array<i64: 2, 1, 2>, scalar_prefetch = 0 : i64, scratch_operands = 1 : i64, tpu.core_type = #tpu.core_type<tc>, window_params = [{transform_indices = @transform_0, window_bounds = array<i64: 64, 512>}, {transform_indices = @transform_1, window_bounds = array<i64: 512, 128>}, {transform_indices = @transform_2, window_bounds = array<i64: 1, 128>}, {transform_indices = @transform_3, window_bounds = array<i64: 1, 128>}, {transform_indices = @transform_4, window_bounds = array<i64: 64, 128>}]} {
    %c0_i32 = arith.constant 0 : i32
    %0 = arith.cmpi eq, %arg2, %c0_i32 : i32
    %1 = arith.extui %0 : i1 to i32
    %c0_i32_0 = arith.constant 0 : i32
    %2 = arith.cmpi ne, %1, %c0_i32_0 : i32
    scf.if %2 {
      %cst_9 = arith.constant 0.000000e+00 : f32
      %12 = vector.broadcast %cst_9 : f32 to vector<64x128xf32>
      %c0_10 = arith.constant 0 : index
      %c0_11 = arith.constant 0 : index
      %13 = vector.load %arg8[%c0_10, %c0_11] : memref<64x128xf32, #tpu.memory_space<vmem>>, vector<64x128xf32>
      tpu.vector_store %arg8[%c0_10, %c0_11], %12 {strides = array<i32>} : memref<64x128xf32, #tpu.memory_space<vmem>>, vector<64x128xf32>,
    } else {
    }
    %c0 = arith.constant 0 : index
    %c0_1 = arith.constant 0 : index
    %3 = vector.load %arg8[%c0, %c0_1] : memref<64x128xf32, #tpu.memory_space<vmem>>, vector<64x128xf32>
    %c0_2 = arith.constant 0 : index
    %c0_3 = arith.constant 0 : index
    %4 = vector.load %arg3[%c0_2, %c0_3] : memref<64x512xbf16, #tpu.memory_space<vmem>>, vector<64x512xbf16>
    %c0_4 = arith.constant 0 : index
    %c0_5 = arith.constant 0 : index
    %5 = vector.load %arg4[%c0_4, %c0_5] : memref<512x128xbf16, #tpu.memory_space<vmem>>, vector<512x128xbf16>
    %cst = arith.constant dense<0.000000e+00> : vector<64x128xf32>
    %6 = tpu.matmul %4, %5, %cst {dimension_numbers = #tpu.dot_dimension_numbers<[1], [0], [0], [1], [0, 0, 1, 1], [], []>} : vector<64x512xbf16>, vector<512x128xbf16>, vector<64x128xf32> -> vector<64x128xf32>
    %7 = arith.addf %3, %6 : vector<64x128xf32>
    %c0_6 = arith.constant 0 : index
    %c0_7 = arith.constant 0 : index
    %8 = vector.load %arg8[%c0_6, %c0_7] : memref<64x128xf32, #tpu.memory_space<vmem>>, vector<64x128xf32>
    tpu.vector_store %arg8[%c0_6, %c0_7], %7 {strides = array<i32>} : memref<64x128xf32, #tpu.memory_space<vmem>>, vector<64x128xf32>,
    %c1_i32 = arith.constant 1 : i32
    %9 = arith.cmpi eq, %arg2, %c1_i32 : i32
    %10 = arith.extui %9 : i1 to i32
    %c0_i32_8 = arith.constant 0 : i32
    %11 = arith.cmpi ne, %10, %c0_i32_8 : i32
    scf.if %11 {
      %c0_9 = arith.constant 0 : index
      %c0_10 = arith.constant 0 : index
      %12 = vector.load %arg8[%c0_9, %c0_10] : memref<64x128xf32, #tpu.memory_space<vmem>>, vector<64x128xf32>
      %c0_11 = arith.constant 0 : index
      %c0_12 = arith.constant 0 : index
      %13 = vector.load %arg5[%c0_11, %c0_12] : memref<1x128xf32, #tpu.memory_space<vmem>>, vector<1x128xf32>
      %14 = vector.broadcast %13 : vector<1x128xf32> to vector<64x128xf32>
      %15 = arith.mulf %12, %14 : vector<64x128xf32>
      %c0_13 = arith.constant 0 : index
      %c0_14 = arith.constant 0 : index
      %16 = vector.load %arg6[%c0_13, %c0_14] : memref<1x128xf32, #tpu.memory_space<vmem>>, vector<1x128xf32>
      %17 = vector.broadcast %16 : vector<1x128xf32> to vector<64x128xf32>
      %18 = arith.addf %15, %17 : vector<64x128xf32>
      %cst_15 = arith.constant 0.000000e+00 : f32
      %19 = vector.broadcast %cst_15 : f32 to vector<64x128xf32>
      %20 = arith.cmpf ogt, %18, %19 : vector<64x128xf32>
      %cst_16 = arith.constant 2.000000e-01 : f32
      %21 = vector.broadcast %cst_16 : f32 to vector<64x128xf32>
      %22 = arith.mulf %21, %18 : vector<64x128xf32>
      %23 = arith.select %20, %18, %22 : vector<64x128xi1>, vector<64x128xf32>
      %24 = arith.truncf %23 : vector<64x128xf32> to vector<64x128xbf16>
      %c0_17 = arith.constant 0 : index
      %c0_18 = arith.constant 0 : index
      %25 = vector.load %arg7[%c0_17, %c0_18] : memref<64x128xbf16, #tpu.memory_space<vmem>>, vector<64x128xbf16>
      tpu.vector_store %arg7[%c0_17, %c0_18], %24 {strides = array<i32>} : memref<64x128xbf16, #tpu.memory_space<vmem>>, vector<64x128xbf16>,
    } else {
    }
    return
  }
  func.func @transform_0(%arg0: i32, %arg1: i32, %arg2: i32) -> (i32, i32) {
    %c0_i32 = arith.constant 0 : i32
    return %arg0, %arg2 : i32, i32
  }
  func.func @transform_1(%arg0: i32, %arg1: i32, %arg2: i32) -> (i32, i32) {
    %c0_i32 = arith.constant 0 : i32
    return %arg2, %arg1 : i32, i32
  }
  func.func @transform_2(%arg0: i32, %arg1: i32, %arg2: i32) -> (i32, i32) {
    %c0_i32 = arith.constant 0 : i32
    %c0_i32_0 = arith.constant 0 : i32
    return %c0_i32, %arg1 : i32, i32
  }
  func.func @transform_3(%arg0: i32, %arg1: i32, %arg2: i32) -> (i32, i32) {
    %c0_i32 = arith.constant 0 : i32
    %c0_i32_0 = arith.constant 0 : i32
    return %c0_i32, %arg1 : i32, i32
  }
  func.func @transform_4(%arg0: i32, %arg1: i32, %arg2: i32) -> (i32, i32) {
    %c0_i32 = arith.constant 0 : i32
    return %arg0, %arg1 : i32, i32
  }
}

module attributes {stable_mosaic.version = 11 : i64} {
  func.func @_matmul_fused_kernel(%arg0: i32, %arg1: i32, %arg2: i32, %arg3: memref<16x512xbf16, #tpu.memory_space<vmem>>, %arg4: memref<512x128xbf16, #tpu.memory_space<vmem>>, %arg5: memref<1x128xf32, #tpu.memory_space<vmem>>, %arg6: memref<1x128xf32, #tpu.memory_space<vmem>>, %arg7: memref<16x128xbf16, #tpu.memory_space<vmem>>, %arg8: memref<16x128xf32, #tpu.memory_space<vmem>>) attributes {dimension_semantics = [#tpu.dimension_semantics<parallel>, #tpu.dimension_semantics<parallel>, #tpu.dimension_semantics<arbitrary>], iteration_bounds = array<i64: 2, 2, 4>, scalar_prefetch = 0 : i64, scratch_operands = 1 : i64, tpu.core_type = #tpu.core_type<tc>, window_params = [{transform_indices = @transform_0, window_bounds = array<i64: 16, 512>}, {transform_indices = @transform_1, window_bounds = array<i64: 512, 128>}, {transform_indices = @transform_2, window_bounds = array<i64: 1, 128>}, {transform_indices = @transform_3, window_bounds = array<i64: 1, 128>}, {transform_indices = @transform_4, window_bounds = array<i64: 16, 128>}]} {
    %c0_i32 = arith.constant 0 : i32
    %0 = arith.cmpi eq, %arg2, %c0_i32 : i32
    %1 = arith.extui %0 : i1 to i32
    %c0_i32_0 = arith.constant 0 : i32
    %2 = arith.cmpi ne, %1, %c0_i32_0 : i32
    scf.if %2 {
      %cst_9 = arith.constant 0.000000e+00 : f32
      %12 = vector.broadcast %cst_9 : f32 to vector<16x128xf32>
      %c0_10 = arith.constant 0 : index
      %c0_11 = arith.constant 0 : index
      %13 = vector.load %arg8[%c0_10, %c0_11] : memref<16x128xf32, #tpu.memory_space<vmem>>, vector<16x128xf32>
      tpu.vector_store %arg8[%c0_10, %c0_11], %12 {strides = array<i32>} : memref<16x128xf32, #tpu.memory_space<vmem>>, vector<16x128xf32>,
    } else {
    }
    %c0 = arith.constant 0 : index
    %c0_1 = arith.constant 0 : index
    %3 = vector.load %arg8[%c0, %c0_1] : memref<16x128xf32, #tpu.memory_space<vmem>>, vector<16x128xf32>
    %c0_2 = arith.constant 0 : index
    %c0_3 = arith.constant 0 : index
    %4 = vector.load %arg3[%c0_2, %c0_3] : memref<16x512xbf16, #tpu.memory_space<vmem>>, vector<16x512xbf16>
    %c0_4 = arith.constant 0 : index
    %c0_5 = arith.constant 0 : index
    %5 = vector.load %arg4[%c0_4, %c0_5] : memref<512x128xbf16, #tpu.memory_space<vmem>>, vector<512x128xbf16>
    %cst = arith.constant dense<0.000000e+00> : vector<16x128xf32>
    %6 = tpu.matmul %4, %5, %cst {dimension_numbers = #tpu.dot_dimension_numbers<[1], [0], [0], [1], [0, 0, 1, 1], [], []>} : vector<16x512xbf16>, vector<512x128xbf16>, vector<16x128xf32> -> vector<16x128xf32>
    %7 = arith.addf %3, %6 : vector<16x128xf32>
    %c0_6 = arith.constant 0 : index
    %c0_7 = arith.constant 0 : index
    %8 = vector.load %arg8[%c0_6, %c0_7] : memref<16x128xf32, #tpu.memory_space<vmem>>, vector<16x128xf32>
    tpu.vector_store %arg8[%c0_6, %c0_7], %7 {strides = array<i32>} : memref<16x128xf32, #tpu.memory_space<vmem>>, vector<16x128xf32>,
    %c3_i32 = arith.constant 3 : i32
    %9 = arith.cmpi eq, %arg2, %c3_i32 : i32
    %10 = arith.extui %9 : i1 to i32
    %c0_i32_8 = arith.constant 0 : i32
    %11 = arith.cmpi ne, %10, %c0_i32_8 : i32
    scf.if %11 {
      %c0_9 = arith.constant 0 : index
      %c0_10 = arith.constant 0 : index
      %12 = vector.load %arg8[%c0_9, %c0_10] : memref<16x128xf32, #tpu.memory_space<vmem>>, vector<16x128xf32>
      %c0_11 = arith.constant 0 : index
      %c0_12 = arith.constant 0 : index
      %13 = vector.load %arg5[%c0_11, %c0_12] : memref<1x128xf32, #tpu.memory_space<vmem>>, vector<1x128xf32>
      %14 = vector.broadcast %13 : vector<1x128xf32> to vector<16x128xf32>
      %15 = arith.mulf %12, %14 : vector<16x128xf32>
      %c0_13 = arith.constant 0 : index
      %c0_14 = arith.constant 0 : index
      %16 = vector.load %arg6[%c0_13, %c0_14] : memref<1x128xf32, #tpu.memory_space<vmem>>, vector<1x128xf32>
      %17 = vector.broadcast %16 : vector<1x128xf32> to vector<16x128xf32>
      %18 = arith.addf %15, %17 : vector<16x128xf32>
      %cst_15 = arith.constant 0.000000e+00 : f32
      %19 = vector.broadcast %cst_15 : f32 to vector<16x128xf32>
      %20 = arith.cmpf ogt, %18, %19 : vector<16x128xf32>
      %cst_16 = arith.constant 2.000000e-01 : f32
      %21 = vector.broadcast %cst_16 : f32 to vector<16x128xf32>
      %22 = arith.mulf %21, %18 : vector<16x128xf32>
      %23 = arith.select %20, %18, %22 : vector<16x128xi1>, vector<16x128xf32>
      %24 = arith.truncf %23 : vector<16x128xf32> to vector<16x128xbf16>
      %c0_17 = arith.constant 0 : index
      %c0_18 = arith.constant 0 : index
      %25 = vector.load %arg7[%c0_17, %c0_18] : memref<16x128xbf16, #tpu.memory_space<vmem>>, vector<16x128xbf16>
      tpu.vector_store %arg7[%c0_17, %c0_18], %24 {strides = array<i32>} : memref<16x128xbf16, #tpu.memory_space<vmem>>, vector<16x128xbf16>,
    } else {
    }
    return
  }
  func.func @transform_0(%arg0: i32, %arg1: i32, %arg2: i32) -> (i32, i32) {
    %c0_i32 = arith.constant 0 : i32
    return %arg0, %arg2 : i32, i32
  }
  func.func @transform_1(%arg0: i32, %arg1: i32, %arg2: i32) -> (i32, i32) {
    %c0_i32 = arith.constant 0 : i32
    return %arg2, %arg1 : i32, i32
  }
  func.func @transform_2(%arg0: i32, %arg1: i32, %arg2: i32) -> (i32, i32) {
    %c0_i32 = arith.constant 0 : i32
    %c0_i32_0 = arith.constant 0 : i32
    return %c0_i32, %arg1 : i32, i32
  }
  func.func @transform_3(%arg0: i32, %arg1: i32, %arg2: i32) -> (i32, i32) {
    %c0_i32 = arith.constant 0 : i32
    %c0_i32_0 = arith.constant 0 : i32
    return %c0_i32, %arg1 : i32, i32
  }
  func.func @transform_4(%arg0: i32, %arg1: i32, %arg2: i32) -> (i32, i32) {
    %c0_i32 = arith.constant 0 : i32
    return %arg0, %arg1 : i32, i32
  }
}

module attributes {stable_mosaic.version = 11 : i64} {
  func.func @_matmul_fused_kernel(%arg0: i32, %arg1: i32, %arg2: i32, %arg3: memref<16x512xbf16, #tpu.memory_space<vmem>>, %arg4: memref<512x256xbf16, #tpu.memory_space<vmem>>, %arg5: memref<1x256xf32, #tpu.memory_space<vmem>>, %arg6: memref<1x256xf32, #tpu.memory_space<vmem>>, %arg7: memref<16x256xbf16, #tpu.memory_space<vmem>>, %arg8: memref<16x256xf32, #tpu.memory_space<vmem>>) attributes {dimension_semantics = [#tpu.dimension_semantics<parallel>, #tpu.dimension_semantics<parallel>, #tpu.dimension_semantics<arbitrary>], iteration_bounds = array<i64: 1, 2, 8>, scalar_prefetch = 0 : i64, scratch_operands = 1 : i64, tpu.core_type = #tpu.core_type<tc>, window_params = [{transform_indices = @transform_0, window_bounds = array<i64: 16, 512>}, {transform_indices = @transform_1, window_bounds = array<i64: 512, 256>}, {transform_indices = @transform_2, window_bounds = array<i64: 1, 256>}, {transform_indices = @transform_3, window_bounds = array<i64: 1, 256>}, {transform_indices = @transform_4, window_bounds = array<i64: 16, 256>}]} {
    %c0_i32 = arith.constant 0 : i32
    %0 = arith.cmpi eq, %arg2, %c0_i32 : i32
    %1 = arith.extui %0 : i1 to i32
    %c0_i32_0 = arith.constant 0 : i32
    %2 = arith.cmpi ne, %1, %c0_i32_0 : i32
    scf.if %2 {
      %cst_9 = arith.constant 0.000000e+00 : f32
      %12 = vector.broadcast %cst_9 : f32 to vector<16x256xf32>
      %c0_10 = arith.constant 0 : index
      %c0_11 = arith.constant 0 : index
      %13 = vector.load %arg8[%c0_10, %c0_11] : memref<16x256xf32, #tpu.memory_space<vmem>>, vector<16x256xf32>
      tpu.vector_store %arg8[%c0_10, %c0_11], %12 {strides = array<i32>} : memref<16x256xf32, #tpu.memory_space<vmem>>, vector<16x256xf32>,
    } else {
    }
    %c0 = arith.constant 0 : index
    %c0_1 = arith.constant 0 : index
    %3 = vector.load %arg8[%c0, %c0_1] : memref<16x256xf32, #tpu.memory_space<vmem>>, vector<16x256xf32>
    %c0_2 = arith.constant 0 : index
    %c0_3 = arith.constant 0 : index
    %4 = vector.load %arg3[%c0_2, %c0_3] : memref<16x512xbf16, #tpu.memory_space<vmem>>, vector<16x512xbf16>
    %c0_4 = arith.constant 0 : index
    %c0_5 = arith.constant 0 : index
    %5 = vector.load %arg4[%c0_4, %c0_5] : memref<512x256xbf16, #tpu.memory_space<vmem>>, vector<512x256xbf16>
    %cst = arith.constant dense<0.000000e+00> : vector<16x256xf32>
    %6 = tpu.matmul %4, %5, %cst {dimension_numbers = #tpu.dot_dimension_numbers<[1], [0], [0], [1], [0, 0, 1, 1], [], []>} : vector<16x512xbf16>, vector<512x256xbf16>, vector<16x256xf32> -> vector<16x256xf32>
    %7 = arith.addf %3, %6 : vector<16x256xf32>
    %c0_6 = arith.constant 0 : index
    %c0_7 = arith.constant 0 : index
    %8 = vector.load %arg8[%c0_6, %c0_7] : memref<16x256xf32, #tpu.memory_space<vmem>>, vector<16x256xf32>
    tpu.vector_store %arg8[%c0_6, %c0_7], %7 {strides = array<i32>} : memref<16x256xf32, #tpu.memory_space<vmem>>, vector<16x256xf32>,
    %c7_i32 = arith.constant 7 : i32
    %9 = arith.cmpi eq, %arg2, %c7_i32 : i32
    %10 = arith.extui %9 : i1 to i32
    %c0_i32_8 = arith.constant 0 : i32
    %11 = arith.cmpi ne, %10, %c0_i32_8 : i32
    scf.if %11 {
      %c0_9 = arith.constant 0 : index
      %c0_10 = arith.constant 0 : index
      %12 = vector.load %arg8[%c0_9, %c0_10] : memref<16x256xf32, #tpu.memory_space<vmem>>, vector<16x256xf32>
      %c0_11 = arith.constant 0 : index
      %c0_12 = arith.constant 0 : index
      %13 = vector.load %arg5[%c0_11, %c0_12] : memref<1x256xf32, #tpu.memory_space<vmem>>, vector<1x256xf32>
      %14 = vector.broadcast %13 : vector<1x256xf32> to vector<16x256xf32>
      %15 = arith.mulf %12, %14 : vector<16x256xf32>
      %c0_13 = arith.constant 0 : index
      %c0_14 = arith.constant 0 : index
      %16 = vector.load %arg6[%c0_13, %c0_14] : memref<1x256xf32, #tpu.memory_space<vmem>>, vector<1x256xf32>
      %17 = vector.broadcast %16 : vector<1x256xf32> to vector<16x256xf32>
      %18 = arith.addf %15, %17 : vector<16x256xf32>
      %cst_15 = arith.constant 0.000000e+00 : f32
      %19 = vector.broadcast %cst_15 : f32 to vector<16x256xf32>
      %20 = arith.cmpf ogt, %18, %19 : vector<16x256xf32>
      %cst_16 = arith.constant 2.000000e-01 : f32
      %21 = vector.broadcast %cst_16 : f32 to vector<16x256xf32>
      %22 = arith.mulf %21, %18 : vector<16x256xf32>
      %23 = arith.select %20, %18, %22 : vector<16x256xi1>, vector<16x256xf32>
      %24 = arith.truncf %23 : vector<16x256xf32> to vector<16x256xbf16>
      %c0_17 = arith.constant 0 : index
      %c0_18 = arith.constant 0 : index
      %25 = vector.load %arg7[%c0_17, %c0_18] : memref<16x256xbf16, #tpu.memory_space<vmem>>, vector<16x256xbf16>
      tpu.vector_store %arg7[%c0_17, %c0_18], %24 {strides = array<i32>} : memref<16x256xbf16, #tpu.memory_space<vmem>>, vector<16x256xbf16>,
    } else {
    }
    return
  }
  func.func @transform_0(%arg0: i32, %arg1: i32, %arg2: i32) -> (i32, i32) {
    %c0_i32 = arith.constant 0 : i32
    return %arg0, %arg2 : i32, i32
  }
  func.func @transform_1(%arg0: i32, %arg1: i32, %arg2: i32) -> (i32, i32) {
    %c0_i32 = arith.constant 0 : i32
    return %arg2, %arg1 : i32, i32
  }
  func.func @transform_2(%arg0: i32, %arg1: i32, %arg2: i32) -> (i32, i32) {
    %c0_i32 = arith.constant 0 : i32
    %c0_i32_0 = arith.constant 0 : i32
    return %c0_i32, %arg1 : i32, i32
  }
  func.func @transform_3(%arg0: i32, %arg1: i32, %arg2: i32) -> (i32, i32) {
    %c0_i32 = arith.constant 0 : i32
    %c0_i32_0 = arith.constant 0 : i32
    return %c0_i32, %arg1 : i32, i32
  }
  func.func @transform_4(%arg0: i32, %arg1: i32, %arg2: i32) -> (i32, i32) {
    %c0_i32 = arith.constant 0 : i32
    return %arg0, %arg1 : i32, i32
  }
}

</mosaic_0001>

<bundles_post_ra>
// kernel: discriminator_forward.4
= control target key start
LH: loop header
LB: loop body
LE: loop exit
PB: predicated region body
PF: predicated region fallthrough
CT: control target
= control target key end

     0   :  { %s1572_s15 = smov 0   ;;  %s1574_s16 = smov 0   ;;  %s1904_s0 = inlined_call_operand.vmem [shape: bf16[512,128], index: 0, kind: input, shape index: {}]   ;;  %s1905_s1 = inlined_call_operand.vmem [shape: bf16[128,64], index: 1, kind: input, shape index: {}]   ;;  %s1906_s2 = inlined_call_operand.vmem [shape: f32[1,64], index: 2, kind: input, shape index: {}]   ;;  %s1907_s3 = inlined_call_operand.vmem [shape: f32[1,64], index: 3, kind: input, shape index: {}]   ;;  %s1908_s4 = inlined_call_operand.vmem [shape: bf16[512,64], index: 4, kind: output, shape index: {}]  }
   0x1   :  { %s1576_s17 = smov 0  }
   0x2 LB: > { %s33_s18 = sadd.s32 1, %s1540_s16  ;;  %p1288_p0 = scmp.ge.s32.totalorder %s1544_s17, 1  ;;  %s1544_s17 = sphi %s1576_s17, %s14_s17   ;;  %s1540_s16 = sphi %s1574_s16, %s1910_s16   ;;  %s1536_s15 = sphi %s1572_s15, %s1909_s15  }
   0x3   : > { %p35_p1 = scmp.ge.s32.totalorder %s33_s18, 2  ;;  %p221_p2 = scmp.lt.s32.totalorder %s1544_s17, 3 }
   0x5   : > { %s1912_s18 = smov (%p35_p1, %s33_s18), 0  ;;  %p222_p3 = pnand %p1288_p0, %p221_p2 }
   0x6   : > { %s1289_s21 = sshll.u32 (!%p222_p3), %s1536_s15, 5 }
   0x7   : > { %225 = sbr.rel (%p222_p3) target bundleno = 311 (0x137), region = 36  ;;  %p268_p4 = scmp.lt.s32.totalorder (!%p222_p3), %s1289_s21, 63 }
   0xc   : > { %v1498_v0 = vld [vmem:[%s1905_s1 + $0x38] sm:$0xff]   ;;  %v1499_v1 = vld [vmem:[%s1905_s1 + $0x30] sm:$0xff]   ;;  %vm305_vm0 = vcmask 523264   ;;  %s1914_s21 = smov (!%p268_p4, %s1289_s21), 63  ;;  %v1500_v2 = vld [vmem:[%s1905_s1 + $0x28] sm:$0xff]   ;;  %v1546_v3 = vmov 0.0  }
   0xd   : > { %1409 = vmatprep.subr.bf16.mxu0 %v1498_v0  ;;  %1457 = vmatprep.subr.bf16.mxu1 %v1498_v0  ;;  %s1290_s26 = sshll.u32 %s1914_s21, 2  ;;  %308 = vst.msk [vmem:[#allocation2 + $0x10] sm:$0xff] %vm305_vm0, %v1546_v3  ;;  %306 = vst.msk [vmem:[#allocation2] sm:$0xff] %vm305_vm0, %v1546_v3  ;;  %v1501_v4 = vld [vmem:[%s1905_s1 + $0x20] sm:$0xff]   ;;  %v1502_v7 = vld [vmem:[%s1905_s1 + $0x18] sm:$0xff]   ;;  %vm1125_vm1 = vcmask 519168  }
   0xe   : > { %1410 = vmatpush3.bf16.msra.mxu0 %v1498_v0  ;;  %1465 = vmatpush3.bf16.msra.mxu1 %v1498_v0  ;;  %307 = vst.msk [vmem:[#allocation2 + $0x8] sm:$0xff] %vm305_vm0, %v1546_v3  ;;  %309 = vst.msk [vmem:[#allocation2 + $0x18] sm:$0xff] %vm305_vm0, %v1546_v3  ;;  %s1639_s29 = scalar_lea.vmem %s1904_s0, %s1290_s26  ;;  %v1503_v8 = vld [vmem:[%s1905_s1 + $0x10] sm:$0xff]   ;;  %v1504_v9 = vld [vmem:[%s1905_s1 + $0x8] sm:$0xff]   ;;  %s1719_s24 = scalar_lea.vmem %s1908_s4, %s1290_s26 }
   0xf   : > { %1411 = vmatprep.subr.bf16.mxu0 %v1499_v1  ;;  %1458 = vmatprep.subr.bf16.mxu1 %v1499_v1  ;;  %310 = vst.msk [vmem:[#allocation2 + $0x20] sm:$0xff] %vm305_vm0, %v1546_v3  ;;  %311 = vst.msk [vmem:[#allocation2 + $0x28] sm:$0xff] %vm305_vm0, %v1546_v3  ;;  %v1506_v5 = vld [vmem:[%s1639_s29] sm:$0xff]   ;;  %v1508_v11 = vld [vmem:[%s1639_s29 + $0x8] sm:$0xff]  }
  0x10   : > { %312 = vst.msk [vmem:[#allocation2 + $0x30] sm:$0xff] %vm305_vm0, %v1546_v3  ;;  %313 = vst.msk [vmem:[#allocation2 + $0x38] sm:$0xff] %vm305_vm0, %v1546_v3  ;;  %v1507_v6 = vld [vmem:[%s1639_s29 + $0x40] sm:$0xff]   ;;  %1425 = vmatprep.mubr.bf16.mxu0 %v1506_v5  ;;  %v1509_v12 = vld [vmem:[%s1639_s29 + $0x48] sm:$0xff]  }
  0x11   : > { %314 = vst.msk [vmem:[#allocation2 + $0x40] sm:$0xff] %vm305_vm0, %v1546_v3  ;;  %315 = vst.msk [vmem:[#allocation2 + $0x48] sm:$0xff] %vm305_vm0, %v1546_v3  ;;  %1441 = vmatprep.mubr.bf16.mxu1 %v1507_v6  ;;  %v1505_v10 = vld [vmem:[%s1905_s1] sm:$0xff]   ;;  %v1510_v13 = vld [vmem:[%s1639_s29 + $0x10] sm:$0xff]  }
  0x12   : > { %316 = vst.msk [vmem:[#allocation2 + $0x50] sm:$0xff] %vm305_vm0, %v1546_v3  ;;  %317 = vst.msk [vmem:[#allocation2 + $0x58] sm:$0xff] %vm305_vm0, %v1546_v3  ;;  %1412 = vmatpush3.bf16.msra.mxu0 %v1499_v1  ;;  %1466 = vmatpush3.bf16.msra.mxu1 %v1499_v1  ;;  %v1511_v14 = vld [vmem:[%s1639_s29 + $0x50] sm:$0xff]   ;;  %v1512_v15 = vld [vmem:[%s1639_s29 + $0x18] sm:$0xff]  }
  0x13   : > { %318 = vst.msk [vmem:[#allocation2 + $0x60] sm:$0xff] %vm305_vm0, %v1546_v3  ;;  %319 = vst.msk [vmem:[#allocation2 + $0x68] sm:$0xff] %vm305_vm0, %v1546_v3  ;;  %1413 = vmatprep.subr.bf16.mxu0 %v1500_v2  ;;  %1459 = vmatprep.subr.bf16.mxu1 %v1500_v2  ;;  %v1513_v16 = vld [vmem:[%s1639_s29 + $0x58] sm:$0xff]   ;;  %v1514_v17 = vld [vmem:[%s1639_s29 + $0x20] sm:$0xff]  }
  0x14   : > { %320 = vst.msk [vmem:[#allocation2 + $0x70] sm:$0xff] %vm305_vm0, %v1546_v3  ;;  %321 = vst.msk [vmem:[#allocation2 + $0x78] sm:$0xff] %vm305_vm0, %v1546_v3  ;;  %v1515_v18 = vld [vmem:[%s1639_s29 + $0x60] sm:$0xff]   ;;  %v1516_v19 = vld [vmem:[%s1639_s29 + $0x28] sm:$0xff]  }
  0x15   : > { %322 = vst.msk [vmem:[#allocation2 + $0x80] sm:$0xff] %vm305_vm0, %v1546_v3  ;;  %323 = vst.msk [vmem:[#allocation2 + $0x88] sm:$0xff] %vm305_vm0, %v1546_v3  ;;  %v1517_v20 = vld [vmem:[%s1639_s29 + $0x68] sm:$0xff]   ;;  %v1518_v21 = vld [vmem:[%s1639_s29 + $0x30] sm:$0xff]  }
  0x16   : > { %324 = vst.msk [vmem:[#allocation2 + $0x90] sm:$0xff] %vm305_vm0, %v1546_v3  ;;  %325 = vst.msk [vmem:[#allocation2 + $0x98] sm:$0xff] %vm305_vm0, %v1546_v3  ;;  %1414 = vmatpush3.bf16.msra.mxu0 %v1500_v2  ;;  %1467 = vmatpush3.bf16.msra.mxu1 %v1500_v2  ;;  %v1519_v22 = vld [vmem:[%s1639_s29 + $0x70] sm:$0xff]   ;;  %v1520_v23 = vld [vmem:[%s1639_s29 + $0x38] sm:$0xff]  }
  0x17   : > { %326 = vst.msk [vmem:[#allocation2 + $0xa0] sm:$0xff] %vm305_vm0, %v1546_v3  ;;  %327 = vst.msk [vmem:[#allocation2 + $0xa8] sm:$0xff] %vm305_vm0, %v1546_v3  ;;  %1415 = vmatprep.subr.bf16.mxu0 %v1501_v4  ;;  %1460 = vmatprep.subr.bf16.mxu1 %v1501_v4  ;;  %v1521_v24 = vld [vmem:[%s1639_s29 + $0x78] sm:$0xff]   ;;  %v340_v25 = vld [vmem:[#allocation2 + $0x10] sm:$0xff] }
  0x18   : > { %328 = vst.msk [vmem:[#allocation2 + $0xb0] sm:$0xff] %vm305_vm0, %v1546_v3  ;;  %329 = vst.msk [vmem:[#allocation2 + $0xb8] sm:$0xff] %vm305_vm0, %v1546_v3  ;;  %v338_v29 = vld [vmem:[#allocation2] sm:$0xff]  ;;  %v341_v35 = vld [vmem:[#allocation2 + $0x18] sm:$0xff] }
  0x19   : > { %330 = vst.msk [vmem:[#allocation2 + $0xc0] sm:$0xff] %vm305_vm0, %v1546_v3  ;;  %331 = vst.msk [vmem:[#allocation2 + $0xc8] sm:$0xff] %vm305_vm0, %v1546_v3  ;;  %v339_v41 = vld [vmem:[#allocation2 + $0x8] sm:$0xff]  ;;  %v344_v47 = vld [vmem:[#allocation2 + $0x30] sm:$0xff] }
  0x1a   : > { %332 = vst.msk [vmem:[#allocation2 + $0xd0] sm:$0xff] %vm305_vm0, %v1546_v3  ;;  %333 = vst.msk [vmem:[#allocation2 + $0xd8] sm:$0xff] %vm305_vm0, %v1546_v3  ;;  %1416 = vmatpush3.bf16.msra.mxu0 %v1501_v4  ;;  %1468 = vmatpush3.bf16.msra.mxu1 %v1501_v4  ;;  %v1681_v51 = vld [vmem:[%s1906_s2] ss:$0 sm:$0xff] }
  0x1b   : > { %334 = vst.msk [vmem:[#allocation2 + $0xe0] sm:$0xff] %vm305_vm0, %v1546_v3  ;;  %335 = vst.msk [vmem:[#allocation2 + $0xe8] sm:$0xff] %vm305_vm0, %v1546_v3  ;;  %1417 = vmatprep.subr.bf16.mxu0 %v1502_v7  ;;  %1461 = vmatprep.subr.bf16.mxu1 %v1502_v7  ;;  %v342_v54 = vld [vmem:[#allocation2 + $0x20] sm:$0xff] }
  0x1c   : > { %336 = vst.msk [vmem:[#allocation2 + $0xf0] sm:$0xff] %vm305_vm0, %v1546_v3  ;;  %337 = vst.msk [vmem:[#allocation2 + $0xf8] sm:$0xff] %vm305_vm0, %v1546_v3  ;;  %v354_v30 = vld [vmem:[#allocation2 + $0x80] sm:$0xff]  ;;  %v355_v42 = vld [vmem:[#allocation2 + $0x88] sm:$0xff] }
  0x1d   : > { %v356_v26 = vld [vmem:[#allocation2 + $0x90] sm:$0xff]  ;;  %v357_v36 = vld [vmem:[#allocation2 + $0x98] sm:$0xff]  ;;  %v1688_v59 = vld [vmem:[%s1907_s3] ss:$0 sm:$0xff] }
  0x1e   : > { %1418 = vmatpush3.bf16.msra.mxu0 %v1502_v7  ;;  %1469 = vmatpush3.bf16.msra.mxu1 %v1502_v7  ;;  %v358_v55 = vld [vmem:[#allocation2 + $0xa0] sm:$0xff]  ;;  %v345_v3 = vld [vmem:[#allocation2 + $0x38] sm:$0xff] }
  0x1f   : > { %1419 = vmatprep.subr.bf16.mxu0 %v1503_v8  ;;  %1462 = vmatprep.subr.bf16.mxu1 %v1503_v8  ;;  %v360_v48 = vld [vmem:[#allocation2 + $0xb0] sm:$0xff]  ;;  %v361_v4 = vld [vmem:[#allocation2 + $0xb8] sm:$0xff] }
  0x22   : > { %1420 = vmatpush3.bf16.msra.mxu0 %v1503_v8  ;;  %1470 = vmatpush3.bf16.msra.mxu1 %v1503_v8 }
  0x23   : > { %1421 = vmatprep.subr.bf16.mxu0 %v1504_v9  ;;  %1463 = vmatprep.subr.bf16.mxu1 %v1504_v9 }
  0x26   : > { %1422 = vmatpush3.bf16.msra.mxu0 %v1504_v9  ;;  %1471 = vmatpush3.bf16.msra.mxu1 %v1504_v9 }
  0x27   : > { %1423 = vmatprep.subr.bf16.mxu0 %v1505_v10  ;;  %1464 = vmatprep.subr.bf16.mxu1 %v1505_v10 }
  0x2a   : > { %1424 = vmatpush3.bf16.msra.mxu0 %v1505_v10  ;;  %1472 = vmatpush3.bf16.msra.mxu1 %v1505_v10 }
  0x2d   : > { %1426 = vmatmul.mubr.bf16.vlgmr.msra.gmra.mxu0 %v1508_v11  ;;  %1442 = vmatmul.mubr.bf16.vlgmr.msra.gmra.mxu1 %v1509_v12 }
  0x2e   : > { %1429 = vmatprep.mubr.bf16.mxu0 %v1510_v13  ;;  %1445 = vmatprep.mubr.bf16.mxu1 %v1511_v14 }
  0x35   : > { %1430 = vmatmul.mubr.bf16.gmra.mxu0 %v1512_v15  ;;  %1446 = vmatmul.mubr.bf16.gmra.mxu1 %v1513_v16 }
  0x36   : > { %1433 = vmatprep.mubr.bf16.mxu0 %v1514_v17  ;;  %1449 = vmatprep.mubr.bf16.mxu1 %v1515_v18 }
  0x3d   : > { %1434 = vmatmul.mubr.bf16.gmra.mxu0 %v1516_v19  ;;  %1450 = vmatmul.mubr.bf16.gmra.mxu1 %v1517_v20 }
  0x3e   : > { %1437 = vmatprep.mubr.bf16.mxu0 %v1518_v21  ;;  %1453 = vmatprep.mubr.bf16.mxu1 %v1519_v22 }
  0x45   : > { %1438 = vmatmul.mubr.bf16.gmra.mxu0 %v1520_v23  ;;  %1454 = vmatmul.mubr.bf16.gmra.mxu1 %v1521_v24 }
  0xed   : > { %v1427_v27 = vpop.f32.mrf.mxu0  ;;  %v1443_v28 = vpop.f32.mrf.mxu1 }
  0xee   : > { %v725_v31 = vadd.f32 %v1427_v27, %v340_v25  ;;  %v741_v32 = vadd.f32 %v1443_v28, %v356_v26 }
  0xef   : > { %v596_v33 = vpop.f32.mrf.mxu0  ;;  %v660_v34 = vpop.f32.mrf.mxu1 }
  0xf0   : > { %758 = vst.msk [vmem:[#allocation2 + $0x10] sm:$0xff] %vm305_vm0, %v725_v31  ;;  %774 = vst.msk [vmem:[#allocation2 + $0x90] sm:$0xff] %vm305_vm0, %v741_v32  ;;  %v723_v37 = vadd.f32 %v596_v33, %v338_v29  ;;  %v739_v38 = vadd.f32 %v660_v34, %v354_v30 }
  0xf1   : > { %v1428_v39 = vpop.f32.mrf.mxu0  ;;  %v1444_v40 = vpop.f32.mrf.mxu1 }
  0xf2   : > { %756 = vst.msk [vmem:[#allocation2] sm:$0xff] %vm305_vm0, %v723_v37  ;;  %772 = vst.msk [vmem:[#allocation2 + $0x80] sm:$0xff] %vm305_vm0, %v739_v38  ;;  %v726_v43 = vadd.f32 %v1428_v39, %v341_v35  ;;  %v742_v44 = vadd.f32 %v1444_v40, %v357_v36 }
  0xf3   : > { %v599_v45 = vpop.f32.mrf.mxu0  ;;  %v663_v46 = vpop.f32.mrf.mxu1 }
  0xf4   : > { %759 = vst.msk [vmem:[#allocation2 + $0x18] sm:$0xff] %vm305_vm0, %v726_v43  ;;  %775 = vst.msk [vmem:[#allocation2 + $0x98] sm:$0xff] %vm305_vm0, %v742_v44  ;;  %v724_v49 = vadd.f32 %v599_v45, %v339_v41  ;;  %v740_v50 = vadd.f32 %v663_v46, %v355_v42 }
  0xf5   : > { %v1431_v52 = vpop.f32.mrf.mxu0  ;;  %v1447_v53 = vpop.f32.mrf.mxu1 }
  0xf6   : > { %757 = vst.msk [vmem:[#allocation2 + $0x8] sm:$0xff] %vm305_vm0, %v724_v49  ;;  %773 = vst.msk [vmem:[#allocation2 + $0x88] sm:$0xff] %vm305_vm0, %v740_v50  ;;  %v729_v56 = vadd.f32 %v1431_v52, %v344_v47  ;;  %v745_v57 = vadd.f32 %v1447_v53, %v360_v48 }
  0xf7   : > { %v793_v58 = vld [vmem:[#allocation2 + $0x10] sm:$0xff]  ;;  %v612_v61 = vpop.f32.mrf.mxu0  ;;  %v676_v62 = vpop.f32.mrf.mxu1 }
  0xf8   : > { %v809_v60 = vld [vmem:[#allocation2 + $0x90] sm:$0xff]  ;;  %v832_v63 = vmul.f32 %v1681_v51, %v793_v58  ;;  %762 = vst.msk [vmem:[#allocation2 + $0x30] sm:$0xff] %vm305_vm0, %v729_v56  ;;  %778 = vst.msk [vmem:[#allocation2 + $0xb0] sm:$0xff] %vm305_vm0, %v745_v57  ;;  %v727_v1 = vadd.f32 %v612_v61, %v342_v54  ;;  %v743_v2 = vadd.f32 %v676_v62, %v358_v55 }
  0xf9   : > { %v848_v0 = vmul.f32 %v1681_v51, %v809_v60  ;;  %v791_v5 = vld [vmem:[#allocation2] sm:$0xff]  ;;  %v1432_v7 = vpop.f32.mrf.mxu0  ;;  %v1448_v8 = vpop.f32.mrf.mxu1 }
  0xfa   : > { %v807_v6 = vld [vmem:[#allocation2 + $0x80] sm:$0xff]  ;;  %v871_v9 = vadd.f32 %v1688_v59, %v832_v63  ;;  %v830_v11 = vmul.f32 %v1681_v51, %v791_v5  ;;  %760 = vst.msk [vmem:[#allocation2 + $0x20] sm:$0xff] %vm305_vm0, %v727_v1  ;;  %776 = vst.msk [vmem:[#allocation2 + $0xa0] sm:$0xff] %vm305_vm0, %v743_v2  ;;  %v730_v15 = vadd.f32 %v1432_v7, %v345_v3 }
  0xfb   : > { %v887_v10 = vadd.f32 %v1688_v59, %v848_v0  ;;  %v846_v12 = vmul.f32 %v1681_v51, %v807_v6  ;;  %v794_v13 = vld [vmem:[#allocation2 + $0x18] sm:$0xff]  ;;  %v746_v16 = vadd.f32 %v1448_v8, %v361_v4  ;;  %v1700_v17 = vpop.f32.mrf.mxu0  ;;  %v1702_v18 = vpop.f32.mrf.mxu1 }
  0xfc   : > { %v810_v14 = vld [vmem:[#allocation2 + $0x98] sm:$0xff]  ;;  %vm903_vm2 = vcmp.gt.f32.partialorder %v871_v9, 0.0  ;;  %v935_v19 = vmul.f32 0.2, %v871_v9  ;;  %v869_v21 = vadd.f32 %v1688_v59, %v830_v11  ;;  %v833_v23 = vmul.f32 %v1681_v51, %v794_v13  ;;  %763 = vst.msk [vmem:[#allocation2 + $0x38] sm:$0xff] %vm305_vm0, %v730_v15  ;;  %v343_v11 = vld [vmem:[#allocation2 + $0x28] sm:$0xff] }
  0xfd   : > { %vm919_vm3 = vcmp.gt.f32.partialorder %v887_v10, 0.0  ;;  %v951_v20 = vmul.f32 0.2, %v887_v10  ;;  %v885_v22 = vadd.f32 %v1688_v59, %v846_v12  ;;  %v849_v24 = vmul.f32 %v1681_v51, %v810_v14  ;;  %v792_v25 = vld [vmem:[#allocation2 + $0x8] sm:$0xff]  ;;  %779 = vst.msk [vmem:[#allocation2 + $0xb8] sm:$0xff] %vm305_vm0, %v746_v16  ;;  %v1710_v27 = vpop.f32.mrf.mxu0  ;;  %v1712_v28 = vpop.f32.mrf.mxu1 }
  0xfe   : > { %v808_v26 = vld [vmem:[#allocation2 + $0x88] sm:$0xff]  ;;  %v967_v29 = vsel %vm903_vm2, %v871_v9, %v935_v19  ;;  %v831_v31 = vmul.f32 %v1681_v51, %v792_v25  ;;  %vm901_vm4 = vcmp.gt.f32.partialorder %v869_v21, 0.0  ;;  %v933_v35 = vmul.f32 0.2, %v869_v21 }
  0xff   : > { %v983_v30 = vsel %vm919_vm3, %v887_v10, %v951_v20  ;;  %v847_v32 = vmul.f32 %v1681_v51, %v808_v26  ;;  %v1355_v33 = vpack.c.bf16 %v967_v29, %v967_v29  ;;  %v797_v36 = vld [vmem:[#allocation2 + $0x30] sm:$0xff]  ;;  %v1723_v37 = vpop.f32.mrf.mxu0  ;;  %v1725_v38 = vpop.f32.mrf.mxu1  ;;  %vm917_vm5 = vcmp.gt.f32.partialorder %v885_v22, 0.0  ;;  %v359_v12 = vld [vmem:[#allocation2 + $0xa8] sm:$0xff] }
 0x100   : > { %v1371_v34 = vpack.c.bf16 %v983_v30, %v983_v30  ;;  %v949_v39 = vmul.f32 0.2, %v885_v22  ;;  %v872_v40 = vadd.f32 %v1688_v59, %v833_v23  ;;  %v888_v41 = vadd.f32 %v1688_v59, %v849_v24  ;;  %v813_v52 = vld [vmem:[#allocation2 + $0xb0] sm:$0xff]  ;;  %v346_v30 = vld [vmem:[#allocation2 + $0x40] sm:$0xff] }
 0x101   : > { %1128 = vst.msk [vmem:[%s1719_s24 + $0x8] sm:$0xf] %vm1125_vm1, %v1355_v33  ;;  %v965_v42 = vsel %vm901_vm4, %v869_v21, %v933_v35  ;;  %v870_v43 = vadd.f32 %v1688_v59, %v831_v31  ;;  %v886_v44 = vadd.f32 %v1688_v59, %v847_v32  ;;  %v836_v45 = vmul.f32 %v1681_v51, %v797_v36  ;;  %v1736_v46 = vpop.f32.mrf.mxu0  ;;  %v1738_v47 = vpop.f32.mrf.mxu1  ;;  %v795_v55 = vld [vmem:[#allocation2 + $0x20] sm:$0xff]  ;;  %v348_v26 = vld [vmem:[#allocation2 + $0x50] sm:$0xff] }
 0x102   : > { %1144 = vst.msk [vmem:[%s1719_s24 + $0x48] sm:$0xf] %vm1125_vm1, %v1371_v34  ;;  %v1353_v48 = vpack.c.bf16 %v965_v42, %v965_v42  ;;  %v981_v49 = vsel %vm917_vm5, %v885_v22, %v949_v39  ;;  %vm904_vm6 = vcmp.gt.f32.partialorder %v872_v40, 0.0  ;;  %v936_v50 = vmul.f32 0.2, %v872_v40  ;;  %v811_v2 = vld [vmem:[#allocation2 + $0xa0] sm:$0xff] }
 0x103   : > { %v1369_v53 = vpack.c.bf16 %v981_v49, %v981_v49  ;;  %vm920_vm7 = vcmp.gt.f32.partialorder %v888_v41, 0.0  ;;  %v952_v54 = vmul.f32 0.2, %v888_v41  ;;  %vm902_vm8 = vcmp.gt.f32.partialorder %v870_v43, 0.0  ;;  %v1740_v56 = vpop.f32.mrf.mxu0  ;;  %v1742_v57 = vpop.f32.mrf.mxu1  ;;  %v798_v3 = vld [vmem:[#allocation2 + $0x38] sm:$0xff]  ;;  %v364_v29 = vld [vmem:[#allocation2 + $0xd0] sm:$0xff] }
 0x104   : > { %1126 = vst.msk [vmem:[%s1719_s24] sm:$0xf] %vm1125_vm1, %v1353_v48  ;;  %v968_v58 = vsel %vm904_vm6, %v872_v40, %v936_v50  ;;  %v934_v60 = vmul.f32 0.2, %v870_v43  ;;  %vm918_vm9 = vcmp.gt.f32.partialorder %v886_v44, 0.0  ;;  %v875_v0 = vadd.f32 %v1688_v59, %v836_v45  ;;  %v814_v10 = vld [vmem:[#allocation2 + $0xb8] sm:$0xff] }
 0x105   : > { %v950_v61 = vmul.f32 0.2, %v886_v44  ;;  %1142 = vst.msk [vmem:[%s1719_s24 + $0x40] sm:$0xf] %vm1125_vm1, %v1369_v53  ;;  %v1356_v62 = vpack.c.bf16 %v968_v58, %v968_v58  ;;  %v984_v63 = vsel %vm920_vm7, %v888_v41, %v952_v54  ;;  %v852_v1 = vmul.f32 %v1681_v51, %v813_v52  ;;  %v1750_v4 = vpop.f32.mrf.mxu0  ;;  %v1752_v5 = vpop.f32.mrf.mxu1  ;;  %v365_v50 = vld [vmem:[#allocation2 + $0xd8] sm:$0xff]  ;;  %v347_v52 = vld [vmem:[#allocation2 + $0x48] sm:$0xff] }
 0x106   : > { %v1372_v6 = vpack.c.bf16 %v984_v63, %v984_v63  ;;  %v966_v7 = vsel %vm902_vm8, %v870_v43, %v934_v60  ;;  %v834_v9 = vmul.f32 %v1681_v51, %v795_v55  ;;  %vm907_vm10 = vcmp.gt.f32.partialorder %v875_v0, 0.0  ;;  %v362_v43 = vld [vmem:[#allocation2 + $0xc0] sm:$0xff]  ;;  %v368_v63 = vld [vmem:[#allocation2 + $0xf0] sm:$0xff] }
 0x107   : > { %v982_v8 = vsel %vm918_vm9, %v886_v44, %v950_v61  ;;  %1129 = vst.msk [vmem:[%s1719_s24 + $0xc] sm:$0xf] %vm1125_vm1, %v1356_v62  ;;  %v1354_v13 = vpack.c.bf16 %v966_v7, %v966_v7  ;;  %v939_v15 = vmul.f32 0.2, %v875_v0  ;;  %v891_v16 = vadd.f32 %v1688_v59, %v852_v1  ;;  %v1771_v31 = vpop.f32.mrf.mxu0  ;;  %v1773_v32 = vpop.f32.mrf.mxu1  ;;  %v349_v44 = vld [vmem:[#allocation2 + $0x58] sm:$0xff]  ;;  %v366_v1 = vld [vmem:[#allocation2 + $0xe0] sm:$0xff] }
 0x108   : > { %v1370_v14 = vpack.c.bf16 %v982_v8, %v982_v8  ;;  %1145 = vst.msk [vmem:[%s1719_s24 + $0x4c] sm:$0xf] %vm1125_vm1, %v1372_v6  ;;  %v873_v19 = vadd.f32 %v1688_v59, %v834_v9  ;;  %v850_v20 = vmul.f32 %v1681_v51, %v811_v2  ;;  %v837_v21 = vmul.f32 %v1681_v51, %v798_v3  ;;  %v353_v8 = vld [vmem:[#allocation2 + $0x78] sm:$0xff] }
 0x109   : > { %1127 = vst.msk [vmem:[%s1719_s24 + $0x4] sm:$0xf] %vm1125_vm1, %v1354_v13  ;;  %v971_v22 = vsel %vm907_vm10, %v875_v0, %v939_v15  ;;  %v853_v23 = vmul.f32 %v1681_v51, %v814_v10  ;;  %v728_v24 = vadd.f32 %v1700_v17, %v343_v11  ;;  %v744_v25 = vadd.f32 %v1702_v18, %v359_v12  ;;  %v1440_v53 = vpop.f32.mrf.mxu0  ;;  %v1456_v54 = vpop.f32.mrf.mxu1  ;;  %v350_v0 = vld [vmem:[#allocation2 + $0x60] sm:$0xff]  ;;  %v369_v9 = vld [vmem:[#allocation2 + $0xf8] sm:$0xff]  ;;  %v351_v12 = vld [vmem:[#allocation2 + $0x68] sm:$0xff] }
 0x10a   : > { %1143 = vst.msk [vmem:[%s1719_s24 + $0x44] sm:$0xf] %vm1125_vm1, %v1370_v14  ;;  %v1359_v33 = vpack.c.bf16 %v971_v22, %v971_v22  ;;  %vm923_vm11 = vcmp.gt.f32.partialorder %v891_v16, 0.0  ;;  %v955_v34 = vmul.f32 0.2, %v891_v16  ;;  %vm905_vm12 = vcmp.gt.f32.partialorder %v873_v19, 0.0 }
 0x10b   : > { %v937_v35 = vmul.f32 0.2, %v873_v19  ;;  %v889_v36 = vadd.f32 %v1688_v59, %v850_v20  ;;  %v876_v39 = vadd.f32 %v1688_v59, %v837_v21  ;;  %v892_v17 = vadd.f32 %v1688_v59, %v853_v23  ;;  %761 = vst.msk [vmem:[#allocation2 + $0x28] sm:$0xff] %vm305_vm0, %v728_v24  ;;  %777 = vst.msk [vmem:[#allocation2 + $0xa8] sm:$0xff] %vm305_vm0, %v744_v25  ;;  %v647_v13 = vpop.f32.mrf.mxu0  ;;  %v367_v14 = vld [vmem:[#allocation2 + $0xe8] sm:$0xff] }
 0x10c   : > { %1132 = vst.msk [vmem:[%s1719_s24 + $0x18] sm:$0xf] %vm1125_vm1, %v1359_v33  ;;  %v987_v18 = vsel %vm923_vm11, %v891_v16, %v955_v34  ;;  %v733_v40 = vadd.f32 %v1710_v27, %v348_v26  ;;  %v749_v41 = vadd.f32 %v1712_v28, %v364_v29  ;;  %v731_v42 = vadd.f32 %v1723_v37, %v346_v30  ;;  %v363_v27 = vld [vmem:[#allocation2 + $0xc8] sm:$0xff]  ;;  %v352_v28 = vld [vmem:[#allocation2 + $0x70] sm:$0xff] }
 0x10d   : > { %v1375_v45 = vpack.c.bf16 %v987_v18, %v987_v18  ;;  %v969_v48 = vsel %vm905_vm12, %v873_v19, %v937_v35  ;;  %vm921_vm13 = vcmp.gt.f32.partialorder %v889_v36, 0.0  ;;  %v953_v49 = vmul.f32 0.2, %v889_v36 }
 0x10e   : > { %v1357_v55 = vpack.c.bf16 %v969_v48, %v969_v48  ;;  %vm908_vm14 = vcmp.gt.f32.partialorder %v876_v39, 0.0  ;;  %v940_v58 = vmul.f32 0.2, %v876_v39  ;;  %vm924_vm15 = vcmp.gt.f32.partialorder %v892_v17, 0.0  ;;  %766 = vst.msk [vmem:[#allocation2 + $0x50] sm:$0xff] %vm305_vm0, %v733_v40  ;;  %782 = vst.msk [vmem:[#allocation2 + $0xd0] sm:$0xff] %vm305_vm0, %v749_v41 }
 0x10f   : > { %764 = vst.msk [vmem:[#allocation2 + $0x40] sm:$0xff] %vm305_vm0, %v731_v42  ;;  %v985_v37 = vsel %vm921_vm13, %v889_v36, %v953_v49  ;;  %v956_v60 = vmul.f32 0.2, %v892_v17  ;;  %v747_v61 = vadd.f32 %v1725_v38, %v362_v43  ;;  %v734_v62 = vadd.f32 %v1736_v46, %v349_v44 }
 0x110   : > { %1148 = vst.msk [vmem:[%s1719_s24 + $0x58] sm:$0xf] %vm1125_vm1, %v1375_v45  ;;  %1130 = vst.msk [vmem:[%s1719_s24 + $0x10] sm:$0xf] %vm1125_vm1, %v1357_v55  ;;  %v1373_v2 = vpack.c.bf16 %v985_v37, %v985_v37  ;;  %v972_v3 = vsel %vm908_vm14, %v876_v39, %v940_v58  ;;  %v750_v6 = vadd.f32 %v1738_v47, %v365_v50  ;;  %v711_v47 = vpop.f32.mrf.mxu1 }
 0x111   : > { %v732_v7 = vadd.f32 %v1740_v56, %v347_v52  ;;  %v1360_v10 = vpack.c.bf16 %v972_v3, %v972_v3  ;;  %v988_v38 = vsel %vm924_vm15, %v892_v17, %v956_v60  ;;  %780 = vst.msk [vmem:[#allocation2 + $0xc0] sm:$0xff] %vm305_vm0, %v747_v61  ;;  %767 = vst.msk [vmem:[#allocation2 + $0x58] sm:$0xff] %vm305_vm0, %v734_v62 }
 0x112   : > { %v748_v46 = vadd.f32 %v1742_v57, %v363_v27  ;;  %v737_v11 = vadd.f32 %v1750_v4, %v352_v28  ;;  %1146 = vst.msk [vmem:[%s1719_s24 + $0x50] sm:$0xf] %vm1125_vm1, %v1373_v2  ;;  %v1376_v56 = vpack.c.bf16 %v988_v38, %v988_v38  ;;  %v796_v15 = vld [vmem:[#allocation2 + $0x28] sm:$0xff]  ;;  %v753_v19 = vadd.f32 %v1752_v5, %v368_v63 }
 0x113   : > { %v812_v16 = vld [vmem:[#allocation2 + $0xa8] sm:$0xff]  ;;  %783 = vst.msk [vmem:[#allocation2 + $0xd8] sm:$0xff] %vm305_vm0, %v750_v6  ;;  %765 = vst.msk [vmem:[#allocation2 + $0x48] sm:$0xff] %vm305_vm0, %v732_v7  ;;  %v735_v57 = vadd.f32 %v1771_v31, %v350_v0  ;;  %v751_v4 = vadd.f32 %v1773_v32, %v366_v1  ;;  %v835_v20 = vmul.f32 %v1681_v51, %v796_v15 }
 0x114   : > { %1133 = vst.msk [vmem:[%s1719_s24 + $0x1c] sm:$0xf] %vm1125_vm1, %v1360_v10  ;;  %v851_v21 = vmul.f32 %v1681_v51, %v812_v16  ;;  %v738_v22 = vadd.f32 %v1440_v53, %v353_v8  ;;  %v754_v23 = vadd.f32 %v1456_v54, %v369_v9  ;;  %1149 = vst.msk [vmem:[%s1719_s24 + $0x5c] sm:$0xf] %vm1125_vm1, %v1376_v56 }
 0x115   : > { %781 = vst.msk [vmem:[#allocation2 + $0xc8] sm:$0xff] %vm305_vm0, %v748_v46  ;;  %770 = vst.msk [vmem:[#allocation2 + $0x70] sm:$0xff] %vm305_vm0, %v737_v11  ;;  %v736_v5 = vadd.f32 %v647_v13, %v351_v12  ;;  %v752_v24 = vadd.f32 %v711_v47, %v367_v14  ;;  %v874_v25 = vadd.f32 %v1688_v59, %v835_v20  ;;  %v801_v29 = vld [vmem:[#allocation2 + $0x50] sm:$0xff] }
 0x116   : > { %786 = vst.msk [vmem:[#allocation2 + $0xf0] sm:$0xff] %vm305_vm0, %v753_v19  ;;  %768 = vst.msk [vmem:[#allocation2 + $0x60] sm:$0xff] %vm305_vm0, %v735_v57  ;;  %v890_v26 = vadd.f32 %v1688_v59, %v851_v21  ;;  %v817_v30 = vld [vmem:[#allocation2 + $0xd0] sm:$0xff]  ;;  %v799_v31 = vld [vmem:[#allocation2 + $0x40] sm:$0xff]  ;;  %v840_v32 = vmul.f32 %v1681_v51, %v801_v29 }
 0x117   : > { %784 = vst.msk [vmem:[#allocation2 + $0xe0] sm:$0xff] %vm305_vm0, %v751_v4  ;;  %771 = vst.msk [vmem:[#allocation2 + $0x78] sm:$0xff] %vm305_vm0, %v738_v22  ;;  %v856_v33 = vmul.f32 %v1681_v51, %v817_v30  ;;  %v838_v34 = vmul.f32 %v1681_v51, %v799_v31  ;;  %vm906_vm2 = vcmp.gt.f32.partialorder %v874_v25, 0.0  ;;  %v938_v35 = vmul.f32 0.2, %v874_v25 }
 0x118   : > { %787 = vst.msk [vmem:[#allocation2 + $0xf8] sm:$0xff] %vm305_vm0, %v754_v23  ;;  %769 = vst.msk [vmem:[#allocation2 + $0x68] sm:$0xff] %vm305_vm0, %v736_v5  ;;  %vm922_vm3 = vcmp.gt.f32.partialorder %v890_v26, 0.0  ;;  %v954_v36 = vmul.f32 0.2, %v890_v26  ;;  %v879_v39 = vadd.f32 %v1688_v59, %v840_v32  ;;  %v815_v40 = vld [vmem:[#allocation2 + $0xc0] sm:$0xff] }
 0x119   : > { %785 = vst.msk [vmem:[#allocation2 + $0xe8] sm:$0xff] %vm305_vm0, %v752_v24  ;;  %v895_v17 = vadd.f32 %v1688_v59, %v856_v33  ;;  %v877_v18 = vadd.f32 %v1688_v59, %v838_v34  ;;  %v802_v41 = vld [vmem:[#allocation2 + $0x58] sm:$0xff]  ;;  %v970_v42 = vsel %vm906_vm2, %v874_v25, %v938_v35  ;;  %v854_v44 = vmul.f32 %v1681_v51, %v815_v40 }
 0x11a   : > { %v986_v43 = vsel %vm922_vm3, %v890_v26, %v954_v36  ;;  %v841_v45 = vmul.f32 %v1681_v51, %v802_v41  ;;  %v818_v48 = vld [vmem:[#allocation2 + $0xd8] sm:$0xff]  ;;  %v1358_v49 = vpack.c.bf16 %v970_v42, %v970_v42  ;;  %vm911_vm0 = vcmp.gt.f32.partialorder %v879_v39, 0.0  ;;  %v800_v53 = vld [vmem:[#allocation2 + $0x48] sm:$0xff] }
 0x11b   : > { %v1374_v50 = vpack.c.bf16 %v986_v43, %v986_v43  ;;  %v943_v52 = vmul.f32 0.2, %v879_v39  ;;  %vm927_vm4 = vcmp.gt.f32.partialorder %v895_v17, 0.0  ;;  %v959_v54 = vmul.f32 0.2, %v895_v17 }
 0x11c   : > { %vm909_vm5 = vcmp.gt.f32.partialorder %v877_v18, 0.0  ;;  %v941_v55 = vmul.f32 0.2, %v877_v18  ;;  %1131 = vst.msk [vmem:[%s1719_s24 + $0x14] sm:$0xf] %vm1125_vm1, %v1358_v49  ;;  %v893_v27 = vadd.f32 %v1688_v59, %v854_v44  ;;  %v880_v28 = vadd.f32 %v1688_v59, %v841_v45  ;;  %v816_v0 = vld [vmem:[#allocation2 + $0xc8] sm:$0xff] }
 0x11d   : > { %1147 = vst.msk [vmem:[%s1719_s24 + $0x54] sm:$0xf] %vm1125_vm1, %v1374_v50  ;;  %v975_v58 = vsel %vm911_vm0, %v879_v39, %v943_v52  ;;  %v857_v37 = vmul.f32 %v1681_v51, %v818_v48  ;;  %v991_v61 = vsel %vm927_vm4, %v895_v17, %v959_v54  ;;  %v839_v63 = vmul.f32 %v1681_v51, %v800_v53  ;;  %v805_v1 = vld [vmem:[#allocation2 + $0x70] sm:$0xff]  ;;  %v803_v13 = vld [vmem:[#allocation2 + $0x60] sm:$0xff] }
 0x11e   : > { %v1363_v60 = vpack.c.bf16 %v975_v58, %v975_v58  ;;  %v973_v62 = vsel %vm909_vm5, %v877_v18, %v941_v55  ;;  %v821_v2 = vld [vmem:[#allocation2 + $0xf0] sm:$0xff]  ;;  %v1379_v3 = vpack.c.bf16 %v991_v61, %v991_v61  ;;  %vm925_vm6 = vcmp.gt.f32.partialorder %v893_v27, 0.0  ;;  %v819_v22 = vld [vmem:[#allocation2 + $0xe0] sm:$0xff]  ;;  %v806_v25 = vld [vmem:[#allocation2 + $0x78] sm:$0xff] }
 0x11f   : > { %v1361_v6 = vpack.c.bf16 %v973_v62, %v973_v62  ;;  %v957_v7 = vmul.f32 0.2, %v893_v27  ;;  %vm912_vm7 = vcmp.gt.f32.partialorder %v880_v28, 0.0  ;;  %v944_v8 = vmul.f32 0.2, %v880_v28  ;;  %v822_v26 = vld [vmem:[#allocation2 + $0xf8] sm:$0xff] }
 0x120   : > { %1136 = vst.msk [vmem:[%s1719_s24 + $0x28] sm:$0xf] %vm1125_vm1, %v1363_v60  ;;  %v896_v9 = vadd.f32 %v1688_v59, %v857_v37  ;;  %v878_v10 = vadd.f32 %v1688_v59, %v839_v63  ;;  %1152 = vst.msk [vmem:[%s1719_s24 + $0x68] sm:$0xf] %vm1125_vm1, %v1379_v3  ;;  %v855_v46 = vmul.f32 %v1681_v51, %v816_v0  ;;  %v804_v18 = vld [vmem:[#allocation2 + $0x68] sm:$0xff] }
 0x121   : > { %1134 = vst.msk [vmem:[%s1719_s24 + $0x20] sm:$0xf] %vm1125_vm1, %v1361_v6  ;;  %v989_v38 = vsel %vm925_vm6, %v893_v27, %v957_v7  ;;  %v844_v11 = vmul.f32 %v1681_v51, %v805_v1  ;;  %v860_v12 = vmul.f32 %v1681_v51, %v821_v2  ;;  %v976_v47 = vsel %vm912_vm7, %v880_v28, %v944_v8  ;;  %v820_v40 = vld [vmem:[#allocation2 + $0xe8] sm:$0xff] }
 0x122   : > { %v1377_v14 = vpack.c.bf16 %v989_v38, %v989_v38  ;;  %vm928_vm8 = vcmp.gt.f32.partialorder %v896_v9, 0.0  ;;  %v960_v56 = vmul.f32 0.2, %v896_v9  ;;  %v1364_v15 = vpack.c.bf16 %v976_v47, %v976_v47 }
 0x123   : > { %vm910_vm9 = vcmp.gt.f32.partialorder %v878_v10, 0.0  ;;  %v942_v16 = vmul.f32 0.2, %v878_v10  ;;  %v894_v19 = vadd.f32 %v1688_v59, %v855_v46  ;;  %v883_v4 = vadd.f32 %v1688_v59, %v844_v11 }
 0x124   : > { %1150 = vst.msk [vmem:[%s1719_s24 + $0x60] sm:$0xf] %vm1125_vm1, %v1377_v14  ;;  %v992_v57 = vsel %vm928_vm8, %v896_v9, %v960_v56  ;;  %v899_v20 = vadd.f32 %v1688_v59, %v860_v12  ;;  %v842_v21 = vmul.f32 %v1681_v51, %v803_v13  ;;  %1137 = vst.msk [vmem:[%s1719_s24 + $0x2c] sm:$0xf] %vm1125_vm1, %v1364_v15 }
 0x125   : > { %v1380_v23 = vpack.c.bf16 %v992_v57, %v992_v57  ;;  %v974_v5 = vsel %vm910_vm9, %v878_v10, %v942_v16  ;;  %vm926_vm10 = vcmp.gt.f32.partialorder %v894_v19, 0.0  ;;  %v958_v24 = vmul.f32 0.2, %v894_v19 }
 0x126   : > { %v1362_v29 = vpack.c.bf16 %v974_v5, %v974_v5  ;;  %vm915_vm11 = vcmp.gt.f32.partialorder %v883_v4, 0.0  ;;  %v947_v30 = vmul.f32 0.2, %v883_v4  ;;  %vm931_vm12 = vcmp.gt.f32.partialorder %v899_v20, 0.0 }
 0x127   : > { %1153 = vst.msk [vmem:[%s1719_s24 + $0x6c] sm:$0xf] %vm1125_vm1, %v1380_v23  ;;  %v990_v31 = vsel %vm926_vm10, %v894_v19, %v958_v24  ;;  %v963_v32 = vmul.f32 0.2, %v899_v20  ;;  %v881_v33 = vadd.f32 %v1688_v59, %v842_v21  ;;  %v858_v34 = vmul.f32 %v1681_v51, %v819_v22 }
 0x128   : > { %1135 = vst.msk [vmem:[%s1719_s24 + $0x24] sm:$0xf] %vm1125_vm1, %v1362_v29  ;;  %v1378_v35 = vpack.c.bf16 %v990_v31, %v990_v31  ;;  %v979_v36 = vsel %vm915_vm11, %v883_v4, %v947_v30  ;;  %v845_v39 = vmul.f32 %v1681_v51, %v806_v25  ;;  %v861_v17 = vmul.f32 %v1681_v51, %v822_v26 }
 0x129   : > { %v1367_v41 = vpack.c.bf16 %v979_v36, %v979_v36  ;;  %v995_v42 = vsel %vm931_vm12, %v899_v20, %v963_v32  ;;  %vm913_vm13 = vcmp.gt.f32.partialorder %v881_v33, 0.0  ;;  %v945_v43 = vmul.f32 0.2, %v881_v33 }
 0x12a   : > { %1151 = vst.msk [vmem:[%s1719_s24 + $0x64] sm:$0xf] %vm1125_vm1, %v1378_v35  ;;  %v1383_v44 = vpack.c.bf16 %v995_v42, %v995_v42  ;;  %v897_v45 = vadd.f32 %v1688_v59, %v858_v34  ;;  %v884_v48 = vadd.f32 %v1688_v59, %v845_v39  ;;  %v900_v49 = vadd.f32 %v1688_v59, %v861_v17 }
 0x12b   : > { %1140 = vst.msk [vmem:[%s1719_s24 + $0x38] sm:$0xf] %vm1125_vm1, %v1367_v41  ;;  %v977_v50 = vsel %vm913_vm13, %v881_v33, %v945_v43  ;;  %v843_v52 = vmul.f32 %v1681_v51, %v804_v18  ;;  %v859_v53 = vmul.f32 %v1681_v51, %v820_v40 }
 0x12c   : > { %1156 = vst.msk [vmem:[%s1719_s24 + $0x78] sm:$0xf] %vm1125_vm1, %v1383_v44  ;;  %v1365_v54 = vpack.c.bf16 %v977_v50, %v977_v50  ;;  %vm929_vm14 = vcmp.gt.f32.partialorder %v897_v45, 0.0  ;;  %v961_v55 = vmul.f32 0.2, %v897_v45  ;;  %vm916_vm15 = vcmp.gt.f32.partialorder %v884_v48, 0.0 }
 0x12d   : > { %v948_v58 = vmul.f32 0.2, %v884_v48  ;;  %vm932_vm2 = vcmp.gt.f32.partialorder %v900_v49, 0.0  ;;  %v964_v27 = vmul.f32 0.2, %v900_v49  ;;  %v882_v28 = vadd.f32 %v1688_v59, %v843_v52 }
 0x12e   : > { %1138 = vst.msk [vmem:[%s1719_s24 + $0x30] sm:$0xf] %vm1125_vm1, %v1365_v54  ;;  %v993_v37 = vsel %vm929_vm14, %v897_v45, %v961_v55  ;;  %v898_v60 = vadd.f32 %v1688_v59, %v859_v53 }
 0x12f   : > { %v1381_v51 = vpack.c.bf16 %v993_v37, %v993_v37  ;;  %v980_v61 = vsel %vm916_vm15, %v884_v48, %v948_v58  ;;  %v996_v62 = vsel %vm932_vm2, %v900_v49, %v964_v27  ;;  %vm914_vm3 = vcmp.gt.f32.partialorder %v882_v28, 0.0 }
 0x130   : > { %v1368_v63 = vpack.c.bf16 %v980_v61, %v980_v61  ;;  %v1384_v0 = vpack.c.bf16 %v996_v62, %v996_v62  ;;  %v946_v1 = vmul.f32 0.2, %v882_v28  ;;  %vm930_vm0 = vcmp.gt.f32.partialorder %v898_v60, 0.0 }
 0x131   : > { %1154 = vst.msk [vmem:[%s1719_s24 + $0x70] sm:$0xf] %vm1125_vm1, %v1381_v51  ;;  %v962_v2 = vmul.f32 0.2, %v898_v60 }
 0x132   : > { %1141 = vst.msk [vmem:[%s1719_s24 + $0x3c] sm:$0xf] %vm1125_vm1, %v1368_v63  ;;  %1157 = vst.msk [vmem:[%s1719_s24 + $0x7c] sm:$0xf] %vm1125_vm1, %v1384_v0  ;;  %v978_v3 = vsel %vm914_vm3, %v882_v28, %v946_v1 }
 0x133   : > { %v1366_v6 = vpack.c.bf16 %v978_v3, %v978_v3  ;;  %v994_v59 = vsel %vm930_vm0, %v898_v60, %v962_v2 }
 0x134   : > { %v1382_v7 = vpack.c.bf16 %v994_v59, %v994_v59 }
 0x135   : > { %1139 = vst.msk [vmem:[%s1719_s24 + $0x34] sm:$0xf] %vm1125_vm1, %v1366_v6 }
 0x136   : > { %1155 = vst.msk [vmem:[%s1719_s24 + $0x74] sm:$0xf] %vm1125_vm1, %v1382_v7 }
 0x137 PF: > { %s14_s17 = sadd.s32 1, %s1544_s17   ;;  %s1909_s15 = smov %s1540_s16 }
 0x138   : > { %p11_p5 = scmp.ge.s32.totalorder %s14_s17, 4   ;;  %s1910_s16 = smov %s1912_s18 }
 0x13a   :  { %13 = sbr.rel (!%p11_p5) target bundleno = 2 (0x2), region = 83 }

// kernel: discriminator_forward.5
= control target key start
LH: loop header
LB: loop body
LE: loop exit
PB: predicated region body
PF: predicated region fallthrough
CT: control target
= control target key end

     0   :  { %s1484_s15 = smov 0   ;;  %s1486_s16 = smov 0   ;;  %s1660_s0 = inlined_call_operand.vmem [shape: bf16[128,1024], index: 0, kind: input, shape index: {}]   ;;  %s1661_s1 = inlined_call_operand.vmem [shape: bf16[1024,128], index: 1, kind: input, shape index: {}]   ;;  %s1662_s2 = inlined_call_operand.vmem [shape: f32[1,128], index: 2, kind: input, shape index: {}]   ;;  %s1663_s3 = inlined_call_operand.vmem [shape: f32[1,128], index: 3, kind: input, shape index: {}]   ;;  %s1664_s4 = inlined_call_operand.vmem [shape: bf16[128,128], index: 4, kind: output, shape index: {}]  }
   0x1   :  { %s1488_s17 = smov 0   ;;  %s1490_s18 = smov 0  }
   0x2   :  { %s1492_s19 = smov 0   ;;  %s1494_s20 = smov 0  }
   0x3   :  { %s1496_s21 = smov 0  }
   0x4 LB: > { %s26_s22 = sadd.s32 1, %s1448_s19  ;;  %s33_s23 = sadd.s32 1, %s1452_s20  ;;  %s1456_s21 = sphi %s1496_s21, %s14_s21   ;;  %s1452_s20 = sphi %s1494_s20, %s1670_s20   ;;  %s1448_s19 = sphi %s1492_s19, %s1669_s19   ;;  %s1444_s18 = sphi %s1490_s18, %s1668_s18   ;;  %s1440_s17 = sphi %s1488_s17, %s1667_s17   ;;  %s1436_s16 = sphi %s1486_s16, %s1666_s16   ;;  %s1432_s15 = sphi %s1484_s15, %s1665_s15  }
   0x5   : > { %p27_p0 = scmp.ge.s32.totalorder %s26_s22, 2  ;;  %p49_p1 = scmp.ne.s32.totalorder %s1436_s16, %s1432_s15 }
   0x6   : > { %p50_p2 = scmp.eq.s32.totalorder %s1456_s21, 0  ;;  %s42_s27 = sadd.s32 1, %s1436_s16 }
   0x7   : > { %s1672_s22 = smov (%p27_p0, %s26_s22), 0  ;;  %s1674_s23 = smov (!%p27_p0, %s33_s23), %s1452_s20 }
   0x8   : > { %p51_p3 = por %p50_p2, %p49_p1  ;;  %p35_p4 = scmp.ge.s32.totalorder %s1674_s23, 2 }
   0x9   : > { %s38_s24 = ssub.s32 %s1448_s19, %s1672_s22  ;;  %p1103_p6 = scmp.ge.s32.totalorder %s1456_s21, 4 }
   0xa   : > { %s1676_s23 = smov (%p35_p4, %s1674_s23), 0 }
   0xb   : > { %s37_s25 = ssub.s32 %s1452_s20, %s1676_s23  ;;  %195 = sbr.rel (%p1103_p6) target bundleno = 31 (0x1f), region = 24 }
   0xc   : > { %s39_s26 = sor.u32 %s38_s24, %s37_s25 }
   0xd   : > { %p40_p5 = scmp.eq.s32.totalorder %s39_s26, 0 }
   0xf   : > { %s1535_s28 = scalar_select %p40_p5, %s1436_s16, %s42_s27  }
  0x10   : > { %198 = sbr.rel (!%p51_p3) target bundleno = 31 (0x1f), region = 28  ;;  %s200_s29 = sand.u32 (%p51_p3), 1, %s1436_s16  }
  0x11   : > { %s1106_s30 = sshll.u32 (%p51_p3), %s1448_s19, 2  ;;  %s1104_s5 = sshll.u32 (%p51_p3), %s200_s29, 7 }
  0x12   : > { %s1177_s6 = sshll.u32 (%p51_p3), %s1452_s20, 6  ;;  %s202_s12 = scalar_lea.vmem (%p51_p3), [#allocation3], %s1104_s5 }
  0x13   : > { %s206_s7 = sadd.s32 (%p51_p3), %s1177_s6, %s1106_s30 }
  0x14   : > { %s1108_s8 = sshll.u32 (%p51_p3), %s206_s7, 2 }
  0x15   : > { %s1544_s11 = scalar_lea.vmem %s1660_s0, %s1108_s8 }
  0x16   : > { %v221_v0 = vld [vmem:[%s1544_s11] sm:$0xff]  ;;  %v223_v1 = vld [vmem:[%s1544_s11 + $0x8] sm:$0xff] }
  0x17   : > { %v225_v2 = vld [vmem:[%s1544_s11 + $0x20] sm:$0xff]  ;;  %222 = vst [vmem:[%s202_s12] sm:$0xff] %v221_v0  ;;  %224 = vst [vmem:[%s202_s12 + $0x8] sm:$0xff] %v223_v1  ;;  %v227_v3 = vld [vmem:[%s1544_s11 + $0x28] sm:$0xff] }
  0x18   : > { %226 = vst [vmem:[%s202_s12 + $0x10] sm:$0xff] %v225_v2  ;;  %v229_v4 = vld [vmem:[%s1544_s11 + $0x40] sm:$0xff]  ;;  %v231_v5 = vld [vmem:[%s1544_s11 + $0x48] sm:$0xff]  ;;  %228 = vst [vmem:[%s202_s12 + $0x18] sm:$0xff] %v227_v3 }
  0x19   : > { %230 = vst [vmem:[%s202_s12 + $0x20] sm:$0xff] %v229_v4  ;;  %232 = vst [vmem:[%s202_s12 + $0x28] sm:$0xff] %v231_v5  ;;  %v233_v6 = vld [vmem:[%s1544_s11 + $0x60] sm:$0xff]  ;;  %v235_v7 = vld [vmem:[%s1544_s11 + $0x68] sm:$0xff] }
  0x1a   : > { %v237_v8 = vld [vmem:[%s1544_s11 + $0x80] sm:$0xff]  ;;  %234 = vst [vmem:[%s202_s12 + $0x30] sm:$0xff] %v233_v6  ;;  %236 = vst [vmem:[%s202_s12 + $0x38] sm:$0xff] %v235_v7  ;;  %v239_v9 = vld [vmem:[%s1544_s11 + $0x88] sm:$0xff] }
  0x1b   : > { %238 = vst [vmem:[%s202_s12 + $0x40] sm:$0xff] %v237_v8  ;;  %v241_v10 = vld [vmem:[%s1544_s11 + $0xa0] sm:$0xff]  ;;  %v243_v11 = vld [vmem:[%s1544_s11 + $0xa8] sm:$0xff]  ;;  %240 = vst [vmem:[%s202_s12 + $0x48] sm:$0xff] %v239_v9 }
  0x1c   : > { %242 = vst [vmem:[%s202_s12 + $0x50] sm:$0xff] %v241_v10  ;;  %244 = vst [vmem:[%s202_s12 + $0x58] sm:$0xff] %v243_v11  ;;  %v245_v12 = vld [vmem:[%s1544_s11 + $0xc0] sm:$0xff]  ;;  %v247_v13 = vld [vmem:[%s1544_s11 + $0xc8] sm:$0xff] }
  0x1d   : > { %v249_v14 = vld [vmem:[%s1544_s11 + $0xe0] sm:$0xff]  ;;  %246 = vst [vmem:[%s202_s12 + $0x60] sm:$0xff] %v245_v12  ;;  %248 = vst [vmem:[%s202_s12 + $0x68] sm:$0xff] %v247_v13  ;;  %v251_v15 = vld [vmem:[%s1544_s11 + $0xe8] sm:$0xff] }
  0x1e   : > { %250 = vst [vmem:[%s202_s12 + $0x70] sm:$0xff] %v249_v14  ;;  %252 = vst [vmem:[%s202_s12 + $0x78] sm:$0xff] %v251_v15 }
  0x1f PF: > { %p1109_p7 = scmp.ge.s32.totalorder %s1456_s21, 1  ;;  %p269_p8 = scmp.lt.s32.totalorder %s1456_s21, 5 }
  0x21   : > { %p270_p9 = pnand %p1109_p7, %p269_p8 }
  0x22   : > { %s276_s13 = sand.u32 (!%p270_p9), 1, %s1432_s15   ;;  %s1111_s14 = sshll.u32 (!%p270_p9), %s1440_s17, 6 }
  0x23   : > { %273 = sbr.rel (%p270_p9) target bundleno = 336 (0x150), region = 55  ;;  %s1110_s24 = sshll.u32 (!%p270_p9), %s276_s13, 7 }
  0x24   : > { %p321_p10 = scmp.lt.s32.totalorder (!%p270_p9), %s1111_s14, 127  ;;  %s1113_s25 = sshll.u32 (!%p270_p9), %s1444_s18, 3 }
  0x25   : > { %p336_p11 = scmp.lt.s32.totalorder (!%p270_p9), %s1113_s25, 15  ;;  %s1577_s15 = scalar_lea.vmem (!%p270_p9), [#allocation3], %s1110_s24 }
  0x26   : > { %p1115_p12 = scmp.ne.s32.totalorder (!%p270_p9), %s1440_s17, 0 }
  0x28   : > { %s1678_s14 = smov (!%p321_p10, %s1111_s14), 127  ;;  %s1680_s25 = smov (!%p336_p11, %s1113_s25), 15 }
  0x29   : > { %s1112_s26 = sshll.u32 %s1678_s14, 2  ;;  %s1114_s5 = sshll.u32 %s1680_s25, 2 }
  0x2a   : > { %s1570_s30 = scalar_lea.vmem %s1661_s1, %s1112_s26  ;;  %s1575_s8 = scalar_lea.vmem %s1664_s4, %s1114_s5 }
  0x2b   : > { %348 = sbr.rel (%p1115_p12) target bundleno = 53 (0x35), region = 63 }
  0x30   : > { %v1458_v16 = vmov 0.0  }
  0x31   : > { %349 = vst [vmem:[#allocation2 + $0x30] sm:$0xff] %v1458_v16  ;;  %350 = vst [vmem:[#allocation2] sm:$0xff] %v1458_v16 }
  0x32   : > { %351 = vst [vmem:[#allocation2 + $0x18] sm:$0xff] %v1458_v16  ;;  %352 = vst [vmem:[#allocation2 + $0x10] sm:$0xff] %v1458_v16 }
  0x33   : > { %353 = vst [vmem:[#allocation2 + $0x8] sm:$0xff] %v1458_v16  ;;  %354 = vst [vmem:[#allocation2 + $0x20] sm:$0xff] %v1458_v16 }
  0x34   : > { %355 = vst [vmem:[#allocation2 + $0x28] sm:$0xff] %v1458_v16  ;;  %356 = vst [vmem:[#allocation2 + $0x38] sm:$0xff] %v1458_v16 }
  0x35 PF: > { %v1346_v17 = vld [vmem:[%s1570_s30 + $0x78] sm:$0xff]   ;;  %v1350_v21 = vld [vmem:[%s1570_s30 + $0x70] sm:$0xff]   ;;  %v1354_v25 = vld [vmem:[%s1570_s30 + $0x68] sm:$0xff]   ;;  %p1164_p13 = scmp.ne.s32.totalorder %s1440_s17, 1 }
  0x36   : > { %v1347_v18 = vld [vmem:[%s1570_s30 + $0xf8] sm:$0xff]   ;;  %1209 = vmatprep.subr.bf16.mxu0 %v1346_v17  ;;  %v1351_v22 = vld [vmem:[%s1570_s30 + $0xf0] sm:$0xff]   ;;  %v1355_v26 = vld [vmem:[%s1570_s30 + $0xe8] sm:$0xff]  }
  0x37   : > { %v1348_v19 = vld [vmem:[%s1570_s30 + $0x38] sm:$0xff]   ;;  %1249 = vmatprep.subr.bf16.mxu1 %v1347_v18  ;;  %v1352_v23 = vld [vmem:[%s1570_s30 + $0x30] sm:$0xff]   ;;  %v1356_v27 = vld [vmem:[%s1570_s30 + $0x28] sm:$0xff]  }
  0x38   : > { %v1349_v20 = vld [vmem:[%s1570_s30 + $0xb8] sm:$0xff]   ;;  %1210 = vmatpush3.bf16.msra.mxu0 %v1348_v19  ;;  %v1353_v24 = vld [vmem:[%s1570_s30 + $0xb0] sm:$0xff]   ;;  %v1357_v28 = vld [vmem:[%s1570_s30 + $0xa8] sm:$0xff]  }
  0x39   : > { %1250 = vmatpush3.bf16.msra.mxu1 %v1349_v20  ;;  %1211 = vmatprep.subr.bf16.mxu0 %v1350_v21  ;;  %v1358_v29 = vld [vmem:[%s1570_s30 + $0x60] sm:$0xff]   ;;  %v1362_v33 = vld [vmem:[%s1570_s30 + $0x58] sm:$0xff]   ;;  %v1366_v37 = vld [vmem:[%s1570_s30 + $0x50] sm:$0xff]  }
  0x3a   : > { %1251 = vmatprep.subr.bf16.mxu1 %v1351_v22  ;;  %v1359_v30 = vld [vmem:[%s1570_s30 + $0xe0] sm:$0xff]   ;;  %v1363_v34 = vld [vmem:[%s1570_s30 + $0xd8] sm:$0xff]   ;;  %v1367_v38 = vld [vmem:[%s1570_s30 + $0xd0] sm:$0xff]  }
  0x3b   : > { %v1360_v31 = vld [vmem:[%s1570_s30 + $0x20] sm:$0xff]   ;;  %v1364_v35 = vld [vmem:[%s1570_s30 + $0x18] sm:$0xff]   ;;  %v1368_v39 = vld [vmem:[%s1570_s30 + $0x10] sm:$0xff]  }
  0x3c   : > { %1212 = vmatpush3.bf16.msra.mxu0 %v1352_v23  ;;  %v1361_v32 = vld [vmem:[%s1570_s30 + $0xa0] sm:$0xff]   ;;  %v1365_v36 = vld [vmem:[%s1570_s30 + $0x98] sm:$0xff]   ;;  %v1369_v40 = vld [vmem:[%s1570_s30 + $0x90] sm:$0xff]  }
  0x3d   : > { %1252 = vmatpush3.bf16.msra.mxu1 %v1353_v24  ;;  %1213 = vmatprep.subr.bf16.mxu0 %v1354_v25  ;;  %v1370_v41 = vld [vmem:[%s1570_s30 + $0x48] sm:$0xff]   ;;  %v1374_v45 = vld [vmem:[%s1570_s30 + $0x40] sm:$0xff]   ;;  %v357_v8 = vld [vmem:[#allocation2 + $0x30] sm:$0xff] }
  0x3e   : > { %1253 = vmatprep.subr.bf16.mxu1 %v1355_v26  ;;  %v1371_v42 = vld [vmem:[%s1570_s30 + $0xc8] sm:$0xff]   ;;  %v1375_v46 = vld [vmem:[%s1570_s30 + $0xc0] sm:$0xff]   ;;  %v359_v26 = vld [vmem:[#allocation2 + $0x18] sm:$0xff] }
  0x3f   : > { %v1372_v43 = vld [vmem:[%s1570_s30 + $0x8] sm:$0xff]   ;;  %v1376_v47 = vld [vmem:[%s1570_s30] sm:$0xff]  }
  0x40   : > { %1214 = vmatpush3.bf16.msra.mxu0 %v1356_v27  ;;  %v1373_v44 = vld [vmem:[%s1570_s30 + $0x88] sm:$0xff]   ;;  %v1377_v48 = vld [vmem:[%s1570_s30 + $0x80] sm:$0xff]  }
  0x41   : > { %1254 = vmatpush3.bf16.msra.mxu1 %v1357_v28  ;;  %1215 = vmatprep.subr.bf16.mxu0 %v1358_v29  ;;  %v1378_v49 = vld [vmem:[%s1577_s15] ss:$16 sps:$4 sm:$0xff]   ;;  %v1380_v50 = vld [vmem:[%s1577_s15 + $0x4] ss:$16 sps:$4 sm:$0xff]   ;;  %v1381_v51 = vld [vmem:[%s1577_s15 + $0x8] ss:$16 sps:$4 sm:$0xff]  }
  0x42   : > { %1255 = vmatprep.subr.bf16.mxu1 %v1359_v30  ;;  %v1383_v52 = vld [vmem:[%s1577_s15 + $0xc] ss:$16 sps:$4 sm:$0xff]   ;;  %749 = vmatprep.mubr.bf16.mxu0 %v1380_v50  ;;  %v1384_v53 = vld [vmem:[%s1577_s15 + $0x24] ss:$16 sps:$4 sm:$0xff]   ;;  %v1388_v55 = vld [vmem:[%s1577_s15 + $0x20] ss:$16 sps:$4 sm:$0xff]  }
  0x43   : > { %814 = vmatprep.mubr.bf16.mxu1 %v1383_v52  ;;  %v1386_v54 = vld [vmem:[%s1577_s15 + $0x2c] ss:$16 sps:$4 sm:$0xff]   ;;  %v1389_v56 = vld [vmem:[%s1577_s15 + $0x28] ss:$16 sps:$4 sm:$0xff]   ;;  %v1390_v57 = vld [vmem:[%s1577_s15 + $0x44] ss:$16 sps:$4 sm:$0xff]  }
  0x44   : > { %1216 = vmatpush3.bf16.msra.mxu0 %v1360_v31  ;;  %v1392_v58 = vld [vmem:[%s1577_s15 + $0x4c] ss:$16 sps:$4 sm:$0xff]   ;;  %v1394_v59 = vld [vmem:[%s1577_s15 + $0x40] ss:$16 sps:$4 sm:$0xff]   ;;  %v1395_v60 = vld [vmem:[%s1577_s15 + $0x48] ss:$16 sps:$4 sm:$0xff]  }
  0x45   : > { %1256 = vmatpush3.bf16.msra.mxu1 %v1361_v32  ;;  %1217 = vmatprep.subr.bf16.mxu0 %v1362_v33  ;;  %v1396_v61 = vld [vmem:[%s1577_s15 + $0x64] ss:$16 sps:$4 sm:$0xff]   ;;  %v1398_v62 = vld [vmem:[%s1577_s15 + $0x6c] ss:$16 sps:$4 sm:$0xff]   ;;  %v1400_v63 = vld [vmem:[%s1577_s15 + $0x60] ss:$16 sps:$4 sm:$0xff]  }
  0x46   : > { %1257 = vmatprep.subr.bf16.mxu1 %v1363_v34  ;;  %v1401_v0 = vld [vmem:[%s1577_s15 + $0x68] ss:$16 sps:$4 sm:$0xff]   ;;  %v358_v17 = vld [vmem:[#allocation2] sm:$0xff] }
  0x48   : > { %1218 = vmatpush3.bf16.msra.mxu0 %v1364_v35  ;;  %v360_v35 = vld [vmem:[#allocation2 + $0x10] sm:$0xff] }
  0x49   : > { %1258 = vmatpush3.bf16.msra.mxu1 %v1365_v36  ;;  %1219 = vmatprep.subr.bf16.mxu0 %v1366_v37 }
  0x4a   : > { %1259 = vmatprep.subr.bf16.mxu1 %v1367_v38 }
  0x4c   : > { %1220 = vmatpush3.bf16.msra.mxu0 %v1368_v39 }
  0x4d   : > { %1260 = vmatpush3.bf16.msra.mxu1 %v1369_v40  ;;  %1221 = vmatprep.subr.bf16.mxu0 %v1370_v41 }
  0x4e   : > { %1261 = vmatprep.subr.bf16.mxu1 %v1371_v42 }
  0x50   : > { %1222 = vmatpush3.bf16.msra.mxu0 %v1372_v43 }
  0x51   : > { %1262 = vmatpush3.bf16.msra.mxu1 %v1373_v44  ;;  %1223 = vmatprep.subr.bf16.mxu0 %v1374_v45  ;;  %v361_v44 = vld [vmem:[#allocation2 + $0x8] sm:$0xff] }
  0x52   : > { %1263 = vmatprep.subr.bf16.mxu1 %v1375_v46 }
  0x54   : > { %1224 = vmatpush3.bf16.msra.mxu0 %v1376_v47 }
  0x55   : > { %1264 = vmatpush3.bf16.msra.mxu1 %v1377_v48 }
  0x57   : > { %750 = vmatmul.mubr.bf16.vlgmr.msra.gmra.mxu0 %v1378_v49 }
  0x58   : > { %815 = vmatmul.mubr.bf16.vlgmr.msra.gmra.mxu1 %v1381_v51  ;;  %757 = vmatprep.mubr.bf16.mxu0 %v1384_v53  ;;  %v362_v53 = vld [vmem:[#allocation2 + $0x20] sm:$0xff] }
  0x59   : > { %822 = vmatprep.mubr.bf16.mxu1 %v1386_v54 }
  0x5f   : > { %758 = vmatmul.mubr.bf16.gmra.mxu0 %v1388_v55 }
  0x60   : > { %823 = vmatmul.mubr.bf16.gmra.mxu1 %v1389_v56  ;;  %765 = vmatprep.mubr.bf16.mxu0 %v1390_v57 }
  0x61   : > { %830 = vmatprep.mubr.bf16.mxu1 %v1392_v58 }
  0x67   : > { %766 = vmatmul.mubr.bf16.gmra.mxu0 %v1394_v59 }
  0x68   : > { %831 = vmatmul.mubr.bf16.gmra.mxu1 %v1395_v60  ;;  %773 = vmatprep.mubr.bf16.mxu0 %v1396_v61 }
  0x69   : > { %838 = vmatprep.mubr.bf16.mxu1 %v1398_v62  ;;  %v363_v62 = vld [vmem:[#allocation2 + $0x28] sm:$0xff] }
  0x6f   : > { %774 = vmatmul.mubr.bf16.gmra.mxu0 %v1400_v63 }
  0x70   : > { %839 = vmatmul.mubr.bf16.gmra.mxu1 %v1401_v0 }
 0x117   : > { %v1225_v1 = vpop.f32.mrf.mxu0 }
 0x118   : > { %v1265_v2 = vpop.f32.mrf.mxu1 }
 0x119   : > { %v1226_v3 = vpop.f32.mrf.mxu0 }
 0x11a   : > { %v1227_v4 = vadd.f32 %v1226_v3, %v1225_v1  ;;  %v1266_v5 = vpop.f32.mrf.mxu1 }
 0x11b   : > { %v1267_v6 = vadd.f32 %v1266_v5, %v1265_v2  ;;  %v1228_v7 = vpop.f32.mrf.mxu0 }
 0x11c   : > { %v1268_v9 = vpop.f32.mrf.mxu1 }
 0x11d   : > { %v817_v10 = vadd.f32 %v1267_v6, %v1227_v4  ;;  %v1229_v11 = vpop.f32.mrf.mxu0  ;;  %v364_v6 = vld [vmem:[#allocation2 + $0x38] sm:$0xff] }
 0x11e   : > { %v1230_v12 = vadd.f32 %v1229_v11, %v1228_v7  ;;  %v1269_v13 = vpop.f32.mrf.mxu1 }
 0x11f   : > { %v847_v14 = vadd.f32 %v817_v10, %v357_v8  ;;  %v1270_v15 = vadd.f32 %v1269_v13, %v1268_v9  ;;  %v1231_v16 = vpop.f32.mrf.mxu0 }
 0x120   : > { %v1271_v18 = vpop.f32.mrf.mxu1 }
 0x121   : > { %855 = vst [vmem:[#allocation2 + $0x30] sm:$0xff] %v847_v14  ;;  %v820_v19 = vadd.f32 %v1270_v15, %v1230_v12  ;;  %v1232_v20 = vpop.f32.mrf.mxu0 }
 0x122   : > { %v1233_v21 = vadd.f32 %v1232_v20, %v1231_v16  ;;  %v1272_v22 = vpop.f32.mrf.mxu1 }
 0x123   : > { %v848_v23 = vadd.f32 %v820_v19, %v358_v17  ;;  %v1273_v24 = vadd.f32 %v1272_v22, %v1271_v18  ;;  %v1234_v25 = vpop.f32.mrf.mxu0 }
 0x124   : > { %v1274_v27 = vpop.f32.mrf.mxu1 }
 0x125   : > { %856 = vst [vmem:[#allocation2] sm:$0xff] %v848_v23  ;;  %v825_v28 = vadd.f32 %v1273_v24, %v1233_v21  ;;  %v1235_v29 = vpop.f32.mrf.mxu0 }
 0x126   : > { %v1236_v30 = vadd.f32 %v1235_v29, %v1234_v25  ;;  %v1275_v31 = vpop.f32.mrf.mxu1 }
 0x127   : > { %v849_v32 = vadd.f32 %v825_v28, %v359_v26  ;;  %v1276_v33 = vadd.f32 %v1275_v31, %v1274_v27  ;;  %v1237_v34 = vpop.f32.mrf.mxu0 }
 0x128   : > { %v1277_v36 = vpop.f32.mrf.mxu1 }
 0x129   : > { %857 = vst [vmem:[#allocation2 + $0x18] sm:$0xff] %v849_v32  ;;  %v828_v37 = vadd.f32 %v1276_v33, %v1236_v30  ;;  %v1238_v38 = vpop.f32.mrf.mxu0 }
 0x12a   : > { %v1239_v39 = vadd.f32 %v1238_v38, %v1237_v34  ;;  %v1278_v40 = vpop.f32.mrf.mxu1 }
 0x12b   : > { %v850_v41 = vadd.f32 %v828_v37, %v360_v35  ;;  %v1279_v42 = vadd.f32 %v1278_v40, %v1277_v36  ;;  %v1240_v43 = vpop.f32.mrf.mxu0 }
 0x12c   : > { %v1280_v45 = vpop.f32.mrf.mxu1 }
 0x12d   : > { %858 = vst [vmem:[#allocation2 + $0x10] sm:$0xff] %v850_v41  ;;  %v833_v46 = vadd.f32 %v1279_v42, %v1239_v39  ;;  %v1241_v47 = vpop.f32.mrf.mxu0 }
 0x12e   : > { %v1242_v48 = vadd.f32 %v1241_v47, %v1240_v43  ;;  %v1281_v49 = vpop.f32.mrf.mxu1 }
 0x12f   : > { %v851_v50 = vadd.f32 %v833_v46, %v361_v44  ;;  %v1282_v51 = vadd.f32 %v1281_v49, %v1280_v45  ;;  %v1243_v52 = vpop.f32.mrf.mxu0 }
 0x130   : > { %v1283_v54 = vpop.f32.mrf.mxu1 }
 0x131   : > { %859 = vst [vmem:[#allocation2 + $0x8] sm:$0xff] %v851_v50  ;;  %v836_v55 = vadd.f32 %v1282_v51, %v1242_v48  ;;  %v1244_v56 = vpop.f32.mrf.mxu0 }
 0x132   : > { %v1245_v57 = vadd.f32 %v1244_v56, %v1243_v52  ;;  %v1284_v58 = vpop.f32.mrf.mxu1 }
 0x133   : > { %v852_v59 = vadd.f32 %v836_v55, %v362_v53  ;;  %v1285_v60 = vadd.f32 %v1284_v58, %v1283_v54  ;;  %v1246_v61 = vpop.f32.mrf.mxu0 }
 0x134   : > { %v1286_v63 = vpop.f32.mrf.mxu1 }
 0x135   : > { %860 = vst [vmem:[#allocation2 + $0x20] sm:$0xff] %v852_v59  ;;  %v841_v0 = vadd.f32 %v1285_v60, %v1245_v57  ;;  %v1247_v1 = vpop.f32.mrf.mxu0 }
 0x136   : > { %v1248_v2 = vadd.f32 %v1247_v1, %v1246_v61  ;;  %v1287_v3 = vpop.f32.mrf.mxu1 }
 0x137   : > { %v853_v4 = vadd.f32 %v841_v0, %v363_v62  ;;  %v1288_v5 = vadd.f32 %v1287_v3, %v1286_v63 }
 0x139   : > { %861 = vst [vmem:[#allocation2 + $0x28] sm:$0xff] %v853_v4  ;;  %v844_v7 = vadd.f32 %v1288_v5, %v1248_v2  ;;  %866 = sbr.rel (%p1164_p13) target bundleno = 336 (0x150), region = 67 }
 0x13b   : > { %v854_v8 = vadd.f32 %v844_v7, %v364_v6 }
 0x13d   : > { %862 = vst [vmem:[#allocation2 + $0x38] sm:$0xff] %v854_v8 }
 0x13e   : > { %v867_v9 = vld [vmem:[#allocation2 + $0x30] sm:$0xff]  ;;  %v868_v10 = vld [vmem:[#allocation2] sm:$0xff]  ;;  %v869_v15 = vld [vmem:[#allocation2 + $0x18] sm:$0xff] }
 0x13f   : > { %v1165_v11 = vld [vmem:[%s1662_s2] ss:$0 sm:$0xff]  ;;  %v870_v16 = vld [vmem:[#allocation2 + $0x10] sm:$0xff]  ;;  %v871_v19 = vld [vmem:[#allocation2 + $0x8] sm:$0xff] }
 0x140   : > { %v882_v12 = vmul.f32 %v1165_v11, %v867_v9  ;;  %v883_v13 = vmul.f32 %v1165_v11, %v868_v10  ;;  %v1166_v14 = vld [vmem:[%s1663_s3] ss:$0 sm:$0xff]  ;;  %v884_v17 = vmul.f32 %v1165_v11, %v869_v15  ;;  %v885_v18 = vmul.f32 %v1165_v11, %v870_v16  ;;  %v873_v21 = vld [vmem:[#allocation2 + $0x28] sm:$0xff] }
 0x141   : > { %v872_v20 = vld [vmem:[#allocation2 + $0x20] sm:$0xff]  ;;  %v886_v24 = vmul.f32 %v1165_v11, %v871_v19  ;;  %v888_v29 = vmul.f32 %v1165_v11, %v873_v21 }
 0x142   : > { %v897_v22 = vadd.f32 %v1166_v14, %v882_v12  ;;  %v898_v23 = vadd.f32 %v1166_v14, %v883_v13  ;;  %v887_v25 = vmul.f32 %v1165_v11, %v872_v20  ;;  %v899_v27 = vadd.f32 %v1166_v14, %v884_v17 }
 0x143   : > { %v900_v28 = vadd.f32 %v1166_v14, %v885_v18  ;;  %v901_v37 = vadd.f32 %v1166_v14, %v886_v24  ;;  %v903_v42 = vadd.f32 %v1166_v14, %v888_v29 }
 0x144   : > { %v874_v26 = vld [vmem:[#allocation2 + $0x38] sm:$0xff]  ;;  %vm905_vm0 = vcmp.gt.f32.partialorder %v897_v22, 0.0  ;;  %vm906_vm1 = vcmp.gt.f32.partialorder %v898_v23, 0.0  ;;  %v913_v31 = vmul.f32 0.2, %v897_v22  ;;  %vm907_vm2 = vcmp.gt.f32.partialorder %v899_v27, 0.0 }
 0x145   : > { %v889_v30 = vmul.f32 %v1165_v11, %v874_v26  ;;  %v914_v32 = vmul.f32 0.2, %v898_v23  ;;  %vm908_vm3 = vcmp.gt.f32.partialorder %v900_v28, 0.0  ;;  %v915_v33 = vmul.f32 0.2, %v899_v27 }
 0x146   : > { %v916_v34 = vmul.f32 0.2, %v900_v28  ;;  %v921_v35 = vsel %vm905_vm0, %v897_v22, %v913_v31  ;;  %v902_v38 = vadd.f32 %v1166_v14, %v887_v25  ;;  %vm909_vm4 = vcmp.gt.f32.partialorder %v901_v37, 0.0 }
 0x147   : > { %v922_v36 = vsel %vm906_vm1, %v898_v23, %v914_v32  ;;  %v923_v40 = vsel %vm907_vm2, %v899_v27, %v915_v33  ;;  %v917_v44 = vmul.f32 0.2, %v901_v37  ;;  %v904_v46 = vadd.f32 %v1166_v14, %v889_v30 }
 0x148   : > { %v1189_v39 = vpack.c.bf16 %v922_v36, %v921_v35  ;;  %v924_v41 = vsel %vm908_vm3, %v900_v28, %v916_v34  ;;  %vm910_vm5 = vcmp.gt.f32.partialorder %v902_v38, 0.0  ;;  %v918_v45 = vmul.f32 0.2, %v902_v38 }
 0x149   : > { %v1194_v43 = vpack.c.bf16 %v924_v41, %v923_v40  ;;  %vm911_vm6 = vcmp.gt.f32.partialorder %v903_v42, 0.0  ;;  %v919_v47 = vmul.f32 0.2, %v903_v42  ;;  %v925_v48 = vsel %vm909_vm4, %v901_v37, %v917_v44 }
 0x14a   : > { %1190 = vst [vmem:[%s1575_s8] sm:$0xff] %v1189_v39   ;;  %v926_v49 = vsel %vm910_vm5, %v902_v38, %v918_v45  ;;  %vm912_vm7 = vcmp.gt.f32.partialorder %v904_v46, 0.0  ;;  %v920_v50 = vmul.f32 0.2, %v904_v46 }
 0x14b   : > { %1206 = vst [vmem:[%s1575_s8 + $0x8] sm:$0xff] %v1194_v43   ;;  %v927_v51 = vsel %vm911_vm6, %v903_v42, %v919_v47  ;;  %v1199_v52 = vpack.c.bf16 %v926_v49, %v925_v48 }
 0x14c   : > { %v928_v53 = vsel %vm912_vm7, %v904_v46, %v920_v50 }
 0x14d   : > { %1207 = vst [vmem:[%s1575_s8 + $0x10] sm:$0xff] %v1199_v52   ;;  %v1204_v54 = vpack.c.bf16 %v928_v53, %v927_v51 }
 0x14f   : > { %1208 = vst [vmem:[%s1575_s8 + $0x18] sm:$0xff] %v1204_v54  }
 0x150 PF: > { %s14_s21 = sadd.s32 1, %s1456_s21   ;;  %s1665_s15 = smov %s1436_s16 }
 0x151   : > { %p11_p0 = scmp.ge.s32.totalorder %s14_s21, 6   ;;  %s1666_s16 = smov %s1535_s28 }
 0x152   : > { %s1667_s17 = smov %s1448_s19  ;;  %s1668_s18 = smov %s1452_s20 }
 0x153   : > { %s1669_s19 = smov %s1672_s22  ;;  %s1670_s20 = smov %s1676_s23 }
 0x154   :  { %13 = sbr.rel (!%p11_p0) target bundleno = 4 (0x4), region = 111 }

// kernel: discriminator_forward.6
= control target key start
LH: loop header
LB: loop body
LE: loop exit
PB: predicated region body
PF: predicated region fallthrough
CT: control target
= control target key end

     0   :  { %s1968_s0 = inlined_call_operand.vmem [shape: bf16[32,2048], index: 0, kind: input, shape index: {}]   ;;  %s1969_s1 = inlined_call_operand.vmem [shape: bf16[2048,256], index: 1, kind: input, shape index: {}]   ;;  %s1970_s2 = inlined_call_operand.vmem [shape: f32[1,256], index: 2, kind: input, shape index: {}]   ;;  %s1971_s3 = inlined_call_operand.vmem [shape: f32[1,256], index: 3, kind: input, shape index: {}]   ;;  %s1972_s4 = inlined_call_operand.vmem [shape: bf16[32,256], index: 4, kind: output, shape index: {}]  }
   0x1   :  { %1976 = sst [smem:[#allocation11_spill]] %s1968_s0 }
   0x2   :  { %1977 = sst [smem:[#allocation12_spill]] %s1969_s1 }
   0x3   :  { %1978 = sst [smem:[#allocation13_spill]] %s1972_s4 }
   0x4   :  { %s1577_s15 = smov 0   ;;  %s1579_s16 = smov 0  }
   0x5   :  { %s1581_s17 = smov 0   ;;  %s1583_s18 = smov 0  }
   0x6   :  { %s1585_s19 = smov 0   ;;  %s1587_s20 = smov 0  }
   0x7   :  { %s1589_s21 = smov 0   ;;  %s1591_s22 = smov 0  }
   0x8   :  { %s1593_s23 = smov 0   ;;  %s1595_s24 = smov 0  }
   0x9   :  { %s1597_s25 = smov 0   ;;  %s1599_s26 = smov 0  }
   0xa   :  { %s1601_s27 = smov 0  }
   0xb LB: > { %1979 = sst [smem:[#allocation6_spill]] %s1525_s21  ;;  %s26_s29 = sadd.s32 1, %s1537_s24  ;;  %s1549_s27 = sphi %s1601_s27, %s14_s27   ;;  %s1545_s26 = sphi %s1599_s26, %s2010_s26   ;;  %s1541_s25 = sphi %s1597_s25, %s2009_s25   ;;  %s1537_s24 = sphi %s1595_s24, %s2008_s24   ;;  %s1533_s23 = sphi %s1593_s23, %s2007_s23   ;;  %s1529_s22 = sphi %s1591_s22, %s2006_s22   ;;  %s1525_s21 = sphi %s1589_s21, %s2005_s21   ;;  %s1521_s20 = sphi %s1587_s20, %s2004_s20   ;;  %s1517_s19 = sphi %s1585_s19, %s2003_s19   ;;  %s1513_s18 = sphi %s1583_s18, %s2002_s18   ;;  %s1509_s17 = sphi %s1581_s17, %s2001_s17   ;;  %s1505_s16 = sphi %s1579_s16, %s2000_s16   ;;  %s1501_s15 = sphi %s1577_s15, %s1999_s15  }
   0xc   : > { %1980 = sst [smem:[#allocation7_spill]] %s1533_s23  ;;  %p27_p0 = scmp.ge.s32.totalorder %s26_s29, 4 }
   0xd   : > { %s29_s30 = sadd.s32 1, %s1541_s25  ;;  %s33_s5 = sadd.s32 1, %s1545_s26 }
   0xe   : > { %s42_s6 = sadd.s32 1, %s1521_s20  ;;  %s2012_s29 = smov (%p27_p0, %s26_s29), 0 }
   0xf   : > { %1981 = sst [smem:[#allocation8_spill]] %s2012_s29  ;;  %s2014_s30 = smov (!%p27_p0, %s29_s30), %s1541_s25 }
  0x10   : > { %s38_s7 = ssub.s32 %s1537_s24, %s2012_s29  ;;  %p49_p1 = scmp.ne.s32.totalorder %s1521_s20, %s1517_s19 }
  0x11   : > { %p31_p2 = scmp.ge.s32.totalorder %s2014_s30, 2  ;;  %p50_p3 = scmp.eq.s32.totalorder %s1549_s27, 0 }
  0x12   : > { %s70_s8 = sadd.s32 1, %s1513_s18  ;;  %p77_p4 = scmp.ne.s32.totalorder %s1513_s18, %s1509_s17 }
  0x13   : > { %s2016_s30 = smov (%p31_p2, %s2014_s30), 0  ;;  %s2018_s5 = smov (!%p31_p2, %s33_s5), %s1545_s26 }
  0x14   : > { %1982 = sst [smem:[#allocation9_spill]] %s2016_s30  ;;  %p1661_p5 = por %p50_p3, %p49_p1 }
  0x15   : > { %s66_s10 = ssub.s32 %s1541_s25, %s2016_s30  ;;  %p35_p6 = scmp.ge.s32.totalorder %s2018_s5, 2 }
  0x16   : > { %s67_s11 = sor.u32 %s66_s10, %s38_s7  ;;  %p1667_p8 = por %p77_p4, %p50_p3 }
  0x17   : > { %p68_p7 = scmp.eq.s32.totalorder %s67_s11, 0  ;;  %s2020_s5 = smov (%p35_p6, %s2018_s5), 0 }
  0x18   : > { %1985 = sst [smem:[#allocation10_spill]] %s2020_s5  ;;  %s37_s14 = ssub.s32 %s1545_s26, %s2020_s5 }
  0x19   : > { %s1674_s13 = scalar_select %p68_p7, %s1513_s18, %s70_s8  }
  0x1a   : > { %s150_s28 = sadd.s32 1, %s1505_s16  ;;  %s39_s29 = sor.u32 %s38_s7, %s37_s14 }
  0x1b   : > { %s147_s4 = sor.u32 %s66_s10, %s37_s14  ;;  %p40_p9 = scmp.eq.s32.totalorder %s39_s29, 0 }
  0x1c   : > { %p148_p10 = scmp.eq.s32.totalorder %s147_s4, 0  ;;  %p160_p11 = scmp.ne.s32.totalorder %s1505_s16, %s1501_s15 }
  0x1d   : > { %s1986_s30 = sadd.s32 4294967295, %s1549_s27   ;;  %p1188_p0 = scmp.ge.s32.totalorder %s1549_s27, 16 }
  0x1e   : > { %p161_p12 = scmp.eq.s32.totalorder %s1986_s30, 15 }
  0x1f   : > { %s1684_s23 = scalar_select %p40_p9, %s1521_s20, %s42_s6  }
  0x20   : > { %s1687_s11 = scalar_select %p148_p10, %s1505_s16, %s150_s28  }
  0x21   : > { %p1689_p13 = por %p161_p12, %p160_p11  ;;  %183 = sbr.rel (%p1188_p0) target bundleno = 102 (0x66), region = 16 }
  0x26   : > { %186 = sbr.rel (!%p1661_p5) target bundleno = 50 (0x32), region = 20  ;;  %s188_s4 = sand.u32 (%p1661_p5), 1, %s1521_s20  }
  0x27   : > { %s1191_s29 = sshll.u32 (%p1661_p5), %s1537_s24, 2  ;;  %s1189_s30 = sshll.u32 (%p1661_p5), %s188_s4, 5 }
  0x28   : > { %s1250_s6 = sshll.u32 (%p1661_p5), %s1545_s26, 5  ;;  %s1988_s0 = sld [smem:[#allocation11_spill]] (%p1661_p5) }
  0x29   : > { %s194_s7 = sadd.s32 (%p1661_p5), %s1250_s6, %s1191_s29  ;;  %s190_s5 = scalar_lea.vmem (%p1661_p5), [#allocation3], %s1189_s30 }
  0x2a   : > { %s1193_s28 = sshll.u32 (%p1661_p5), %s194_s7, 2 }
  0x2e   : > { %s196_s14 = scalar_lea.vmem %s1988_s0, %s1193_s28 }
  0x2f   : > { %v209_v0 = vld [vmem:[%s196_s14] sm:$0xff]  ;;  %v211_v1 = vld [vmem:[%s196_s14 + $0x8] sm:$0xff] }
  0x30   : > { %v213_v2 = vld [vmem:[%s196_s14 + $0x40] sm:$0xff]  ;;  %210 = vst [vmem:[%s190_s5] sm:$0xff] %v209_v0  ;;  %212 = vst [vmem:[%s190_s5 + $0x8] sm:$0xff] %v211_v1  ;;  %v215_v3 = vld [vmem:[%s196_s14 + $0x48] sm:$0xff] }
  0x31   : > { %214 = vst [vmem:[%s190_s5 + $0x10] sm:$0xff] %v213_v2  ;;  %216 = vst [vmem:[%s190_s5 + $0x18] sm:$0xff] %v215_v3 }
  0x32 PF: > { %222 = sbr.rel (!%p1667_p8) target bundleno = 102 (0x66), region = 43  ;;  %s224_s9 = sand.u32 (%p1667_p8), 1, %s1513_s18  }
  0x33   : > { %s1251_s4 = sshll.u32 (%p1667_p8), %s1537_s24, 7  ;;  %s1194_s29 = sshll.u32 (%p1667_p8), %s224_s9, 8 }
  0x34   : > { %s229_s6 = sadd.s32 (%p1667_p8), %s1541_s25, %s1251_s4  ;;  %s1989_s1 = sld [smem:[#allocation12_spill]] (%p1667_p8) }
  0x35   : > { %s1197_s7 = sshll.u32 (%p1667_p8), %s229_s6, 2  ;;  %s1715_s5 = scalar_lea.vmem (%p1667_p8), [#allocation4], %s1194_s29 }
  0x3a   : > { %s1710_s30 = scalar_lea.vmem %s1989_s1, %s1197_s7 }
  0x3b   : > { %v248_v4 = vld [vmem:[%s1710_s30] sm:$0xf]  ;;  %v250_v5 = vld [vmem:[%s1710_s30 + $0x8] sm:$0xf]  ;;  %v252_v6 = vld [vmem:[%s1710_s30 + $0x10] sm:$0xf] }
  0x3c   : > { %249 = vst [vmem:[%s1715_s5] sm:$0xf] %v248_v4  ;;  %251 = vst [vmem:[%s1715_s5 + $0x4] sm:$0xf] %v250_v5  ;;  %v254_v7 = vld [vmem:[%s1710_s30 + $0x18] sm:$0xf] }
  0x3d   : > { %253 = vst [vmem:[%s1715_s5 + $0x8] sm:$0xf] %v252_v6  ;;  %v256_v8 = vld [vmem:[%s1710_s30 + $0x20] sm:$0xf]  ;;  %v258_v9 = vld [vmem:[%s1710_s30 + $0x28] sm:$0xf] }
  0x3e   : > { %255 = vst [vmem:[%s1715_s5 + $0xc] sm:$0xf] %v254_v7  ;;  %257 = vst [vmem:[%s1715_s5 + $0x10] sm:$0xf] %v256_v8  ;;  %v260_v10 = vld [vmem:[%s1710_s30 + $0x30] sm:$0xf] }
  0x3f   : > { %259 = vst [vmem:[%s1715_s5 + $0x14] sm:$0xf] %v258_v9  ;;  %v262_v11 = vld [vmem:[%s1710_s30 + $0x38] sm:$0xf]  ;;  %v264_v12 = vld [vmem:[%s1710_s30 + $0x40] sm:$0xf] }
  0x40   : > { %261 = vst [vmem:[%s1715_s5 + $0x18] sm:$0xf] %v260_v10  ;;  %263 = vst [vmem:[%s1715_s5 + $0x1c] sm:$0xf] %v262_v11  ;;  %v266_v13 = vld [vmem:[%s1710_s30 + $0x48] sm:$0xf] }
  0x41   : > { %265 = vst [vmem:[%s1715_s5 + $0x20] sm:$0xf] %v264_v12  ;;  %v268_v14 = vld [vmem:[%s1710_s30 + $0x50] sm:$0xf]  ;;  %v270_v15 = vld [vmem:[%s1710_s30 + $0x58] sm:$0xf] }
  0x42   : > { %267 = vst [vmem:[%s1715_s5 + $0x24] sm:$0xf] %v266_v13  ;;  %269 = vst [vmem:[%s1715_s5 + $0x28] sm:$0xf] %v268_v14  ;;  %v272_v16 = vld [vmem:[%s1710_s30 + $0x60] sm:$0xf] }
  0x43   : > { %271 = vst [vmem:[%s1715_s5 + $0x2c] sm:$0xf] %v270_v15  ;;  %v274_v17 = vld [vmem:[%s1710_s30 + $0x68] sm:$0xf]  ;;  %v276_v18 = vld [vmem:[%s1710_s30 + $0x70] sm:$0xf] }
  0x44   : > { %273 = vst [vmem:[%s1715_s5 + $0x30] sm:$0xf] %v272_v16  ;;  %275 = vst [vmem:[%s1715_s5 + $0x34] sm:$0xf] %v274_v17  ;;  %v278_v19 = vld [vmem:[%s1710_s30 + $0x78] sm:$0xf] }
  0x45   : > { %277 = vst [vmem:[%s1715_s5 + $0x38] sm:$0xf] %v276_v18  ;;  %v280_v20 = vld [vmem:[%s1710_s30 + $0x80] sm:$0xf]  ;;  %v282_v21 = vld [vmem:[%s1710_s30 + $0x88] sm:$0xf] }
  0x46   : > { %279 = vst [vmem:[%s1715_s5 + $0x3c] sm:$0xf] %v278_v19  ;;  %281 = vst [vmem:[%s1715_s5 + $0x40] sm:$0xf] %v280_v20  ;;  %v284_v22 = vld [vmem:[%s1710_s30 + $0x90] sm:$0xf] }
  0x47   : > { %283 = vst [vmem:[%s1715_s5 + $0x44] sm:$0xf] %v282_v21  ;;  %v286_v23 = vld [vmem:[%s1710_s30 + $0x98] sm:$0xf]  ;;  %v288_v24 = vld [vmem:[%s1710_s30 + $0xa0] sm:$0xf] }
  0x48   : > { %285 = vst [vmem:[%s1715_s5 + $0x48] sm:$0xf] %v284_v22  ;;  %287 = vst [vmem:[%s1715_s5 + $0x4c] sm:$0xf] %v286_v23  ;;  %v290_v25 = vld [vmem:[%s1710_s30 + $0xa8] sm:$0xf] }
  0x49   : > { %289 = vst [vmem:[%s1715_s5 + $0x50] sm:$0xf] %v288_v24  ;;  %v292_v26 = vld [vmem:[%s1710_s30 + $0xb0] sm:$0xf]  ;;  %v294_v27 = vld [vmem:[%s1710_s30 + $0xb8] sm:$0xf] }
  0x4a   : > { %291 = vst [vmem:[%s1715_s5 + $0x54] sm:$0xf] %v290_v25  ;;  %293 = vst [vmem:[%s1715_s5 + $0x58] sm:$0xf] %v292_v26  ;;  %v296_v28 = vld [vmem:[%s1710_s30 + $0xc0] sm:$0xf] }
  0x4b   : > { %295 = vst [vmem:[%s1715_s5 + $0x5c] sm:$0xf] %v294_v27  ;;  %v298_v29 = vld [vmem:[%s1710_s30 + $0xc8] sm:$0xf]  ;;  %v300_v30 = vld [vmem:[%s1710_s30 + $0xd0] sm:$0xf] }
  0x4c   : > { %297 = vst [vmem:[%s1715_s5 + $0x60] sm:$0xf] %v296_v28  ;;  %299 = vst [vmem:[%s1715_s5 + $0x64] sm:$0xf] %v298_v29  ;;  %v302_v31 = vld [vmem:[%s1710_s30 + $0xd8] sm:$0xf] }
  0x4d   : > { %301 = vst [vmem:[%s1715_s5 + $0x68] sm:$0xf] %v300_v30  ;;  %v304_v32 = vld [vmem:[%s1710_s30 + $0xe0] sm:$0xf]  ;;  %v306_v33 = vld [vmem:[%s1710_s30 + $0xe8] sm:$0xf] }
  0x4e   : > { %303 = vst [vmem:[%s1715_s5 + $0x6c] sm:$0xf] %v302_v31  ;;  %305 = vst [vmem:[%s1715_s5 + $0x70] sm:$0xf] %v304_v32  ;;  %v308_v34 = vld [vmem:[%s1710_s30 + $0xf0] sm:$0xf] }
  0x4f   : > { %307 = vst [vmem:[%s1715_s5 + $0x74] sm:$0xf] %v306_v33  ;;  %v310_v35 = vld [vmem:[%s1710_s30 + $0xf8] sm:$0xf]  ;;  %v312_v36 = vld [vmem:[%s1710_s30 + $0x100] sm:$0xf] }
  0x50   : > { %309 = vst [vmem:[%s1715_s5 + $0x78] sm:$0xf] %v308_v34  ;;  %311 = vst [vmem:[%s1715_s5 + $0x7c] sm:$0xf] %v310_v35  ;;  %v314_v37 = vld [vmem:[%s1710_s30 + $0x108] sm:$0xf] }
  0x51   : > { %313 = vst [vmem:[%s1715_s5 + $0x80] sm:$0xf] %v312_v36  ;;  %v316_v38 = vld [vmem:[%s1710_s30 + $0x110] sm:$0xf]  ;;  %v318_v39 = vld [vmem:[%s1710_s30 + $0x118] sm:$0xf] }
  0x52   : > { %315 = vst [vmem:[%s1715_s5 + $0x84] sm:$0xf] %v314_v37  ;;  %317 = vst [vmem:[%s1715_s5 + $0x88] sm:$0xf] %v316_v38  ;;  %v320_v40 = vld [vmem:[%s1710_s30 + $0x120] sm:$0xf] }
  0x53   : > { %319 = vst [vmem:[%s1715_s5 + $0x8c] sm:$0xf] %v318_v39  ;;  %v322_v41 = vld [vmem:[%s1710_s30 + $0x128] sm:$0xf]  ;;  %v324_v42 = vld [vmem:[%s1710_s30 + $0x130] sm:$0xf] }
  0x54   : > { %321 = vst [vmem:[%s1715_s5 + $0x90] sm:$0xf] %v320_v40  ;;  %323 = vst [vmem:[%s1715_s5 + $0x94] sm:$0xf] %v322_v41  ;;  %v326_v43 = vld [vmem:[%s1710_s30 + $0x138] sm:$0xf] }
  0x55   : > { %325 = vst [vmem:[%s1715_s5 + $0x98] sm:$0xf] %v324_v42  ;;  %v328_v44 = vld [vmem:[%s1710_s30 + $0x140] sm:$0xf]  ;;  %v330_v45 = vld [vmem:[%s1710_s30 + $0x148] sm:$0xf] }
  0x56   : > { %327 = vst [vmem:[%s1715_s5 + $0x9c] sm:$0xf] %v326_v43  ;;  %329 = vst [vmem:[%s1715_s5 + $0xa0] sm:$0xf] %v328_v44  ;;  %v332_v46 = vld [vmem:[%s1710_s30 + $0x150] sm:$0xf] }
  0x57   : > { %331 = vst [vmem:[%s1715_s5 + $0xa4] sm:$0xf] %v330_v45  ;;  %v334_v47 = vld [vmem:[%s1710_s30 + $0x158] sm:$0xf]  ;;  %v336_v48 = vld [vmem:[%s1710_s30 + $0x160] sm:$0xf] }
  0x58   : > { %333 = vst [vmem:[%s1715_s5 + $0xa8] sm:$0xf] %v332_v46  ;;  %335 = vst [vmem:[%s1715_s5 + $0xac] sm:$0xf] %v334_v47  ;;  %v338_v49 = vld [vmem:[%s1710_s30 + $0x168] sm:$0xf] }
  0x59   : > { %337 = vst [vmem:[%s1715_s5 + $0xb0] sm:$0xf] %v336_v48  ;;  %v340_v50 = vld [vmem:[%s1710_s30 + $0x170] sm:$0xf]  ;;  %v342_v51 = vld [vmem:[%s1710_s30 + $0x178] sm:$0xf] }
  0x5a   : > { %339 = vst [vmem:[%s1715_s5 + $0xb4] sm:$0xf] %v338_v49  ;;  %341 = vst [vmem:[%s1715_s5 + $0xb8] sm:$0xf] %v340_v50  ;;  %v344_v52 = vld [vmem:[%s1710_s30 + $0x180] sm:$0xf] }
  0x5b   : > { %343 = vst [vmem:[%s1715_s5 + $0xbc] sm:$0xf] %v342_v51  ;;  %v346_v53 = vld [vmem:[%s1710_s30 + $0x188] sm:$0xf]  ;;  %v348_v54 = vld [vmem:[%s1710_s30 + $0x190] sm:$0xf] }
  0x5c   : > { %345 = vst [vmem:[%s1715_s5 + $0xc0] sm:$0xf] %v344_v52  ;;  %347 = vst [vmem:[%s1715_s5 + $0xc4] sm:$0xf] %v346_v53  ;;  %v350_v55 = vld [vmem:[%s1710_s30 + $0x198] sm:$0xf] }
  0x5d   : > { %349 = vst [vmem:[%s1715_s5 + $0xc8] sm:$0xf] %v348_v54  ;;  %v352_v56 = vld [vmem:[%s1710_s30 + $0x1a0] sm:$0xf]  ;;  %v354_v57 = vld [vmem:[%s1710_s30 + $0x1a8] sm:$0xf] }
  0x5e   : > { %351 = vst [vmem:[%s1715_s5 + $0xcc] sm:$0xf] %v350_v55  ;;  %353 = vst [vmem:[%s1715_s5 + $0xd0] sm:$0xf] %v352_v56  ;;  %v356_v58 = vld [vmem:[%s1710_s30 + $0x1b0] sm:$0xf] }
  0x5f   : > { %355 = vst [vmem:[%s1715_s5 + $0xd4] sm:$0xf] %v354_v57  ;;  %v358_v59 = vld [vmem:[%s1710_s30 + $0x1b8] sm:$0xf]  ;;  %v360_v60 = vld [vmem:[%s1710_s30 + $0x1c0] sm:$0xf] }
  0x60   : > { %357 = vst [vmem:[%s1715_s5 + $0xd8] sm:$0xf] %v356_v58  ;;  %359 = vst [vmem:[%s1715_s5 + $0xdc] sm:$0xf] %v358_v59  ;;  %v362_v61 = vld [vmem:[%s1710_s30 + $0x1c8] sm:$0xf] }
  0x61   : > { %361 = vst [vmem:[%s1715_s5 + $0xe0] sm:$0xf] %v360_v60  ;;  %v364_v62 = vld [vmem:[%s1710_s30 + $0x1d0] sm:$0xf]  ;;  %v366_v63 = vld [vmem:[%s1710_s30 + $0x1d8] sm:$0xf] }
  0x62   : > { %363 = vst [vmem:[%s1715_s5 + $0xe4] sm:$0xf] %v362_v61  ;;  %365 = vst [vmem:[%s1715_s5 + $0xe8] sm:$0xf] %v364_v62  ;;  %v368_v0 = vld [vmem:[%s1710_s30 + $0x1e0] sm:$0xf] }
  0x63   : > { %367 = vst [vmem:[%s1715_s5 + $0xec] sm:$0xf] %v366_v63  ;;  %v370_v1 = vld [vmem:[%s1710_s30 + $0x1e8] sm:$0xf]  ;;  %v372_v2 = vld [vmem:[%s1710_s30 + $0x1f0] sm:$0xf] }
  0x64   : > { %369 = vst [vmem:[%s1715_s5 + $0xf0] sm:$0xf] %v368_v0  ;;  %371 = vst [vmem:[%s1715_s5 + $0xf4] sm:$0xf] %v370_v1  ;;  %v374_v3 = vld [vmem:[%s1710_s30 + $0x1f8] sm:$0xf] }
  0x65   : > { %373 = vst [vmem:[%s1715_s5 + $0xf8] sm:$0xf] %v372_v2  ;;  %375 = vst [vmem:[%s1715_s5 + $0xfc] sm:$0xf] %v374_v3 }
  0x66 PF: > { %p1198_p1 = scmp.ge.s32.totalorder %s1549_s27, 1  ;;  %p538_p2 = scmp.lt.s32.totalorder %s1549_s27, 17 }
  0x68   : > { %p539_p3 = pnand %p1198_p1, %p538_p2 }
  0x69   : > { %s545_s12 = sand.u32 (!%p539_p3), 1, %s1517_s19   ;;  %s552_s10 = sand.u32 (!%p539_p3), 1, %s1509_s17  }
  0x6a   : > { %542 = sbr.rel (%p539_p3) target bundleno = 394 (0x18a), region = 92  ;;  %s1199_s14 = sshll.u32 (!%p539_p3), %s545_s12, 5 }
  0x6b   : > { %s1200_s9 = sshll.u32 (!%p539_p3), %s552_s10, 8  ;;  %s583_s4 = sand.u32 (!%p539_p3), 1, %s1501_s15  }
  0x6c   : > { %p589_p4 = scmp.lt.s32.totalorder (!%p539_p3), %s1529_s22, 1  ;;  %s1201_s29 = sshll.u32 (!%p539_p3), %s583_s4, 3 }
  0x6d   : > { %s1859_s1 = scalar_lea.vmem (!%p539_p3), [#allocation3], %s1199_s14  ;;  %s1861_s17 = scalar_lea.vmem (!%p539_p3), [#allocation4], %s1200_s9 }
  0x6e   : > { %s1863_s19 = scalar_lea.vmem (!%p539_p3), [#allocation5], %s1201_s29  ;;  %s1990_s15 = sld [smem:[#allocation6_spill]] (!%p539_p3) }
  0x6f   : > { %s1849_s6 = scalar_select %p589_p4, %s1529_s22, 1 }
  0x71   : > { %s591_s8 = scalar_lea.vmem %s1970_s2, %s1849_s6  ;;  %s594_s0 = scalar_lea.vmem %s1971_s3, %s1849_s6 }
  0x74   : > { %p1202_p5 = scmp.ne.s32.totalorder %s1990_s15, 0 }
  0x76   : > { %600 = sbr.rel (%p1202_p5) target bundleno = 125 (0x7d), region = 104 }
  0x7b   : > { %v1551_v4 = vmov 0.0  }
  0x7c   : > { %601 = vst [vmem:[#allocation2] sm:$0xff] %v1551_v4  ;;  %602 = vst [vmem:[#allocation2 + $0x8] sm:$0xff] %v1551_v4 }
  0x7d PF: > { %v1409_v5 = vld [vmem:[%s1861_s17 + $0x78] sm:$0xff]   ;;  %v1413_v9 = vld [vmem:[%s1861_s17 + $0x70] sm:$0xff]   ;;  %v1417_v13 = vld [vmem:[%s1861_s17 + $0x68] sm:$0xff]  }
  0x7e   : > { %v1410_v6 = vld [vmem:[%s1861_s17 + $0xf8] sm:$0xff]   ;;  %1260 = vmatprep.subr.bf16.mxu0 %v1409_v5  ;;  %v1414_v10 = vld [vmem:[%s1861_s17 + $0xf0] sm:$0xff]   ;;  %v1418_v14 = vld [vmem:[%s1861_s17 + $0xe8] sm:$0xff]  }
  0x7f   : > { %v1411_v7 = vld [vmem:[%s1861_s17 + $0x38] sm:$0xff]   ;;  %1282 = vmatprep.subr.bf16.mxu1 %v1410_v6  ;;  %v1415_v11 = vld [vmem:[%s1861_s17 + $0x30] sm:$0xff]   ;;  %v1419_v15 = vld [vmem:[%s1861_s17 + $0x28] sm:$0xff]  }
  0x80   : > { %v1412_v8 = vld [vmem:[%s1861_s17 + $0xb8] sm:$0xff]   ;;  %1261 = vmatpush3.bf16.msra.mxu0 %v1411_v7  ;;  %v1416_v12 = vld [vmem:[%s1861_s17 + $0xb0] sm:$0xff]   ;;  %v1420_v16 = vld [vmem:[%s1861_s17 + $0xa8] sm:$0xff]  }
  0x81   : > { %1283 = vmatpush3.bf16.msra.mxu1 %v1412_v8  ;;  %1262 = vmatprep.subr.bf16.mxu0 %v1413_v9  ;;  %v1421_v17 = vld [vmem:[%s1861_s17 + $0x60] sm:$0xff]   ;;  %v1425_v21 = vld [vmem:[%s1861_s17 + $0x58] sm:$0xff]   ;;  %v1429_v25 = vld [vmem:[%s1861_s17 + $0x50] sm:$0xff]  }
  0x82   : > { %1284 = vmatprep.subr.bf16.mxu1 %v1414_v10  ;;  %v1422_v18 = vld [vmem:[%s1861_s17 + $0xe0] sm:$0xff]   ;;  %v1426_v22 = vld [vmem:[%s1861_s17 + $0xd8] sm:$0xff]   ;;  %v1430_v26 = vld [vmem:[%s1861_s17 + $0xd0] sm:$0xff]  }
  0x83   : > { %v1423_v19 = vld [vmem:[%s1861_s17 + $0x20] sm:$0xff]   ;;  %v1427_v23 = vld [vmem:[%s1861_s17 + $0x18] sm:$0xff]   ;;  %v1431_v27 = vld [vmem:[%s1861_s17 + $0x10] sm:$0xff]  }
  0x84   : > { %1263 = vmatpush3.bf16.msra.mxu0 %v1415_v11  ;;  %v1424_v20 = vld [vmem:[%s1861_s17 + $0xa0] sm:$0xff]   ;;  %v1428_v24 = vld [vmem:[%s1861_s17 + $0x98] sm:$0xff]   ;;  %v1432_v28 = vld [vmem:[%s1861_s17 + $0x90] sm:$0xff]  }
  0x85   : > { %1285 = vmatpush3.bf16.msra.mxu1 %v1416_v12  ;;  %1264 = vmatprep.subr.bf16.mxu0 %v1417_v13  ;;  %v1433_v29 = vld [vmem:[%s1861_s17 + $0x48] sm:$0xff]   ;;  %v1437_v33 = vld [vmem:[%s1861_s17 + $0x40] sm:$0xff]   ;;  %v603_v48 = vld [vmem:[#allocation2] sm:$0xff] }
  0x86   : > { %1286 = vmatprep.subr.bf16.mxu1 %v1418_v14  ;;  %v1434_v30 = vld [vmem:[%s1861_s17 + $0xc8] sm:$0xff]   ;;  %v1438_v34 = vld [vmem:[%s1861_s17 + $0xc0] sm:$0xff]   ;;  %v604_v56 = vld [vmem:[#allocation2 + $0x8] sm:$0xff] }
  0x87   : > { %v1435_v31 = vld [vmem:[%s1861_s17 + $0x8] sm:$0xff]   ;;  %v1439_v35 = vld [vmem:[%s1861_s17] sm:$0xff]  }
  0x88   : > { %1265 = vmatpush3.bf16.msra.mxu0 %v1419_v15  ;;  %v1436_v32 = vld [vmem:[%s1861_s17 + $0x88] sm:$0xff]   ;;  %v1440_v36 = vld [vmem:[%s1861_s17 + $0x80] sm:$0xff]  }
  0x89   : > { %1287 = vmatpush3.bf16.msra.mxu1 %v1420_v16  ;;  %1266 = vmatprep.subr.bf16.mxu0 %v1421_v17  ;;  %v1441_v37 = vld [vmem:[%s1859_s1] ss:$16 sps:$4 sm:$0xff]   ;;  %v1443_v38 = vld [vmem:[%s1859_s1 + $0x4] ss:$16 sps:$4 sm:$0xff]   ;;  %v1444_v39 = vld [vmem:[%s1859_s1 + $0x8] ss:$16 sps:$4 sm:$0xff]  }
  0x8a   : > { %1288 = vmatprep.subr.bf16.mxu1 %v1422_v18  ;;  %v1446_v40 = vld [vmem:[%s1859_s1 + $0xc] ss:$16 sps:$4 sm:$0xff]   ;;  %917 = vmatprep.mubr.bf16.mxu0 %v1443_v38  ;;  %s1991_s1 = sld [smem:[#allocation6_spill]] }
  0x8b   : > { %958 = vmatprep.mubr.bf16.mxu1 %v1446_v40 }
  0x8c   : > { %1267 = vmatpush3.bf16.msra.mxu0 %v1423_v19 }
  0x8d   : > { %1289 = vmatpush3.bf16.msra.mxu1 %v1424_v20  ;;  %1268 = vmatprep.subr.bf16.mxu0 %v1425_v21 }
  0x8e   : > { %1290 = vmatprep.subr.bf16.mxu1 %v1426_v22 }
  0x90   : > { %1269 = vmatpush3.bf16.msra.mxu0 %v1427_v23  ;;  %p1239_p6 = scmp.ne.s32.totalorder %s1991_s1, 3 }
  0x91   : > { %1291 = vmatpush3.bf16.msra.mxu1 %v1428_v24  ;;  %1270 = vmatprep.subr.bf16.mxu0 %v1429_v25 }
  0x92   : > { %1292 = vmatprep.subr.bf16.mxu1 %v1430_v26 }
  0x94   : > { %1271 = vmatpush3.bf16.msra.mxu0 %v1431_v27 }
  0x95   : > { %1293 = vmatpush3.bf16.msra.mxu1 %v1432_v28  ;;  %1272 = vmatprep.subr.bf16.mxu0 %v1433_v29 }
  0x96   : > { %1294 = vmatprep.subr.bf16.mxu1 %v1434_v30 }
  0x98   : > { %1273 = vmatpush3.bf16.msra.mxu0 %v1435_v31 }
  0x99   : > { %1295 = vmatpush3.bf16.msra.mxu1 %v1436_v32  ;;  %1274 = vmatprep.subr.bf16.mxu0 %v1437_v33 }
  0x9a   : > { %1296 = vmatprep.subr.bf16.mxu1 %v1438_v34 }
  0x9c   : > { %1275 = vmatpush3.bf16.msra.mxu0 %v1439_v35 }
  0x9d   : > { %1297 = vmatpush3.bf16.msra.mxu1 %v1440_v36 }
  0x9f   : > { %918 = vmatmul.mubr.bf16.vlgmr.msra.gmra.mxu0 %v1441_v37 }
  0xa0   : > { %959 = vmatmul.mubr.bf16.vlgmr.msra.gmra.mxu1 %v1444_v39 }
 0x15f   : > { %v1276_v41 = vpop.f32.mrf.mxu0 }
 0x160   : > { %v1298_v42 = vpop.f32.mrf.mxu1 }
 0x161   : > { %v1277_v43 = vpop.f32.mrf.mxu0 }
 0x162   : > { %v1278_v44 = vadd.f32 %v1277_v43, %v1276_v41  ;;  %v1299_v45 = vpop.f32.mrf.mxu1 }
 0x163   : > { %v1300_v46 = vadd.f32 %v1299_v45, %v1298_v42  ;;  %v1279_v47 = vpop.f32.mrf.mxu0 }
 0x164   : > { %v1301_v49 = vpop.f32.mrf.mxu1 }
 0x165   : > { %v961_v50 = vadd.f32 %v1300_v46, %v1278_v44  ;;  %v1280_v51 = vpop.f32.mrf.mxu0 }
 0x166   : > { %v1281_v52 = vadd.f32 %v1280_v51, %v1279_v47  ;;  %v1302_v53 = vpop.f32.mrf.mxu1 }
 0x167   : > { %v967_v54 = vadd.f32 %v961_v50, %v603_v48  ;;  %v1303_v55 = vadd.f32 %v1302_v53, %v1301_v49 }
 0x169   : > { %969 = vst [vmem:[#allocation2] sm:$0xff] %v967_v54  ;;  %v964_v57 = vadd.f32 %v1303_v55, %v1281_v52  ;;  %974 = sbr.rel (%p1239_p6) target bundleno = 383 (0x17f), region = 108 }
 0x16b   : > { %v968_v58 = vadd.f32 %v964_v57, %v604_v56 }
 0x16d   : > { %970 = vst [vmem:[#allocation2 + $0x8] sm:$0xff] %v968_v58 }
 0x16e   : > { %v1240_v61 = vld [vmem:[%s591_s8] ss:$0 sm:$0xff] }
 0x16f   : > { %v1241_v0 = vld [vmem:[%s594_s0] ss:$0 sm:$0xff] }
 0x170   : > { %v975_v59 = vld [vmem:[#allocation2] sm:$0xff] }
 0x171   : > { %v984_v62 = vmul.f32 %v1240_v61, %v975_v59 }
 0x173   : > { %v993_v1 = vadd.f32 %v1241_v0, %v984_v62 }
 0x174   : > { %v976_v60 = vld [vmem:[#allocation2 + $0x8] sm:$0xff] }
 0x175   : > { %v985_v63 = vmul.f32 %v1240_v61, %v976_v60  ;;  %vm995_vm0 = vcmp.gt.f32.partialorder %v993_v1, 0.0  ;;  %v997_v3 = vmul.f32 0.2, %v993_v1 }
 0x177   : > { %v994_v2 = vadd.f32 %v1241_v0, %v985_v63  ;;  %v999_v5 = vsel %vm995_vm0, %v993_v1, %v997_v3 }
 0x179   : > { %vm996_vm1 = vcmp.gt.f32.partialorder %v994_v2, 0.0  ;;  %v998_v4 = vmul.f32 0.2, %v994_v2 }
 0x17b   : > { %v1000_v6 = vsel %vm996_vm1, %v994_v2, %v998_v4 }
 0x17c   : > { %v1258_v7 = vpack.c.bf16 %v1000_v6, %v999_v5 }
 0x17e   : > { %1259 = vst [vmem:[%s1863_s19] sm:$0xff] %v1258_v7  }
 0x17f PF: > { %1017 = sbr.rel (!%p1689_p13) target bundleno = 394 (0x18a), region = 112  ;;  %s1992_s4 = sld [smem:[#allocation7_spill]] (%p1689_p13) }
 0x180   : > { %s1993_s8 = sld [smem:[#allocation13_spill]] (%p1689_p13) }
 0x185   : > { %s1254_s29 = sshll.u32 %s1992_s4, 2  ;;  %v1039_v8 = vld [vmem:[%s1863_s19] sm:$0xf]  ;;  %v1041_v9 = vld [vmem:[%s1863_s19 + $0x4] sm:$0xf] }
 0x186   : > { %s1020_s0 = sadd.s32 %s1529_s22, %s1254_s29 }
 0x187   : > { %s1247_s6 = sshll.u32 %s1020_s0, 2 }
 0x188   : > { %s1022_s30 = scalar_lea.vmem %s1993_s8, %s1247_s6 }
 0x189   : > { %1040 = vst [vmem:[%s1022_s30] sm:$0xf] %v1039_v8  ;;  %1042 = vst [vmem:[%s1022_s30 + $0x8] sm:$0xf] %v1041_v9 }
 0x18a PF: > { %s14_s27 = sadd.s32 1, %s1549_s27   ;;  %s1995_s5 = sld [smem:[#allocation8_spill]] }
 0x18b   : > { %p1924_p7 = scmp.ge.s32.totalorder %s14_s27, 18   ;;  %s1996_s1 = sld [smem:[#allocation9_spill]] }
 0x18c   : > { %s1997_s12 = sld [smem:[#allocation10_spill]]  ;;  %s1999_s15 = smov %s1505_s16 }
 0x18d   : > { %s2000_s16 = smov %s1687_s11  ;;  %s2001_s17 = smov %s1513_s18 }
 0x18e   : > { %s2002_s18 = smov %s1674_s13  ;;  %s2003_s19 = smov %s1521_s20 }
 0x18f   : > { %s2004_s20 = smov %s1684_s23  ;;  %s2005_s21 = smov %s1537_s24 }
 0x190   : > { %s2006_s22 = smov %s1541_s25  ;;  %s2007_s23 = smov %s1545_s26 }
 0x191   : > { %s2008_s24 = smov %s1995_s5  ;;  %s2009_s25 = smov %s1996_s1 }
 0x192   : > { %s2010_s26 = smov %s1997_s12  ;;  %13 = sbr.rel (!%p1924_p7) target bundleno = 11 (0xb), region = 198 }

// kernel: discriminator_forward.7
= control target key start
LH: loop header
LB: loop body
LE: loop exit
PB: predicated region body
PF: predicated region fallthrough
CT: control target
= control target key end

     0   :  { %s2143_s0 = inlined_call_operand.vmem [shape: bf16[16,4096], index: 0, kind: input, shape index: {}]   ;;  %s2144_s1 = inlined_call_operand.vmem [shape: bf16[4096,512], index: 1, kind: input, shape index: {}]   ;;  %s2145_s2 = inlined_call_operand.vmem [shape: f32[1,512], index: 2, kind: input, shape index: {}]   ;;  %s2146_s3 = inlined_call_operand.vmem [shape: f32[1,512], index: 3, kind: input, shape index: {}]   ;;  %s2147_s4 = inlined_call_operand.vmem [shape: bf16[16,512], index: 4, kind: output, shape index: {}]  }
   0x1   :  { %2150 = sst [smem:[#allocation8_spill]] %s2143_s0 }
   0x2   :  { %2151 = sst [smem:[#allocation9_spill]] %s2144_s1 }
   0x3   :  { %s1752_s15 = smov 0   ;;  %s1754_s16 = smov 0  }
   0x4   :  { %s1756_s17 = smov 0   ;;  %s1758_s18 = smov 0  }
   0x5   :  { %s1760_s19 = smov 0   ;;  %s1762_s20 = smov 0  }
   0x6   :  { %s1764_s21 = smov 0   ;;  %s1766_s22 = smov 0  }
   0x7   :  { %s1768_s23 = smov 0   ;;  %s1770_s24 = smov 0  }
   0x8   :  { %s1772_s25 = smov 0  }
   0x9 LB: > { %s1347_s26 = sadd.s32 4294967295, %s1724_s25   ;;  %s26_s27 = sadd.s32 1, %s1716_s23  ;;  %s1724_s25 = sphi %s1772_s25, %s14_s25   ;;  %s1720_s24 = sphi %s1770_s24, %s2170_s24   ;;  %s1716_s23 = sphi %s1768_s23, %s2169_s23   ;;  %s1712_s22 = sphi %s1766_s22, %s2168_s22   ;;  %s1708_s21 = sphi %s1764_s21, %s2167_s21   ;;  %s1704_s20 = sphi %s1762_s20, %s2166_s20   ;;  %s1700_s19 = sphi %s1760_s19, %s2165_s19   ;;  %s1696_s18 = sphi %s1758_s18, %s2164_s18   ;;  %s1692_s17 = sphi %s1756_s17, %s2163_s17   ;;  %s1688_s16 = sphi %s1754_s16, %s2162_s16   ;;  %s1684_s15 = sphi %s1752_s15, %s2161_s15  }
   0xa   : > { %p27_p0 = scmp.ge.s32.totalorder %s26_s27, 8  ;;  %s29_s28 = sadd.s32 1, %s1720_s24 }
   0xb   : > { %s42_s29 = sadd.s32 1, %s1704_s20  ;;  %p49_p1 = scmp.ne.s32.totalorder %s1704_s20, %s1700_s19 }
   0xc   : > { %s2172_s27 = smov (%p27_p0, %s26_s27), 0  ;;  %s2174_s28 = smov (!%p27_p0, %s29_s28), %s1720_s24 }
   0xd   : > { %2152 = sst [smem:[#allocation6_spill]] %s2172_s27  ;;  %s38_s30 = ssub.s32 %s1716_s23, %s2172_s27 }
   0xe   : > { %p50_p2 = scmp.eq.s32.totalorder %s1724_s25, 0  ;;  %p31_p3 = scmp.ge.s32.totalorder %s2174_s28, 2 }
   0xf   : > { %p40_p4 = scmp.eq.s32.totalorder %s38_s30, 0  ;;  %s70_s6 = sadd.s32 1, %s1696_s18 }
  0x10   : > { %p1819_p5 = por %p50_p2, %p49_p1  ;;  %s2176_s28 = smov (%p31_p3, %s2174_s28), 0 }
  0x11   : > { %2154 = sst [smem:[#allocation7_spill]] %s2176_s28  ;;  %s66_s8 = ssub.s32 %s1720_s24, %s2176_s28 }
  0x12   : > { %s1827_s7 = scalar_select %p40_p4, %s1704_s20, %s42_s29  }
  0x13   : > { %p77_p6 = scmp.ne.s32.totalorder %s1696_s18, %s1692_s17  ;;  %s67_s9 = sor.u32 %s66_s8, %s38_s30 }
  0x14   : > { %p148_p7 = scmp.eq.s32.totalorder %s66_s8, 0  ;;  %p68_p8 = scmp.eq.s32.totalorder %s67_s9, 0 }
  0x15   : > { %p1833_p9 = por %p77_p6, %p50_p2  ;;  %s150_s11 = sadd.s32 1, %s1688_s16 }
  0x16   : > { %p160_p10 = scmp.ne.s32.totalorder %s1688_s16, %s1684_s15  ;;  %p161_p11 = scmp.eq.s32.totalorder %s1347_s26, 15 }
  0x17   : > { %s1841_s12 = scalar_select %p68_p8, %s1696_s18, %s70_s6  }
  0x18   : > { %s1844_s13 = scalar_select %p148_p7, %s1688_s16, %s150_s11  }
  0x19   : > { %p1846_p12 = por %p161_p11, %p160_p10  ;;  %p1350_p13 = scmp.ge.s32.totalorder %s1724_s25, 16 }
  0x1b   : > { %183 = sbr.rel (%p1350_p13) target bundleno = 86 (0x56), region = 16 }
  0x20   : > { %186 = sbr.rel (!%p1819_p5) target bundleno = 44 (0x2c), region = 20  ;;  %s188_s29 = sand.u32 (%p1819_p5), 1, %s1704_s20  }
  0x21   : > { %s1442_s30 = sshll.u32 (%p1819_p5), %s1716_s23, 4  ;;  %s1351_s8 = sshll.u32 (%p1819_p5), %s188_s29, 5 }
  0x22   : > { %s2157_s0 = sld [smem:[#allocation8_spill]] (%p1819_p5)  ;;  %s190_s26 = scalar_lea.vmem (%p1819_p5), [#allocation3], %s1351_s8 }
  0x28   : > { %s196_s11 = scalar_lea.vmem %s2157_s0, %s1442_s30 }
  0x29   : > { %v209_v0 = vld [vmem:[%s196_s11] sm:$0xff]  ;;  %v211_v1 = vld [vmem:[%s196_s11 + $0x8] sm:$0xff] }
  0x2a   : > { %v213_v2 = vld [vmem:[%s196_s11 + $0x80] sm:$0xff]  ;;  %210 = vst [vmem:[%s190_s26] sm:$0xff] %v209_v0  ;;  %212 = vst [vmem:[%s190_s26 + $0x8] sm:$0xff] %v211_v1  ;;  %v215_v3 = vld [vmem:[%s196_s11 + $0x88] sm:$0xff] }
  0x2b   : > { %214 = vst [vmem:[%s190_s26 + $0x10] sm:$0xff] %v213_v2  ;;  %216 = vst [vmem:[%s190_s26 + $0x18] sm:$0xff] %v215_v3 }
  0x2c PF: > { %222 = sbr.rel (!%p1833_p9) target bundleno = 86 (0x56), region = 43  ;;  %s224_s5 = sand.u32 (%p1833_p9), 1, %s1696_s18  }
  0x2d   : > { %s1356_s29 = sshll.u32 (%p1833_p9), %s1720_s24, 1  ;;  %s1354_s6 = sshll.u32 (%p1833_p9), %s224_s5, 9 }
  0x2e   : > { %s1443_s30 = sshll.u32 (%p1833_p9), %s1716_s23, 8  ;;  %s2158_s1 = sld [smem:[#allocation9_spill]] (%p1833_p9) }
  0x2f   : > { %s230_s9 = sadd.s32 (%p1833_p9), %s1443_s30, %s1356_s29  ;;  %s1871_s10 = scalar_lea.vmem (%p1833_p9), [#allocation4], %s1354_s6 }
  0x30   : > { %s1358_s0 = sshll.u32 (%p1833_p9), %s230_s9, 2 }
  0x34   : > { %s1866_s27 = scalar_lea.vmem %s2158_s1, %s1358_s0 }
  0x35   : > { %v387_v4 = vld [vmem:[%s1866_s27] sm:$0xff]  ;;  %v389_v5 = vld [vmem:[%s1866_s27 + $0x10] sm:$0xff] }
  0x36   : > { %v391_v6 = vld [vmem:[%s1866_s27 + $0x20] sm:$0xff]  ;;  %388 = vst [vmem:[%s1871_s10] sm:$0xff] %v387_v4  ;;  %390 = vst [vmem:[%s1871_s10 + $0x8] sm:$0xff] %v389_v5  ;;  %v393_v7 = vld [vmem:[%s1866_s27 + $0x30] sm:$0xff] }
  0x37   : > { %392 = vst [vmem:[%s1871_s10 + $0x10] sm:$0xff] %v391_v6  ;;  %v395_v8 = vld [vmem:[%s1866_s27 + $0x40] sm:$0xff]  ;;  %v397_v9 = vld [vmem:[%s1866_s27 + $0x50] sm:$0xff]  ;;  %394 = vst [vmem:[%s1871_s10 + $0x18] sm:$0xff] %v393_v7 }
  0x38   : > { %396 = vst [vmem:[%s1871_s10 + $0x20] sm:$0xff] %v395_v8  ;;  %398 = vst [vmem:[%s1871_s10 + $0x28] sm:$0xff] %v397_v9  ;;  %v399_v10 = vld [vmem:[%s1866_s27 + $0x60] sm:$0xff]  ;;  %v401_v11 = vld [vmem:[%s1866_s27 + $0x70] sm:$0xff] }
  0x39   : > { %v403_v12 = vld [vmem:[%s1866_s27 + $0x80] sm:$0xff]  ;;  %400 = vst [vmem:[%s1871_s10 + $0x30] sm:$0xff] %v399_v10  ;;  %402 = vst [vmem:[%s1871_s10 + $0x38] sm:$0xff] %v401_v11  ;;  %v405_v13 = vld [vmem:[%s1866_s27 + $0x90] sm:$0xff] }
  0x3a   : > { %404 = vst [vmem:[%s1871_s10 + $0x40] sm:$0xff] %v403_v12  ;;  %v407_v14 = vld [vmem:[%s1866_s27 + $0xa0] sm:$0xff]  ;;  %v409_v15 = vld [vmem:[%s1866_s27 + $0xb0] sm:$0xff]  ;;  %406 = vst [vmem:[%s1871_s10 + $0x48] sm:$0xff] %v405_v13 }
  0x3b   : > { %408 = vst [vmem:[%s1871_s10 + $0x50] sm:$0xff] %v407_v14  ;;  %410 = vst [vmem:[%s1871_s10 + $0x58] sm:$0xff] %v409_v15  ;;  %v411_v16 = vld [vmem:[%s1866_s27 + $0xc0] sm:$0xff]  ;;  %v413_v17 = vld [vmem:[%s1866_s27 + $0xd0] sm:$0xff] }
  0x3c   : > { %v415_v18 = vld [vmem:[%s1866_s27 + $0xe0] sm:$0xff]  ;;  %412 = vst [vmem:[%s1871_s10 + $0x60] sm:$0xff] %v411_v16  ;;  %414 = vst [vmem:[%s1871_s10 + $0x68] sm:$0xff] %v413_v17  ;;  %v417_v19 = vld [vmem:[%s1866_s27 + $0xf0] sm:$0xff] }
  0x3d   : > { %416 = vst [vmem:[%s1871_s10 + $0x70] sm:$0xff] %v415_v18  ;;  %v419_v20 = vld [vmem:[%s1866_s27 + $0x100] sm:$0xff]  ;;  %v421_v21 = vld [vmem:[%s1866_s27 + $0x110] sm:$0xff]  ;;  %418 = vst [vmem:[%s1871_s10 + $0x78] sm:$0xff] %v417_v19 }
  0x3e   : > { %420 = vst [vmem:[%s1871_s10 + $0x80] sm:$0xff] %v419_v20  ;;  %422 = vst [vmem:[%s1871_s10 + $0x88] sm:$0xff] %v421_v21  ;;  %v423_v22 = vld [vmem:[%s1866_s27 + $0x120] sm:$0xff]  ;;  %v425_v23 = vld [vmem:[%s1866_s27 + $0x130] sm:$0xff] }
  0x3f   : > { %v427_v24 = vld [vmem:[%s1866_s27 + $0x140] sm:$0xff]  ;;  %424 = vst [vmem:[%s1871_s10 + $0x90] sm:$0xff] %v423_v22  ;;  %426 = vst [vmem:[%s1871_s10 + $0x98] sm:$0xff] %v425_v23  ;;  %v429_v25 = vld [vmem:[%s1866_s27 + $0x150] sm:$0xff] }
  0x40   : > { %428 = vst [vmem:[%s1871_s10 + $0xa0] sm:$0xff] %v427_v24  ;;  %v431_v26 = vld [vmem:[%s1866_s27 + $0x160] sm:$0xff]  ;;  %v433_v27 = vld [vmem:[%s1866_s27 + $0x170] sm:$0xff]  ;;  %430 = vst [vmem:[%s1871_s10 + $0xa8] sm:$0xff] %v429_v25 }
  0x41   : > { %432 = vst [vmem:[%s1871_s10 + $0xb0] sm:$0xff] %v431_v26  ;;  %434 = vst [vmem:[%s1871_s10 + $0xb8] sm:$0xff] %v433_v27  ;;  %v435_v28 = vld [vmem:[%s1866_s27 + $0x180] sm:$0xff]  ;;  %v437_v29 = vld [vmem:[%s1866_s27 + $0x190] sm:$0xff] }
  0x42   : > { %v439_v30 = vld [vmem:[%s1866_s27 + $0x1a0] sm:$0xff]  ;;  %436 = vst [vmem:[%s1871_s10 + $0xc0] sm:$0xff] %v435_v28  ;;  %438 = vst [vmem:[%s1871_s10 + $0xc8] sm:$0xff] %v437_v29  ;;  %v441_v31 = vld [vmem:[%s1866_s27 + $0x1b0] sm:$0xff] }
  0x43   : > { %440 = vst [vmem:[%s1871_s10 + $0xd0] sm:$0xff] %v439_v30  ;;  %v443_v32 = vld [vmem:[%s1866_s27 + $0x1c0] sm:$0xff]  ;;  %v445_v33 = vld [vmem:[%s1866_s27 + $0x1d0] sm:$0xff]  ;;  %442 = vst [vmem:[%s1871_s10 + $0xd8] sm:$0xff] %v441_v31 }
  0x44   : > { %444 = vst [vmem:[%s1871_s10 + $0xe0] sm:$0xff] %v443_v32  ;;  %446 = vst [vmem:[%s1871_s10 + $0xe8] sm:$0xff] %v445_v33  ;;  %v447_v34 = vld [vmem:[%s1866_s27 + $0x1e0] sm:$0xff]  ;;  %v449_v35 = vld [vmem:[%s1866_s27 + $0x1f0] sm:$0xff] }
  0x45   : > { %v451_v36 = vld [vmem:[%s1866_s27 + $0x200] sm:$0xff]  ;;  %448 = vst [vmem:[%s1871_s10 + $0xf0] sm:$0xff] %v447_v34  ;;  %450 = vst [vmem:[%s1871_s10 + $0xf8] sm:$0xff] %v449_v35  ;;  %v453_v37 = vld [vmem:[%s1866_s27 + $0x210] sm:$0xff] }
  0x46   : > { %452 = vst [vmem:[%s1871_s10 + $0x100] sm:$0xff] %v451_v36  ;;  %v455_v38 = vld [vmem:[%s1866_s27 + $0x220] sm:$0xff]  ;;  %v457_v39 = vld [vmem:[%s1866_s27 + $0x230] sm:$0xff]  ;;  %454 = vst [vmem:[%s1871_s10 + $0x108] sm:$0xff] %v453_v37 }
  0x47   : > { %456 = vst [vmem:[%s1871_s10 + $0x110] sm:$0xff] %v455_v38  ;;  %458 = vst [vmem:[%s1871_s10 + $0x118] sm:$0xff] %v457_v39  ;;  %v459_v40 = vld [vmem:[%s1866_s27 + $0x240] sm:$0xff]  ;;  %v461_v41 = vld [vmem:[%s1866_s27 + $0x250] sm:$0xff] }
  0x48   : > { %v463_v42 = vld [vmem:[%s1866_s27 + $0x260] sm:$0xff]  ;;  %460 = vst [vmem:[%s1871_s10 + $0x120] sm:$0xff] %v459_v40  ;;  %462 = vst [vmem:[%s1871_s10 + $0x128] sm:$0xff] %v461_v41  ;;  %v465_v43 = vld [vmem:[%s1866_s27 + $0x270] sm:$0xff] }
  0x49   : > { %464 = vst [vmem:[%s1871_s10 + $0x130] sm:$0xff] %v463_v42  ;;  %v467_v44 = vld [vmem:[%s1866_s27 + $0x280] sm:$0xff]  ;;  %v469_v45 = vld [vmem:[%s1866_s27 + $0x290] sm:$0xff]  ;;  %466 = vst [vmem:[%s1871_s10 + $0x138] sm:$0xff] %v465_v43 }
  0x4a   : > { %468 = vst [vmem:[%s1871_s10 + $0x140] sm:$0xff] %v467_v44  ;;  %470 = vst [vmem:[%s1871_s10 + $0x148] sm:$0xff] %v469_v45  ;;  %v471_v46 = vld [vmem:[%s1866_s27 + $0x2a0] sm:$0xff]  ;;  %v473_v47 = vld [vmem:[%s1866_s27 + $0x2b0] sm:$0xff] }
  0x4b   : > { %v475_v48 = vld [vmem:[%s1866_s27 + $0x2c0] sm:$0xff]  ;;  %472 = vst [vmem:[%s1871_s10 + $0x150] sm:$0xff] %v471_v46  ;;  %474 = vst [vmem:[%s1871_s10 + $0x158] sm:$0xff] %v473_v47  ;;  %v477_v49 = vld [vmem:[%s1866_s27 + $0x2d0] sm:$0xff] }
  0x4c   : > { %476 = vst [vmem:[%s1871_s10 + $0x160] sm:$0xff] %v475_v48  ;;  %v479_v50 = vld [vmem:[%s1866_s27 + $0x2e0] sm:$0xff]  ;;  %v481_v51 = vld [vmem:[%s1866_s27 + $0x2f0] sm:$0xff]  ;;  %478 = vst [vmem:[%s1871_s10 + $0x168] sm:$0xff] %v477_v49 }
  0x4d   : > { %480 = vst [vmem:[%s1871_s10 + $0x170] sm:$0xff] %v479_v50  ;;  %482 = vst [vmem:[%s1871_s10 + $0x178] sm:$0xff] %v481_v51  ;;  %v483_v52 = vld [vmem:[%s1866_s27 + $0x300] sm:$0xff]  ;;  %v485_v53 = vld [vmem:[%s1866_s27 + $0x310] sm:$0xff] }
  0x4e   : > { %v487_v54 = vld [vmem:[%s1866_s27 + $0x320] sm:$0xff]  ;;  %484 = vst [vmem:[%s1871_s10 + $0x180] sm:$0xff] %v483_v52  ;;  %486 = vst [vmem:[%s1871_s10 + $0x188] sm:$0xff] %v485_v53  ;;  %v489_v55 = vld [vmem:[%s1866_s27 + $0x330] sm:$0xff] }
  0x4f   : > { %488 = vst [vmem:[%s1871_s10 + $0x190] sm:$0xff] %v487_v54  ;;  %v491_v56 = vld [vmem:[%s1866_s27 + $0x340] sm:$0xff]  ;;  %v493_v57 = vld [vmem:[%s1866_s27 + $0x350] sm:$0xff]  ;;  %490 = vst [vmem:[%s1871_s10 + $0x198] sm:$0xff] %v489_v55 }
  0x50   : > { %492 = vst [vmem:[%s1871_s10 + $0x1a0] sm:$0xff] %v491_v56  ;;  %494 = vst [vmem:[%s1871_s10 + $0x1a8] sm:$0xff] %v493_v57  ;;  %v495_v58 = vld [vmem:[%s1866_s27 + $0x360] sm:$0xff]  ;;  %v497_v59 = vld [vmem:[%s1866_s27 + $0x370] sm:$0xff] }
  0x51   : > { %v499_v60 = vld [vmem:[%s1866_s27 + $0x380] sm:$0xff]  ;;  %496 = vst [vmem:[%s1871_s10 + $0x1b0] sm:$0xff] %v495_v58  ;;  %498 = vst [vmem:[%s1871_s10 + $0x1b8] sm:$0xff] %v497_v59  ;;  %v501_v61 = vld [vmem:[%s1866_s27 + $0x390] sm:$0xff] }
  0x52   : > { %500 = vst [vmem:[%s1871_s10 + $0x1c0] sm:$0xff] %v499_v60  ;;  %v503_v62 = vld [vmem:[%s1866_s27 + $0x3a0] sm:$0xff]  ;;  %v505_v63 = vld [vmem:[%s1866_s27 + $0x3b0] sm:$0xff]  ;;  %502 = vst [vmem:[%s1871_s10 + $0x1c8] sm:$0xff] %v501_v61 }
  0x53   : > { %504 = vst [vmem:[%s1871_s10 + $0x1d0] sm:$0xff] %v503_v62  ;;  %506 = vst [vmem:[%s1871_s10 + $0x1d8] sm:$0xff] %v505_v63  ;;  %v507_v0 = vld [vmem:[%s1866_s27 + $0x3c0] sm:$0xff]  ;;  %v509_v1 = vld [vmem:[%s1866_s27 + $0x3d0] sm:$0xff] }
  0x54   : > { %v511_v2 = vld [vmem:[%s1866_s27 + $0x3e0] sm:$0xff]  ;;  %508 = vst [vmem:[%s1871_s10 + $0x1e0] sm:$0xff] %v507_v0  ;;  %510 = vst [vmem:[%s1871_s10 + $0x1e8] sm:$0xff] %v509_v1  ;;  %v513_v3 = vld [vmem:[%s1866_s27 + $0x3f0] sm:$0xff] }
  0x55   : > { %512 = vst [vmem:[%s1871_s10 + $0x1f0] sm:$0xff] %v511_v2  ;;  %514 = vst [vmem:[%s1871_s10 + $0x1f8] sm:$0xff] %v513_v3 }
  0x56 PF: > { %p1359_p0 = scmp.ge.s32.totalorder %s1724_s25, 1  ;;  %p535_p1 = scmp.lt.s32.totalorder %s1724_s25, 17 }
  0x58   : > { %p536_p2 = pnand %p1359_p0, %p535_p1 }
  0x59   : > { %s542_s0 = sand.u32 (!%p536_p2), 1, %s1700_s19   ;;  %s549_s28 = sand.u32 (!%p536_p2), 1, %s1692_s17  }
  0x5a   : > { %539 = sbr.rel (%p536_p2) target bundleno = 402 (0x192), region = 89  ;;  %s1360_s11 = sshll.u32 (!%p536_p2), %s542_s0, 5 }
  0x5b   : > { %s1361_s26 = sshll.u32 (!%p536_p2), %s549_s28, 9  ;;  %s582_s5 = sand.u32 (!%p536_p2), 1, %s1684_s15  }
  0x5c   : > { %s1363_s29 = sshll.u32 (!%p536_p2), %s1712_s22, 1  ;;  %s1362_s27 = sshll.u32 (!%p536_p2), %s582_s5, 4 }
  0x5d   : > { %p590_p3 = scmp.lt.s32.totalorder (!%p536_p2), %s1363_s29, 3  ;;  %s2014_s19 = scalar_lea.vmem (!%p536_p2), [#allocation3], %s1360_s11 }
  0x5e   : > { %s2016_s17 = scalar_lea.vmem (!%p536_p2), [#allocation4], %s1361_s26  ;;  %s2018_s15 = scalar_lea.vmem (!%p536_p2), [#allocation5], %s1362_s27 }
  0x5f   : > { %s2178_s29 = smov (!%p590_p3, %s1363_s29), 3  ;;  %p1365_p4 = scmp.ne.s32.totalorder %s1708_s21, 0 }
  0x60   : > { %s592_s9 = scalar_lea.vmem %s2145_s2, %s2178_s29  ;;  %s597_s1 = scalar_lea.vmem %s2146_s3, %s2178_s29 }
  0x61   : > { %604 = sbr.rel (%p1365_p4) target bundleno = 105 (0x69), region = 101 }
  0x66   : > { %v1726_v4 = vmov 0.0  }
  0x67   : > { %605 = vst [vmem:[#allocation2 + $0x10] sm:$0xff] %v1726_v4  ;;  %606 = vst [vmem:[#allocation2] sm:$0xff] %v1726_v4 }
  0x68   : > { %607 = vst [vmem:[#allocation2 + $0x18] sm:$0xff] %v1726_v4  ;;  %608 = vst [vmem:[#allocation2 + $0x8] sm:$0xff] %v1726_v4 }
  0x69 PF: > { %v1536_v5 = vld [vmem:[%s2016_s17 + $0x74] ss:$8 sps:$4 sm:$0xff]   ;;  %v1540_v7 = vld [vmem:[%s2016_s17 + $0x70] ss:$8 sps:$4 sm:$0xff]   ;;  %v1542_v9 = vld [vmem:[%s2016_s17 + $0x64] ss:$8 sps:$4 sm:$0xff]  }
  0x6a   : > { %v1538_v6 = vld [vmem:[%s2016_s17 + $0x174] ss:$8 sps:$4 sm:$0xff]   ;;  %1021 = vmatprep.subr.bf16.mxu0 %v1536_v5  ;;  %v1541_v8 = vld [vmem:[%s2016_s17 + $0x170] ss:$8 sps:$4 sm:$0xff]   ;;  %v1544_v10 = vld [vmem:[%s2016_s17 + $0x164] ss:$8 sps:$4 sm:$0xff]  }
  0x6b   : > { %1064 = vmatprep.subr.bf16.mxu1 %v1538_v6  ;;  %1022 = vmatpush1.bf16.msra.mxu0 %v1540_v7  ;;  %v1546_v11 = vld [vmem:[%s2016_s17 + $0x60] ss:$8 sps:$4 sm:$0xff]   ;;  %v1548_v13 = vld [vmem:[%s2016_s17 + $0x54] ss:$8 sps:$4 sm:$0xff]   ;;  %v1552_v15 = vld [vmem:[%s2016_s17 + $0x50] ss:$8 sps:$4 sm:$0xff]  }
  0x6c   : > { %1065 = vmatpush1.bf16.msra.mxu1 %v1541_v8  ;;  %1023 = vmatprep.subr.bf16.mxu0 %v1542_v9  ;;  %v1547_v12 = vld [vmem:[%s2016_s17 + $0x160] ss:$8 sps:$4 sm:$0xff]   ;;  %v1550_v14 = vld [vmem:[%s2016_s17 + $0x154] ss:$8 sps:$4 sm:$0xff]   ;;  %v1553_v16 = vld [vmem:[%s2016_s17 + $0x150] ss:$8 sps:$4 sm:$0xff]  }
  0x6d   : > { %1066 = vmatprep.subr.bf16.mxu1 %v1544_v10  ;;  %v1554_v17 = vld [vmem:[%s2016_s17 + $0x44] ss:$8 sps:$4 sm:$0xff]   ;;  %v1558_v19 = vld [vmem:[%s2016_s17 + $0x40] ss:$8 sps:$4 sm:$0xff]   ;;  %v1560_v21 = vld [vmem:[%s2016_s17 + $0x34] ss:$8 sps:$4 sm:$0xff]  }
  0x6e   : > { %v1556_v18 = vld [vmem:[%s2016_s17 + $0x144] ss:$8 sps:$4 sm:$0xff]   ;;  %v1559_v20 = vld [vmem:[%s2016_s17 + $0x140] ss:$8 sps:$4 sm:$0xff]   ;;  %v1562_v22 = vld [vmem:[%s2016_s17 + $0x134] ss:$8 sps:$4 sm:$0xff]  }
  0x6f   : > { %1024 = vmatpush1.bf16.msra.mxu0 %v1546_v11  ;;  %v1564_v23 = vld [vmem:[%s2016_s17 + $0x30] ss:$8 sps:$4 sm:$0xff]   ;;  %v1566_v25 = vld [vmem:[%s2016_s17 + $0x24] ss:$8 sps:$4 sm:$0xff]   ;;  %v1570_v27 = vld [vmem:[%s2016_s17 + $0x20] ss:$8 sps:$4 sm:$0xff]  }
  0x70   : > { %1067 = vmatpush1.bf16.msra.mxu1 %v1547_v12  ;;  %1025 = vmatprep.subr.bf16.mxu0 %v1548_v13  ;;  %v1565_v24 = vld [vmem:[%s2016_s17 + $0x130] ss:$8 sps:$4 sm:$0xff]   ;;  %v1568_v26 = vld [vmem:[%s2016_s17 + $0x124] ss:$8 sps:$4 sm:$0xff]   ;;  %v1571_v28 = vld [vmem:[%s2016_s17 + $0x120] ss:$8 sps:$4 sm:$0xff]  }
  0x71   : > { %1068 = vmatprep.subr.bf16.mxu1 %v1550_v14  ;;  %v1572_v29 = vld [vmem:[%s2016_s17 + $0x14] ss:$8 sps:$4 sm:$0xff]   ;;  %v1576_v31 = vld [vmem:[%s2016_s17 + $0x10] ss:$8 sps:$4 sm:$0xff]   ;;  %v1578_v33 = vld [vmem:[%s2016_s17 + $0x4] ss:$8 sps:$4 sm:$0xff]  }
  0x72   : > { %v1574_v30 = vld [vmem:[%s2016_s17 + $0x114] ss:$8 sps:$4 sm:$0xff]   ;;  %v1577_v32 = vld [vmem:[%s2016_s17 + $0x110] ss:$8 sps:$4 sm:$0xff]   ;;  %v1580_v34 = vld [vmem:[%s2016_s17 + $0x104] ss:$8 sps:$4 sm:$0xff]  }
  0x73   : > { %1026 = vmatpush1.bf16.msra.mxu0 %v1552_v15  ;;  %v1582_v35 = vld [vmem:[%s2016_s17] ss:$8 sps:$4 sm:$0xff]   ;;  %v1584_v37 = vld [vmem:[%s2016_s17 + $0xf4] ss:$8 sps:$4 sm:$0xff]   ;;  %v1588_v39 = vld [vmem:[%s2016_s17 + $0xf0] ss:$8 sps:$4 sm:$0xff]  }
  0x74   : > { %1069 = vmatpush1.bf16.msra.mxu1 %v1553_v16  ;;  %1027 = vmatprep.subr.bf16.mxu0 %v1554_v17  ;;  %v1583_v36 = vld [vmem:[%s2016_s17 + $0x100] ss:$8 sps:$4 sm:$0xff]   ;;  %v1586_v38 = vld [vmem:[%s2016_s17 + $0x1f4] ss:$8 sps:$4 sm:$0xff]   ;;  %v1589_v40 = vld [vmem:[%s2016_s17 + $0x1f0] ss:$8 sps:$4 sm:$0xff]  }
  0x75   : > { %1070 = vmatprep.subr.bf16.mxu1 %v1556_v18  ;;  %v1590_v41 = vld [vmem:[%s2016_s17 + $0xe4] ss:$8 sps:$4 sm:$0xff]   ;;  %v1594_v43 = vld [vmem:[%s2016_s17 + $0xe0] ss:$8 sps:$4 sm:$0xff]   ;;  %v1596_v45 = vld [vmem:[%s2016_s17 + $0xd4] ss:$8 sps:$4 sm:$0xff]  }
  0x76   : > { %v1592_v42 = vld [vmem:[%s2016_s17 + $0x1e4] ss:$8 sps:$4 sm:$0xff]   ;;  %v1595_v44 = vld [vmem:[%s2016_s17 + $0x1e0] ss:$8 sps:$4 sm:$0xff]   ;;  %v1598_v46 = vld [vmem:[%s2016_s17 + $0x1d4] ss:$8 sps:$4 sm:$0xff]  }
  0x77   : > { %1028 = vmatpush1.bf16.msra.mxu0 %v1558_v19  ;;  %v1600_v47 = vld [vmem:[%s2016_s17 + $0xd0] ss:$8 sps:$4 sm:$0xff]   ;;  %v1602_v49 = vld [vmem:[%s2016_s17 + $0xc4] ss:$8 sps:$4 sm:$0xff]   ;;  %v1606_v51 = vld [vmem:[%s2016_s17 + $0xc0] ss:$8 sps:$4 sm:$0xff]  }
  0x78   : > { %1071 = vmatpush1.bf16.msra.mxu1 %v1559_v20  ;;  %1029 = vmatprep.subr.bf16.mxu0 %v1560_v21  ;;  %v1601_v48 = vld [vmem:[%s2016_s17 + $0x1d0] ss:$8 sps:$4 sm:$0xff]   ;;  %v1604_v50 = vld [vmem:[%s2016_s17 + $0x1c4] ss:$8 sps:$4 sm:$0xff]   ;;  %v1607_v53 = vld [vmem:[%s2016_s17 + $0x1c0] ss:$8 sps:$4 sm:$0xff]  }
  0x79   : > { %1072 = vmatprep.subr.bf16.mxu1 %v1562_v22  ;;  %v1634_v52 = vld [vmem:[%s2014_s19 + $0x4] ss:$16 sps:$4 sm:$0xff]   ;;  %v1637_v56 = vld [vmem:[%s2014_s19 + $0xc] ss:$16 sps:$4 sm:$0xff]   ;;  %v1612_v57 = vld [vmem:[%s2016_s17 + $0xb0] ss:$8 sps:$4 sm:$0xff]  }
  0x7a   : > { %v1608_v54 = vld [vmem:[%s2016_s17 + $0xb4] ss:$8 sps:$4 sm:$0xff]   ;;  %1053 = vmatprep.mubr.bf16.mxu0 %v1634_v52  ;;  %1096 = vmatprep.mubr.bf16.mxu1 %v1637_v56  ;;  %v1613_v58 = vld [vmem:[%s2016_s17 + $0x1b0] ss:$8 sps:$4 sm:$0xff]   ;;  %v1614_v59 = vld [vmem:[%s2016_s17 + $0xa4] ss:$8 sps:$4 sm:$0xff]  }
  0x7b   : > { %1030 = vmatpush1.bf16.msra.mxu0 %v1564_v23  ;;  %v1610_v55 = vld [vmem:[%s2016_s17 + $0x1b4] ss:$8 sps:$4 sm:$0xff]   ;;  %v1616_v60 = vld [vmem:[%s2016_s17 + $0x1a4] ss:$8 sps:$4 sm:$0xff]   ;;  %v1618_v61 = vld [vmem:[%s2016_s17 + $0xa0] ss:$8 sps:$4 sm:$0xff]  }
  0x7c   : > { %1073 = vmatpush1.bf16.msra.mxu1 %v1565_v24  ;;  %1031 = vmatprep.subr.bf16.mxu0 %v1566_v25  ;;  %v1619_v62 = vld [vmem:[%s2016_s17 + $0x1a0] ss:$8 sps:$4 sm:$0xff]   ;;  %v1620_v63 = vld [vmem:[%s2016_s17 + $0x94] ss:$8 sps:$4 sm:$0xff]   ;;  %v1624_v1 = vld [vmem:[%s2016_s17 + $0x90] ss:$8 sps:$4 sm:$0xff]  }
  0x7d   : > { %1074 = vmatprep.subr.bf16.mxu1 %v1568_v26  ;;  %v1622_v0 = vld [vmem:[%s2016_s17 + $0x194] ss:$8 sps:$4 sm:$0xff]   ;;  %v1625_v2 = vld [vmem:[%s2016_s17 + $0x190] ss:$8 sps:$4 sm:$0xff]   ;;  %v1626_v3 = vld [vmem:[%s2016_s17 + $0x84] ss:$8 sps:$4 sm:$0xff]  }
  0x7e   : > { %v1628_v4 = vld [vmem:[%s2016_s17 + $0x184] ss:$8 sps:$4 sm:$0xff]   ;;  %v1630_v5 = vld [vmem:[%s2016_s17 + $0x80] ss:$8 sps:$4 sm:$0xff]   ;;  %v609_v10 = vld [vmem:[#allocation2 + $0x10] sm:$0xff]  ;;  %p1434_p5 = scmp.ne.s32.totalorder %s1708_s21, 7 }
  0x7f   : > { %1032 = vmatpush1.bf16.msra.mxu0 %v1570_v27  ;;  %v1631_v6 = vld [vmem:[%s2016_s17 + $0x180] ss:$8 sps:$4 sm:$0xff]   ;;  %v611_v19 = vld [vmem:[#allocation2 + $0x18] sm:$0xff] }
  0x80   : > { %1075 = vmatpush1.bf16.msra.mxu1 %v1571_v28  ;;  %1033 = vmatprep.subr.bf16.mxu0 %v1572_v29  ;;  %v1632_v7 = vld [vmem:[%s2014_s19] ss:$16 sps:$4 sm:$0xff]   ;;  %v1635_v8 = vld [vmem:[%s2014_s19 + $0x8] ss:$16 sps:$4 sm:$0xff]  }
  0x81   : > { %1076 = vmatprep.subr.bf16.mxu1 %v1574_v30  ;;  %v610_v14 = vld [vmem:[#allocation2] sm:$0xff]  ;;  %v612_v24 = vld [vmem:[#allocation2 + $0x8] sm:$0xff] }
  0x83   : > { %1034 = vmatpush1.bf16.msra.mxu0 %v1576_v31 }
  0x84   : > { %1077 = vmatpush1.bf16.msra.mxu1 %v1577_v32  ;;  %1035 = vmatprep.subr.bf16.mxu0 %v1578_v33 }
  0x85   : > { %1078 = vmatprep.subr.bf16.mxu1 %v1580_v34 }
  0x87   : > { %1036 = vmatpush1.bf16.msra.mxu0 %v1582_v35 }
  0x88   : > { %1079 = vmatpush1.bf16.msra.mxu1 %v1583_v36  ;;  %1037 = vmatprep.subr.bf16.mxu0 %v1584_v37 }
  0x89   : > { %1080 = vmatprep.subr.bf16.mxu1 %v1586_v38 }
  0x8b   : > { %1038 = vmatpush2.bf16.msra.mxu0 %v1588_v39 }
  0x8c   : > { %1081 = vmatpush2.bf16.msra.mxu1 %v1589_v40  ;;  %1039 = vmatprep.subr.bf16.mxu0 %v1590_v41 }
  0x8d   : > { %1082 = vmatprep.subr.bf16.mxu1 %v1592_v42 }
  0x8f   : > { %1040 = vmatpush2.bf16.msra.mxu0 %v1594_v43 }
  0x90   : > { %1083 = vmatpush2.bf16.msra.mxu1 %v1595_v44  ;;  %1041 = vmatprep.subr.bf16.mxu0 %v1596_v45 }
  0x91   : > { %1084 = vmatprep.subr.bf16.mxu1 %v1598_v46 }
  0x93   : > { %1042 = vmatpush2.bf16.msra.mxu0 %v1600_v47 }
  0x94   : > { %1085 = vmatpush2.bf16.msra.mxu1 %v1601_v48  ;;  %1043 = vmatprep.subr.bf16.mxu0 %v1602_v49 }
  0x95   : > { %1086 = vmatprep.subr.bf16.mxu1 %v1604_v50 }
  0x97   : > { %1044 = vmatpush2.bf16.msra.mxu0 %v1606_v51 }
  0x98   : > { %1087 = vmatpush2.bf16.msra.mxu1 %v1607_v53  ;;  %1045 = vmatprep.subr.bf16.mxu0 %v1608_v54 }
  0x99   : > { %1088 = vmatprep.subr.bf16.mxu1 %v1610_v55 }
  0x9b   : > { %1046 = vmatpush2.bf16.msra.mxu0 %v1612_v57 }
  0x9c   : > { %1089 = vmatpush2.bf16.msra.mxu1 %v1613_v58  ;;  %1047 = vmatprep.subr.bf16.mxu0 %v1614_v59 }
  0x9d   : > { %1090 = vmatprep.subr.bf16.mxu1 %v1616_v60 }
  0x9f   : > { %1048 = vmatpush2.bf16.msra.mxu0 %v1618_v61 }
  0xa0   : > { %1091 = vmatpush2.bf16.msra.mxu1 %v1619_v62  ;;  %1049 = vmatprep.subr.bf16.mxu0 %v1620_v63 }
  0xa1   : > { %1092 = vmatprep.subr.bf16.mxu1 %v1622_v0 }
  0xa3   : > { %1050 = vmatpush2.bf16.msra.mxu0 %v1624_v1 }
  0xa4   : > { %1093 = vmatpush2.bf16.msra.mxu1 %v1625_v2  ;;  %1051 = vmatprep.subr.bf16.mxu0 %v1626_v3 }
  0xa5   : > { %1094 = vmatprep.subr.bf16.mxu1 %v1628_v4 }
  0xa7   : > { %1052 = vmatpush2.bf16.msra.mxu0 %v1630_v5 }
  0xa8   : > { %1095 = vmatpush2.bf16.msra.mxu1 %v1631_v6 }
  0xaa   : > { %1054 = vmatmul.mubr.bf16.vlgmr.msra.gmra.mxu0 %v1632_v7 }
  0xab   : > { %1097 = vmatmul.mubr.bf16.vlgmr.msra.gmra.mxu1 %v1635_v8 }
 0x16a   : > { %v1055_v9 = vpop.f32.mrf.mxu0 }
 0x16b   : > { %v1098_v11 = vpop.f32.mrf.mxu1 }
 0x16c   : > { %v1099_v12 = vadd.f32 %v1098_v11, %v1055_v9  ;;  %v1057_v13 = vpop.f32.mrf.mxu0 }
 0x16d   : > { %v1100_v15 = vpop.f32.mrf.mxu1 }
 0x16e   : > { %v1107_v16 = vadd.f32 %v1099_v12, %v609_v10  ;;  %v1101_v17 = vadd.f32 %v1100_v15, %v1057_v13  ;;  %v1059_v18 = vpop.f32.mrf.mxu0 }
 0x16f   : > { %v1102_v20 = vpop.f32.mrf.mxu1 }
 0x170   : > { %1111 = vst [vmem:[#allocation2 + $0x10] sm:$0xff] %v1107_v16  ;;  %v1108_v21 = vadd.f32 %v1101_v17, %v610_v14  ;;  %v1103_v22 = vadd.f32 %v1102_v20, %v1059_v18  ;;  %v1061_v23 = vpop.f32.mrf.mxu0 }
 0x171   : > { %v1104_v25 = vpop.f32.mrf.mxu1 }
 0x172   : > { %1112 = vst [vmem:[#allocation2] sm:$0xff] %v1108_v21  ;;  %v1109_v26 = vadd.f32 %v1103_v22, %v611_v19  ;;  %v1105_v27 = vadd.f32 %v1104_v25, %v1061_v23  ;;  %1118 = sbr.rel (%p1434_p5) target bundleno = 394 (0x18a), region = 105 }
 0x174   : > { %1113 = vst [vmem:[#allocation2 + $0x18] sm:$0xff] %v1109_v26  ;;  %v1110_v28 = vadd.f32 %v1105_v27, %v612_v24 }
 0x176   : > { %1114 = vst [vmem:[#allocation2 + $0x8] sm:$0xff] %v1110_v28 }
 0x177   : > { %v1125_v29 = vlaneseq  ;;  %v1123_v31 = vld [vmem:[%s592_s9] sm:$0x3]  ;;  %v1119_v33 = vld [vmem:[#allocation2 + $0x10] sm:$0xff] }
 0x178   : > { %v1139_v32 = vld [vmem:[%s597_s1] sm:$0x3] }
 0x179   : > { %v1126_v30 = vshrl.u32 %v1125_v29, 7  ;;  %v1120_v36 = vld [vmem:[#allocation2] sm:$0xff] }
 0x17b   : > { %v1127_v34 = vsub.s32 0, %v1126_v30  ;;  %v1131_v35 = vsub.s32 1, %v1126_v30  ;;  %v1121_v37 = vld [vmem:[#allocation2 + $0x18] sm:$0xff] }
 0x17d   : > { %v1122_v38 = vld [vmem:[#allocation2 + $0x8] sm:$0xff]  ;;  %v1128_v39 = vrot.slane %v1123_v31, %v1127_v34  ;;  %v1132_v40 = vrot.slane %v1123_v31, %v1131_v35  ;;  %v1144_v41 = vrot.slane %v1139_v32, %v1127_v34  ;;  %v1148_v42 = vrot.slane %v1139_v32, %v1131_v35 }
 0x17f   : > { %v1135_v43 = vmul.f32 %v1128_v39, %v1119_v33  ;;  %v1136_v44 = vmul.f32 %v1132_v40, %v1120_v36  ;;  %v1137_v45 = vmul.f32 %v1128_v39, %v1121_v37  ;;  %v1138_v46 = vmul.f32 %v1132_v40, %v1122_v38 }
 0x181   : > { %v1151_v47 = vadd.f32 %v1144_v41, %v1135_v43  ;;  %v1152_v48 = vadd.f32 %v1148_v42, %v1136_v44  ;;  %v1153_v49 = vadd.f32 %v1144_v41, %v1137_v45  ;;  %v1154_v50 = vadd.f32 %v1148_v42, %v1138_v46 }
 0x183   : > { %vm1155_vm0 = vcmp.gt.f32.partialorder %v1151_v47, 0.0  ;;  %vm1156_vm1 = vcmp.gt.f32.partialorder %v1152_v48, 0.0  ;;  %v1159_v51 = vmul.f32 0.2, %v1151_v47  ;;  %v1160_v52 = vmul.f32 0.2, %v1152_v48 }
 0x184   : > { %vm1157_vm2 = vcmp.gt.f32.partialorder %v1153_v49, 0.0  ;;  %vm1158_vm3 = vcmp.gt.f32.partialorder %v1154_v50, 0.0  ;;  %v1161_v53 = vmul.f32 0.2, %v1153_v49  ;;  %v1162_v54 = vmul.f32 0.2, %v1154_v50 }
 0x185   : > { %v1163_v55 = vsel %vm1155_vm0, %v1151_v47, %v1159_v51  ;;  %v1164_v56 = vsel %vm1156_vm1, %v1152_v48, %v1160_v52 }
 0x186   : > { %v1444_v57 = vpack.c.bf16 %v1164_v56, %v1163_v55  ;;  %v1165_v58 = vsel %vm1157_vm2, %v1153_v49, %v1161_v53  ;;  %v1166_v59 = vsel %vm1158_vm3, %v1154_v50, %v1162_v54 }
 0x187   : > { %v1445_v60 = vpack.c.bf16 %v1166_v59, %v1165_v58 }
 0x188   : > { %1179 = vst [vmem:[%s2018_s15] sm:$0xff] %v1444_v57 }
 0x189   : > { %1180 = vst [vmem:[%s2018_s15 + $0x8] sm:$0xff] %v1445_v60 }
 0x18a PF: > { %1187 = sbr.rel (!%p1846_p12) target bundleno = 402 (0x192), region = 109  ;;  %s1446_s1 = sshll.u32 (%p1846_p12), %s1712_s22, 3 }
 0x18b   : > { %s1193_s29 = scalar_lea.vmem (%p1846_p12), %s2147_s4, %s1446_s1 }
 0x18f   : > { %v1224_v61 = vld [vmem:[%s2018_s15] sm:$0xff] }
 0x190   : > { %v1226_v62 = vld [vmem:[%s2018_s15 + $0x8] sm:$0xff]  ;;  %1225 = vst [vmem:[%s1193_s29] sm:$0xff] %v1224_v61 }
 0x191   : > { %1227 = vst [vmem:[%s1193_s29 + $0x10] sm:$0xff] %v1226_v62 }
 0x192 PF: > { %s14_s25 = sadd.s32 1, %s1724_s25   ;;  %s2159_s14 = sld [smem:[#allocation6_spill]] }
 0x193   : > { %p11_p6 = scmp.ge.s32.totalorder %s14_s25, 18   ;;  %s2160_s27 = sld [smem:[#allocation7_spill]] }
 0x194   : > { %s2161_s15 = smov %s1688_s16  ;;  %s2162_s16 = smov %s1844_s13 }
 0x195   : > { %s2163_s17 = smov %s1696_s18  ;;  %s2164_s18 = smov %s1841_s12 }
 0x196   : > { %s2165_s19 = smov %s1704_s20  ;;  %s2166_s20 = smov %s1827_s7 }
 0x197   : > { %s2167_s21 = smov %s1716_s23  ;;  %s2168_s22 = smov %s1720_s24 }
 0x198   : > { %s2169_s23 = smov %s2159_s14  ;;  %13 = sbr.rel (!%p11_p6) target bundleno = 9 (0x9), region = 192 }
 0x199   : > { %s2170_s24 = smov %s2160_s27 }

</bundles_post_ra>
